<compile_context>
chip_gen: v7x
topology: tpu7x:2x2x1
jax: 0.10.0
libtpu: 0.0.40
codegen_flags: <defaults>
</compile_context>

<pallas_src>
import numpy as np
import jax
import jax.numpy as jnp
from jax import lax
from jax.experimental import pallas as pl
from jax.experimental.pallas import tpu as pltpu


# ---------------------------------------------------------------------------
# Static architecture description (mirrors the PyTorch module)
#   (kind, Cin, Cout, k, stride, pad, output_padding, activation)
# ---------------------------------------------------------------------------
_LAYERS = (
    ("conv",   1, 32, 3, 2, 1, 0, "relu"),
    ("conv",  32, 16, 3, 2, 1, 0, "relu"),
    ("conv",  16,  8, 3, 2, 1, 0, "relu"),
    ("convT",  8, 16, 3, 2, 1, 1, "relu"),
    ("convT", 16, 32, 3, 2, 1, 1, "relu"),
    ("convT", 32,  1, 3, 2, 1, 1, "sigmoid"),
)
_NAMES = ("e1", "e2", "e3", "d1", "d2", "d3")


def _round_up(x, m):
    return (x + m - 1) // m * m


# ---------------------------------------------------------------------------
# Pallas kernel: the whole autoencoder on one batch tile
# ---------------------------------------------------------------------------
def _fused_ae_kernel(x_ref,
                     w1, w2, w3, w4, w5, w6,
                     b1, b2, b3, b4, b5, b6,
                     o_ref):
    """x_ref: (tb, F0) bf16.  wN: (F_in, F_out) bf16 resident.  bN: (1, F_out)
    f32 resident.  o_ref: (tb, F_last) f32.  All intermediates stay on-chip;
    GEMMs run on the MXU with f32 accumulation; the epilogue stays in f32."""

    def gemm_bias(h, w_ref, b_ref):
        acc = jnp.dot(h, w_ref[...], preferred_element_type=jnp.float32)
        return acc + b_ref[...]                     # broadcast bias over rows

    h = x_ref[...]
    h = jnp.maximum(gemm_bias(h, w1, b1), 0.0).astype(jnp.bfloat16)
    h = jnp.maximum(gemm_bias(h, w2, b2), 0.0).astype(jnp.bfloat16)
    h = jnp.maximum(gemm_bias(h, w3, b3), 0.0).astype(jnp.bfloat16)
    h = jnp.maximum(gemm_bias(h, w4, b4), 0.0).astype(jnp.bfloat16)
    h = jnp.maximum(gemm_bias(h, w5, b5), 0.0).astype(jnp.bfloat16)
    z = gemm_bias(h, w6, b6)
    o_ref[...] = 1.0 / (1.0 + jnp.exp(-z))          # sigmoid (EUP exp), f32


def fused_autoencoder(x_flat, ws, bs):
    """x_flat: (B, F0) bf16.  ws/bs: 6 prepared weight matrices / bias rows.
    Returns (B, F_last) f32."""
    b_dim, f0 = x_flat.shape
    f_last = ws[-1].shape[1]

    # Batch tiling: one program for small B (splitting 2 rows is not worth the
    # ~0.35 us/step overhead); tiles of 8 for larger B so the "parallel" axis
    # actually shards work across megacore / v7x's two TensorCores.
    tile_b = b_dim if b_dim <= 8 else 8
    b_padded = _round_up(b_dim, tile_b)
    if b_padded != b_dim:
        x_flat = jnp.pad(x_flat, ((0, b_padded - b_dim), (0, 0)))
    grid = (pl.cdiv(b_padded, tile_b),)

    flops = sum(2 * b_padded * w.shape[0] * w.shape[1] for w in ws)
    bytes_accessed = (x_flat.size * 2
                      + sum(w.size * 2 for w in ws)
                      + sum(b.size * 4 for b in bs)
                      + b_padded * f_last * 4)
    cost = pl.CostEstimate(flops=flops,
                           transcendentals=b_padded * f_last,
                           bytes_accessed=bytes_accessed)

    in_specs = [pl.BlockSpec((tile_b, f0), lambda i: (i, 0))]
    for w in ws:                                     # weights: resident blocks
        in_specs.append(pl.BlockSpec(w.shape, lambda i: (0, 0)))
    for b in bs:                                     # biases: resident blocks
        in_specs.append(pl.BlockSpec(b.shape, lambda i: (0, 0)))

    out = pl.pallas_call(
        _fused_ae_kernel,
        out_shape=jax.ShapeDtypeStruct((b_padded, f_last), jnp.float32),
        grid=grid,
        in_specs=in_specs,
        out_specs=pl.BlockSpec((tile_b, f_last), lambda i: (i, 0)),
        compiler_params=pltpu.CompilerParams(
            dimension_semantics=("parallel",),
            vmem_limit_bytes=32 * 1024 * 1024),
        cost_estimate=cost,
    )(x_flat, *ws, *bs)
    return out[:b_dim]


# ---------------------------------------------------------------------------
# Forward pass (semantics of PyTorch AutoEncoderConv)
# ---------------------------------------------------------------------------
def autoencoder_forward(params, x):
    """x: (B, 1, H, W) f32 NCHW -> (B, 1, H, W) f32 in [0, 1]."""
    b_dim, c_dim, h_dim, w_dim = x.shape
    ws, bs = params["w"], params["b"]
    x_flat = x.reshape(b_dim, c_dim * h_dim * w_dim).astype(jnp.bfloat16)
    f_in = ws[0].shape[0]
    if x_flat.shape[1] != f_in:                      # generic feature padding
        x_flat = jnp.pad(x_flat, ((0, 0), (0, f_in - x_flat.shape[1])))
    out_flat = fused_autoencoder(x_flat, ws, bs)     # (B, F_last) f32
    return out_flat[:, :c_dim * h_dim * w_dim].reshape(b_dim, c_dim, h_dim, w_dim)


# ---------------------------------------------------------------------------
# One-time weight preparation: lower each conv layer to a dense matrix acting
# on the flattened (C*H*W) feature vector (host-side numpy, outside jit).
# ---------------------------------------------------------------------------
def _conv_matrix(w, stride, pad, h_in, w_in):
    """PyTorch Conv2d as a (Cin*Hi*Wi, Cout*Ho*Wo) matrix: out = in_flat @ M."""
    c_out, c_in, k, _ = w.shape
    h_out = (h_in + 2 * pad - k) // stride + 1
    w_out = (w_in + 2 * pad - k) // stride + 1
    m = np.zeros((c_in * h_in * w_in, c_out * h_out * w_out), np.float32)
    ci = np.arange(c_in) * h_in * w_in
    co = np.arange(c_out) * h_out * w_out
    for oy in range(h_out):
        for ox in range(w_out):
            for ky in range(k):
                for kx in range(k):
                    iy = oy * stride + ky - pad
                    ix = ox * stride + kx - pad
                    if 0 <= iy < h_in and 0 <= ix < w_in:
                        m[np.ix_(ci + iy * w_in + ix,
                                 co + oy * w_out + ox)] += w[:, :, ky, kx].T
    return m, h_out, w_out


def _conv_transpose_matrix(w, stride, pad, out_pad, h_in, w_in):
    """PyTorch ConvTranspose2d (weight (Cin,Cout,k,k)) as a dense matrix."""
    c_in, c_out, k, _ = w.shape
    h_out = (h_in - 1) * stride - 2 * pad + k + out_pad
    w_out = (w_in - 1) * stride - 2 * pad + k + out_pad
    m = np.zeros((c_in * h_in * w_in, c_out * h_out * w_out), np.float32)
    ci = np.arange(c_in) * h_in * w_in
    co = np.arange(c_out) * h_out * w_out
    for iy in range(h_in):
        for ix in range(w_in):
            for ky in range(k):
                for kx in range(k):
                    oy = iy * stride + ky - pad
                    ox = ix * stride + kx - pad
                    if 0 <= oy < h_out and 0 <= ox < w_out:
                        m[np.ix_(ci + iy * w_in + ix,
                                 co + oy * w_out + ox)] += w[:, :, ky, kx]
    return m, h_out, w_out


def prepare_params(raw, height=16, width=16):
    """One-time prep: build the per-layer dense matrices (padding, stride,
    flip, channel transpose, dilation, output_padding all baked in), chain the
    128-lane feature padding between layers, cast to bf16 for the MXU.
    Returns a pytree containing ONLY jnp arrays (jit-safe)."""
    mats, biases = [], []
    h_cur, w_cur = height, width
    for name, (kind, _cin, _cout, _k, s, p, op, _act) in zip(_NAMES, _LAYERS):
        w_np = np.asarray(raw[name + "_w"], np.float32)
        b_np = np.asarray(raw[name + "_b"], np.float32)
        if kind == "conv":
            m, h_cur, w_cur = _conv_matrix(w_np, s, p, h_cur, w_cur)
        else:
            m, h_cur, w_cur = _conv_transpose_matrix(w_np, s, p, op, h_cur, w_cur)
        mats.append(m)
        biases.append(np.repeat(b_np, h_cur * w_cur))

    # Pad every inter-layer feature size to a multiple of 128 lanes; padded
    # channels carry zero weights/bias, so they are mathematically inert and
    # no per-layer slicing is needed.
    sizes = [mats[0].shape[0]] + [m.shape[1] for m in mats]
    padded = [_round_up(s_, 128) for s_ in sizes]
    ws, bs = [], []
    for i, (m, b) in enumerate(zip(mats, biases)):
        mp = np.zeros((padded[i], padded[i + 1]), np.float32)
        mp[: m.shape[0], : m.shape[1]] = m
        bp = np.zeros((1, padded[i + 1]), np.float32)
        bp[0, : b.shape[0]] = b
        ws.append(jnp.asarray(mp, dtype=jnp.bfloat16))
        bs.append(jnp.asarray(bp, dtype=jnp.float32))
    return {"w": tuple(ws), "b": tuple(bs)}


# ---------------------------------------------------------------------------
# Raw (PyTorch-shaped) parameter init + pure-JAX f32 reference (check only)
# ---------------------------------------------------------------------------
def init_params(key):
    ks = jax.random.split(key, 12)
    r = lambda i, shape: 0.1 * jax.random.normal(ks[i], shape, jnp.float32)
    return {
        "e1_w": r(0, (32, 1, 3, 3)),  "e1_b": r(1, (32,)),
        "e2_w": r(2, (16, 32, 3, 3)), "e2_b": r(3, (16,)),
        "e3_w": r(4, (8, 16, 3, 3)),  "e3_b": r(5, (8,)),
        "d1_w": r(6, (8, 16, 3, 3)),  "d1_b": r(7, (16,)),
        "d2_w": r(8, (16, 32, 3, 3)), "d2_b": r(9, (32,)),
        "d3_w": r(10, (32, 1, 3, 3)), "d3_b": r(11, (1,)),
    }


def reference_forward(raw, x):
    """Pure-JAX f32 reference with exact PyTorch semantics (check only)."""
    def conv(h, w, b, stride, pad):
        y = lax.conv_general_dilated(
            h, w, window_strides=(stride, stride),
            padding=((pad, pad), (pad, pad)),
            dimension_numbers=("NCHW", "OIHW", "NCHW"))
        return y + b.reshape(1, -1, 1, 1)

    def conv_t(h, w, b, stride, pad, out_pad):
        k = w.shape[2]
        w_eq = jnp.flip(w, (2, 3)).transpose(1, 0, 2, 3)   # (Cout, Cin, k, k)
        lo = k - 1 - pad
        y = lax.conv_general_dilated(
            h, w_eq, window_strides=(1, 1),
            padding=((lo, lo + out_pad), (lo, lo + out_pad)),
            lhs_dilation=(stride, stride),
            dimension_numbers=("NCHW", "OIHW", "NCHW"))
        return y + b.reshape(1, -1, 1, 1)

    h = jax.nn.relu(conv(x, raw["e1_w"], raw["e1_b"], 2, 1))
    h = jax.nn.relu(conv(h, raw["e2_w"], raw["e2_b"], 2, 1))
    h = jax.nn.relu(conv(h, raw["e3_w"], raw["e3_b"], 2, 1))
    h = jax.nn.relu(conv_t(h, raw["d1_w"], raw["d1_b"], 2, 1, 1))
    h = jax.nn.relu(conv_t(h, raw["d2_w"], raw["d2_b"], 2, 1, 1))
    return jax.nn.sigmoid(conv_t(h, raw["d3_w"], raw["d3_b"], 2, 1, 1))


if __name__ == "__main__":
    key = jax.random.PRNGKey(0)
    k_p, k_x = jax.random.split(key)
    raw_params = init_params(k_p)
    params = prepare_params(raw_params)                     # one-time prep
    x = jax.random.normal(k_x, (2, 1, 16, 16), jnp.float32)  # NCHW

    fwd = jax.jit(autoencoder_forward)
    y = fwd(params, x)
    jax.block_until_ready(y)

    assert y.shape == (2, 1, 16, 16), y.shape
    assert y.dtype == jnp.float32
    assert bool(jnp.all((y >= 0.0) & (y <= 1.0)))           # sigmoid range

    # Cross-check against the f32 reference (bf16 MXU operands => relaxed tol).
    y_ref = reference_forward(raw_params, x)
    assert float(jnp.max(jnp.abs(y - y_ref))) < 5e-2

    print("KERNEL_OK")
</pallas_src>

<mosaic_0001>
module attributes {stable_mosaic.version = 11 : i64} {
  func.func @_fused_ae_kernel(%arg0: i32, %arg1: memref<2x256xbf16, #tpu.memory_space<vmem>>, %arg2: memref<256x2048xbf16, #tpu.memory_space<vmem>>, %arg3: memref<2048x256xbf16, #tpu.memory_space<vmem>>, %arg4: memref<256x128xbf16, #tpu.memory_space<vmem>>, %arg5: memref<128x256xbf16, #tpu.memory_space<vmem>>, %arg6: memref<256x2048xbf16, #tpu.memory_space<vmem>>, %arg7: memref<2048x256xbf16, #tpu.memory_space<vmem>>, %arg8: memref<1x2048xf32, #tpu.memory_space<vmem>>, %arg9: memref<1x256xf32, #tpu.memory_space<vmem>>, %arg10: memref<1x128xf32, #tpu.memory_space<vmem>>, %arg11: memref<1x256xf32, #tpu.memory_space<vmem>>, %arg12: memref<1x2048xf32, #tpu.memory_space<vmem>>, %arg13: memref<1x256xf32, #tpu.memory_space<vmem>>, %arg14: memref<2x256xf32, #tpu.memory_space<vmem>>) attributes {dimension_semantics = [#tpu.dimension_semantics<parallel>], iteration_bounds = array<i64: 1>, scalar_prefetch = 0 : i64, scratch_operands = 0 : i64, tpu.core_type = #tpu.core_type<tc>, window_params = [{transform_indices = @transform_0, window_bounds = array<i64: 2, 256>}, {pipeline_mode = #tpu.pipeline_mode<synchronous>, transform_indices = @transform_1, window_bounds = array<i64: 256, 2048>}, {pipeline_mode = #tpu.pipeline_mode<synchronous>, transform_indices = @transform_2, window_bounds = array<i64: 2048, 256>}, {pipeline_mode = #tpu.pipeline_mode<synchronous>, transform_indices = @transform_3, window_bounds = array<i64: 256, 128>}, {pipeline_mode = #tpu.pipeline_mode<synchronous>, transform_indices = @transform_4, window_bounds = array<i64: 128, 256>}, {pipeline_mode = #tpu.pipeline_mode<synchronous>, transform_indices = @transform_5, window_bounds = array<i64: 256, 2048>}, {pipeline_mode = #tpu.pipeline_mode<synchronous>, transform_indices = @transform_6, window_bounds = array<i64: 2048, 256>}, {pipeline_mode = #tpu.pipeline_mode<synchronous>, transform_indices = @transform_7, window_bounds = array<i64: 1, 2048>}, {pipeline_mode = #tpu.pipeline_mode<synchronous>, transform_indices = @transform_8, window_bounds = array<i64: 1, 256>}, {pipeline_mode = #tpu.pipeline_mode<synchronous>, transform_indices = @transform_9, window_bounds = array<i64: 1, 128>}, {pipeline_mode = #tpu.pipeline_mode<synchronous>, transform_indices = @transform_10, window_bounds = array<i64: 1, 256>}, {pipeline_mode = #tpu.pipeline_mode<synchronous>, transform_indices = @transform_11, window_bounds = array<i64: 1, 2048>}, {pipeline_mode = #tpu.pipeline_mode<synchronous>, transform_indices = @transform_12, window_bounds = array<i64: 1, 256>}, {transform_indices = @transform_13, window_bounds = array<i64: 2, 256>}]} {
    %c0 = arith.constant 0 : index
    %c0_0 = arith.constant 0 : index
    %0 = vector.load %arg1[%c0, %c0_0] : memref<2x256xbf16, #tpu.memory_space<vmem>>, vector<2x256xbf16>
    %c0_1 = arith.constant 0 : index
    %c0_2 = arith.constant 0 : index
    %1 = vector.load %arg2[%c0_1, %c0_2] : memref<256x2048xbf16, #tpu.memory_space<vmem>>, vector<256x2048xbf16>
    %cst = arith.constant dense<0.000000e+00> : vector<2x2048xf32>
    %2 = tpu.matmul %0, %1, %cst {dimension_numbers = #tpu.dot_dimension_numbers<[1], [0], [0], [1], [0, 0, 1, 1], [], []>} : vector<2x256xbf16>, vector<256x2048xbf16>, vector<2x2048xf32> -> vector<2x2048xf32>
    %c0_3 = arith.constant 0 : index
    %c0_4 = arith.constant 0 : index
    %3 = vector.load %arg8[%c0_3, %c0_4] : memref<1x2048xf32, #tpu.memory_space<vmem>>, vector<1x2048xf32>
    %4 = vector.broadcast %3 : vector<1x2048xf32> to vector<2x2048xf32>
    %5 = arith.addf %2, %4 : vector<2x2048xf32>
    %cst_5 = arith.constant 0.000000e+00 : f32
    %6 = vector.broadcast %cst_5 : f32 to vector<2x2048xf32>
    %7 = arith.maximumf %5, %6 : vector<2x2048xf32>
    %8 = arith.truncf %7 : vector<2x2048xf32> to vector<2x2048xbf16>
    %c0_6 = arith.constant 0 : index
    %c0_7 = arith.constant 0 : index
    %9 = vector.load %arg3[%c0_6, %c0_7] : memref<2048x256xbf16, #tpu.memory_space<vmem>>, vector<2048x256xbf16>
    %cst_8 = arith.constant dense<0.000000e+00> : vector<2x256xf32>
    %10 = tpu.matmul %8, %9, %cst_8 {dimension_numbers = #tpu.dot_dimension_numbers<[1], [0], [0], [1], [0, 0, 1, 1], [], []>} : vector<2x2048xbf16>, vector<2048x256xbf16>, vector<2x256xf32> -> vector<2x256xf32>
    %c0_9 = arith.constant 0 : index
    %c0_10 = arith.constant 0 : index
    %11 = vector.load %arg9[%c0_9, %c0_10] : memref<1x256xf32, #tpu.memory_space<vmem>>, vector<1x256xf32>
    %12 = vector.broadcast %11 : vector<1x256xf32> to vector<2x256xf32>
    %13 = arith.addf %10, %12 : vector<2x256xf32>
    %cst_11 = arith.constant 0.000000e+00 : f32
    %14 = vector.broadcast %cst_11 : f32 to vector<2x256xf32>
    %15 = arith.maximumf %13, %14 : vector<2x256xf32>
    %16 = arith.truncf %15 : vector<2x256xf32> to vector<2x256xbf16>
    %c0_12 = arith.constant 0 : index
    %c0_13 = arith.constant 0 : index
    %17 = vector.load %arg4[%c0_12, %c0_13] : memref<256x128xbf16, #tpu.memory_space<vmem>>, vector<256x128xbf16>
    %cst_14 = arith.constant dense<0.000000e+00> : vector<2x128xf32>
    %18 = tpu.matmul %16, %17, %cst_14 {dimension_numbers = #tpu.dot_dimension_numbers<[1], [0], [0], [1], [0, 0, 1, 1], [], []>} : vector<2x256xbf16>, vector<256x128xbf16>, vector<2x128xf32> -> vector<2x128xf32>
    %c0_15 = arith.constant 0 : index
    %c0_16 = arith.constant 0 : index
    %19 = vector.load %arg10[%c0_15, %c0_16] : memref<1x128xf32, #tpu.memory_space<vmem>>, vector<1x128xf32>
    %20 = vector.broadcast %19 : vector<1x128xf32> to vector<2x128xf32>
    %21 = arith.addf %18, %20 : vector<2x128xf32>
    %cst_17 = arith.constant 0.000000e+00 : f32
    %22 = vector.broadcast %cst_17 : f32 to vector<2x128xf32>
    %23 = arith.maximumf %21, %22 : vector<2x128xf32>
    %24 = arith.truncf %23 : vector<2x128xf32> to vector<2x128xbf16>
    %c0_18 = arith.constant 0 : index
    %c0_19 = arith.constant 0 : index
    %25 = vector.load %arg5[%c0_18, %c0_19] : memref<128x256xbf16, #tpu.memory_space<vmem>>, vector<128x256xbf16>
    %cst_20 = arith.constant dense<0.000000e+00> : vector<2x256xf32>
    %26 = tpu.matmul %24, %25, %cst_20 {dimension_numbers = #tpu.dot_dimension_numbers<[1], [0], [0], [1], [0, 0, 1, 1], [], []>} : vector<2x128xbf16>, vector<128x256xbf16>, vector<2x256xf32> -> vector<2x256xf32>
    %c0_21 = arith.constant 0 : index
    %c0_22 = arith.constant 0 : index
    %27 = vector.load %arg11[%c0_21, %c0_22] : memref<1x256xf32, #tpu.memory_space<vmem>>, vector<1x256xf32>
    %28 = vector.broadcast %27 : vector<1x256xf32> to vector<2x256xf32>
    %29 = arith.addf %26, %28 : vector<2x256xf32>
    %cst_23 = arith.constant 0.000000e+00 : f32
    %30 = vector.broadcast %cst_23 : f32 to vector<2x256xf32>
    %31 = arith.maximumf %29, %30 : vector<2x256xf32>
    %32 = arith.truncf %31 : vector<2x256xf32> to vector<2x256xbf16>
    %c0_24 = arith.constant 0 : index
    %c0_25 = arith.constant 0 : index
    %33 = vector.load %arg6[%c0_24, %c0_25] : memref<256x2048xbf16, #tpu.memory_space<vmem>>, vector<256x2048xbf16>
    %cst_26 = arith.constant dense<0.000000e+00> : vector<2x2048xf32>
    %34 = tpu.matmul %32, %33, %cst_26 {dimension_numbers = #tpu.dot_dimension_numbers<[1], [0], [0], [1], [0, 0, 1, 1], [], []>} : vector<2x256xbf16>, vector<256x2048xbf16>, vector<2x2048xf32> -> vector<2x2048xf32>
    %c0_27 = arith.constant 0 : index
    %c0_28 = arith.constant 0 : index
    %35 = vector.load %arg12[%c0_27, %c0_28] : memref<1x2048xf32, #tpu.memory_space<vmem>>, vector<1x2048xf32>
    %36 = vector.broadcast %35 : vector<1x2048xf32> to vector<2x2048xf32>
    %37 = arith.addf %34, %36 : vector<2x2048xf32>
    %cst_29 = arith.constant 0.000000e+00 : f32
    %38 = vector.broadcast %cst_29 : f32 to vector<2x2048xf32>
    %39 = arith.maximumf %37, %38 : vector<2x2048xf32>
    %40 = arith.truncf %39 : vector<2x2048xf32> to vector<2x2048xbf16>
    %c0_30 = arith.constant 0 : index
    %c0_31 = arith.constant 0 : index
    %41 = vector.load %arg7[%c0_30, %c0_31] : memref<2048x256xbf16, #tpu.memory_space<vmem>>, vector<2048x256xbf16>
    %cst_32 = arith.constant dense<0.000000e+00> : vector<2x256xf32>
    %42 = tpu.matmul %40, %41, %cst_32 {dimension_numbers = #tpu.dot_dimension_numbers<[1], [0], [0], [1], [0, 0, 1, 1], [], []>} : vector<2x2048xbf16>, vector<2048x256xbf16>, vector<2x256xf32> -> vector<2x256xf32>
    %c0_33 = arith.constant 0 : index
    %c0_34 = arith.constant 0 : index
    %43 = vector.load %arg13[%c0_33, %c0_34] : memref<1x256xf32, #tpu.memory_space<vmem>>, vector<1x256xf32>
    %44 = vector.broadcast %43 : vector<1x256xf32> to vector<2x256xf32>
    %45 = arith.addf %42, %44 : vector<2x256xf32>
    %cst_35 = arith.constant 0.000000e+00 : f32
    %46 = vector.broadcast %cst_35 : f32 to vector<2x256xf32>
    %47 = arith.subf %46, %45 : vector<2x256xf32>
    %48 = math.exp %47 : vector<2x256xf32>
    %cst_36 = arith.constant 1.000000e+00 : f32
    %49 = vector.broadcast %cst_36 : f32 to vector<2x256xf32>
    %50 = arith.addf %49, %48 : vector<2x256xf32>
    %cst_37 = arith.constant 1.000000e+00 : f32
    %51 = vector.broadcast %cst_37 : f32 to vector<2x256xf32>
    %52 = arith.divf %51, %50 : vector<2x256xf32>
    %c0_38 = arith.constant 0 : index
    %c0_39 = arith.constant 0 : index
    %53 = vector.load %arg14[%c0_38, %c0_39] : memref<2x256xf32, #tpu.memory_space<vmem>>, vector<2x256xf32>
    tpu.vector_store %arg14[%c0_38, %c0_39], %52 {strides = array<i32>} : memref<2x256xf32, #tpu.memory_space<vmem>>, vector<2x256xf32>,
    return
  }
  func.func @transform_0(%arg0: i32) -> (i32, i32) {
    %c0_i32 = arith.constant 0 : i32
    %c0_i32_0 = arith.constant 0 : i32
    return %arg0, %c0_i32 : i32, i32
  }
  func.func @transform_1(%arg0: i32) -> (i32, i32) {
    %c0_i32 = arith.constant 0 : i32
    %c0_i32_0 = arith.constant 0 : i32
    %c0_i32_1 = arith.constant 0 : i32
    return %c0_i32, %c0_i32_0 : i32, i32
  }
  func.func @transform_2(%arg0: i32) -> (i32, i32) {
    %c0_i32 = arith.constant 0 : i32
    %c0_i32_0 = arith.constant 0 : i32
    %c0_i32_1 = arith.constant 0 : i32
    return %c0_i32, %c0_i32_0 : i32, i32
  }
  func.func @transform_3(%arg0: i32) -> (i32, i32) {
    %c0_i32 = arith.constant 0 : i32
    %c0_i32_0 = arith.constant 0 : i32
    %c0_i32_1 = arith.constant 0 : i32
    return %c0_i32, %c0_i32_0 : i32, i32
  }
  func.func @transform_4(%arg0: i32) -> (i32, i32) {
    %c0_i32 = arith.constant 0 : i32
    %c0_i32_0 = arith.constant 0 : i32
    %c0_i32_1 = arith.constant 0 : i32
    return %c0_i32, %c0_i32_0 : i32, i32
  }
  func.func @transform_5(%arg0: i32) -> (i32, i32) {
    %c0_i32 = arith.constant 0 : i32
    %c0_i32_0 = arith.constant 0 : i32
    %c0_i32_1 = arith.constant 0 : i32
    return %c0_i32, %c0_i32_0 : i32, i32
  }
  func.func @transform_6(%arg0: i32) -> (i32, i32) {
    %c0_i32 = arith.constant 0 : i32
    %c0_i32_0 = arith.constant 0 : i32
    %c0_i32_1 = arith.constant 0 : i32
    return %c0_i32, %c0_i32_0 : i32, i32
  }
  func.func @transform_7(%arg0: i32) -> (i32, i32) {
    %c0_i32 = arith.constant 0 : i32
    %c0_i32_0 = arith.constant 0 : i32
    %c0_i32_1 = arith.constant 0 : i32
    return %c0_i32, %c0_i32_0 : i32, i32
  }
  func.func @transform_8(%arg0: i32) -> (i32, i32) {
    %c0_i32 = arith.constant 0 : i32
    %c0_i32_0 = arith.constant 0 : i32
    %c0_i32_1 = arith.constant 0 : i32
    return %c0_i32, %c0_i32_0 : i32, i32
  }
  func.func @transform_9(%arg0: i32) -> (i32, i32) {
    %c0_i32 = arith.constant 0 : i32
    %c0_i32_0 = arith.constant 0 : i32
    %c0_i32_1 = arith.constant 0 : i32
    return %c0_i32, %c0_i32_0 : i32, i32
  }
  func.func @transform_10(%arg0: i32) -> (i32, i32) {
    %c0_i32 = arith.constant 0 : i32
    %c0_i32_0 = arith.constant 0 : i32
    %c0_i32_1 = arith.constant 0 : i32
    return %c0_i32, %c0_i32_0 : i32, i32
  }
  func.func @transform_11(%arg0: i32) -> (i32, i32) {
    %c0_i32 = arith.constant 0 : i32
    %c0_i32_0 = arith.constant 0 : i32
    %c0_i32_1 = arith.constant 0 : i32
    return %c0_i32, %c0_i32_0 : i32, i32
  }
  func.func @transform_12(%arg0: i32) -> (i32, i32) {
    %c0_i32 = arith.constant 0 : i32
    %c0_i32_0 = arith.constant 0 : i32
    %c0_i32_1 = arith.constant 0 : i32
    return %c0_i32, %c0_i32_0 : i32, i32
  }
  func.func @transform_13(%arg0: i32) -> (i32, i32) {
    %c0_i32 = arith.constant 0 : i32
    %c0_i32_0 = arith.constant 0 : i32
    return %arg0, %c0_i32 : i32, i32
  }
}

</mosaic_0001>

<bundles_post_ra>
// kernel: autoencoder_forward.1
= control target key start
LH: loop header
LB: loop body
LE: loop exit
PB: predicated region body
PF: predicated region fallthrough
CT: control target
= control target key end

     0   :  { %18 = vsyncpa [#allocation3], 0  ;;  %s10804_s0 = inlined_call_operand.vmem [shape: bf16[2,256], index: 0, kind: input, shape index: {}]   ;;  %s10805_s1 = inlined_call_operand.hbm [shape: bf16[256,2048], index: 1, kind: input, shape index: {}]   ;;  %s10806_s2 = inlined_call_operand.hbm [shape: bf16[2048,256], index: 2, kind: input, shape index: {}]   ;;  %s10807_s3 = inlined_call_operand.hbm [shape: bf16[256,128], index: 3, kind: input, shape index: {}]   ;;  %s10808_s4 = inlined_call_operand.hbm [shape: bf16[128,256], index: 4, kind: input, shape index: {}]   ;;  %s10809_s5 = inlined_call_operand.hbm [shape: bf16[256,2048], index: 5, kind: input, shape index: {}]   ;;  %s10810_s6 = inlined_call_operand.hbm [shape: bf16[2048,256], index: 6, kind: input, shape index: {}]   ;;  %s10811_s7 = inlined_call_operand.vmem [shape: f32[1,2048], index: 7, kind: input, shape index: {}]   ;;  %s10812_s8 = inlined_call_operand.vmem [shape: f32[1,256], index: 8, kind: input, shape index: {}]   ;;  %s10813_s9 = inlined_call_operand.vmem [shape: f32[1,128], index: 9, kind: input, shape index: {}]   ;;  %s10814_s10 = inlined_call_operand.vmem [shape: f32[1,256], index: 10, kind: input, shape index: {}]   ;;  %s10815_s11 = inlined_call_operand.vmem [shape: f32[1,2048], index: 11, kind: input, shape index: {}]   ;;  %s10816_s12 = inlined_call_operand.vmem [shape: f32[1,256], index: 12, kind: input, shape index: {}]   ;;  %s10817_s13 = inlined_call_operand.vmem [shape: f32[2,256], index: 13, kind: output, shape index: {}]  }
   0x1   :  { %19 = vsyncpa [#allocation5], 0 }
   0x2   :  { %20 = vsyncpa [#allocation8], 0 }
   0x3   :  { %21 = vsyncpa [#allocation11], 0  ;;  %s10341_s25 = smov [#allocation4]   ;;  %s10201_s29 = scalar_lea.hbm %s10806_s2, 32768 }
   0x4   :  { %s41_s26 = sshll.u32 %s10341_s25, 4  ;;  %p10202_p0 = scmp.ne.s32.totalorder %s10806_s2, %s10201_s29  ;;  %s42_s26 = int_to_ptr.vmem [resolvable:$true] %s41_s26 }
   0x5   :  { %p10205_p1 = scmp.lt.u32.totalorder %s10201_s29, %s10806_s2 }
   0x7   :  { %p10207_p2 = pnand %p10205_p1, %p10202_p0 }
   0x9   :  { %10210 = shalt.err (!%p10207_p2)
}
   0xa   :  { %s10211_s17 = scalar_lea.vmem %s42_s26, 32768  ;;  %p10216_p4 = scmp.lt.s32.totalorder %s42_s26, %s42_s26 }
   0xb   :  { %p10212_p3 = scmp.ne.s32.totalorder %s42_s26, %s10211_s17  ;;  %p10217_p5 = scmp.lt.s32.totalorder %s10211_s17, %s10211_s17 }
   0xd   :  { %p10218_p6 = por %p10217_p5, %p10216_p4 }
   0xf   :  { %p10219_p7 = pnand %p10218_p6, %p10212_p3 }
  0x11   :  { %10222 = shalt.err (!%p10219_p7)
}
  0x12   :  { %s10342_s18 = smov 128   ;;  %s10343_s19 = smov 8  }
  0x13   :  { %47 = dma.hbm_to_vmem [thread:$0]  %s10806_s2, 32768, %s42_s26, [#allocation5], %s10342_s18, %s10342_s18, %s10343_s19  }
  0x14   :  { %s10344_s22 = smov [#allocation7]   ;;  %s10345_s24 = smov [#allocation2]  }
  0x15   :  { %s65_s23 = sshll.u32 %s10344_s22, 4  ;;  %s29_s25 = sshll.u32 %s10345_s24, 4  ;;  %s66_s23 = int_to_ptr.vmem [resolvable:$true] %s65_s23  ;;  %s30_s25 = int_to_ptr.vmem [resolvable:$true] %s29_s25 }
  0x16   :  { %s10223_s29 = scalar_lea.hbm %s10808_s4, 2048 }
  0x17   :  { %p10224_p8 = scmp.ne.s32.totalorder %s10808_s4, %s10223_s29  ;;  %p10227_p9 = scmp.lt.u32.totalorder %s10223_s29, %s10808_s4 }
  0x19   :  { %p10229_p10 = pnand %p10227_p9, %p10224_p8 }
  0x1b   :  { %10232 = shalt.err (!%p10229_p10)
}
  0x1c   :  { %s10233_s2 = scalar_lea.vmem %s66_s23, 2048  ;;  %p10238_p12 = scmp.lt.s32.totalorder %s66_s23, %s66_s23 }
  0x1d   :  { %p10234_p11 = scmp.ne.s32.totalorder %s66_s23, %s10233_s2  ;;  %p10239_p13 = scmp.lt.s32.totalorder %s10233_s2, %s10233_s2 }
  0x1f   :  { %p10240_p0 = por %p10239_p13, %p10238_p12 }
  0x21   :  { %p10241_p1 = pnand %p10240_p0, %p10234_p11 }
  0x23   :  { %10244 = shalt.err (!%p10241_p1)
}
  0x24   :  { %71 = dma.hbm_to_vmem [thread:$0]  %s10808_s4, 2048, %s66_s23, [#allocation8], %s10342_s18, %s10342_s18, %s10343_s19  }
  0x25   :  { %s10245_s22 = scalar_lea.hbm %s10805_s1, 32768 }
  0x26   :  { %p10246_p2 = scmp.ne.s32.totalorder %s10805_s1, %s10245_s22  ;;  %p10249_p3 = scmp.lt.u32.totalorder %s10245_s22, %s10805_s1 }
  0x28   :  { %p10251_p4 = pnand %p10249_p3, %p10246_p2 }
  0x2a   :  { %10254 = shalt.err (!%p10251_p4)
}
  0x2b   :  { %s10255_s30 = scalar_lea.vmem %s30_s25, 32768  ;;  %p10260_p6 = scmp.lt.s32.totalorder %s30_s25, %s30_s25 }
  0x2c   :  { %p10256_p5 = scmp.ne.s32.totalorder %s30_s25, %s10255_s30  ;;  %p10261_p7 = scmp.lt.s32.totalorder %s10255_s30, %s10255_s30 }
  0x2e   :  { %p10262_p8 = por %p10261_p7, %p10260_p6 }
  0x30   :  { %p10263_p9 = pnand %p10262_p8, %p10256_p5 }
  0x32   :  { %10266 = shalt.err (!%p10263_p9)
}
  0x33   :  { %s10346_s4 = smov 1024   ;;  %s10347_s23 = smov 64  }
  0x34   :  { %35 = dma.hbm_to_vmem [thread:$0]  %s10805_s1, 32768, %s30_s25, [#allocation3], %s10346_s4, %s10346_s4, %s10347_s23  }
  0x35   :  { %s10348_s16 = smov [#allocation6]   ;;  %s10267_s20 = scalar_lea.hbm %s10807_s3, 2048 }
  0x36   :  { %s53_s2 = sshll.u32 %s10348_s16, 4  ;;  %p10268_p10 = scmp.ne.s32.totalorder %s10807_s3, %s10267_s20  ;;  %s54_s2 = int_to_ptr.vmem [resolvable:$true] %s53_s2 }
  0x37   :  { %p10271_p11 = scmp.lt.u32.totalorder %s10267_s20, %s10807_s3 }
  0x39   :  { %p10273_p12 = pnand %p10271_p11, %p10268_p10 }
  0x3b   :  { %10276 = shalt.err (!%p10273_p12)
}
  0x3c   :  { %s10277_s28 = scalar_lea.vmem %s54_s2, 2048  ;;  %p10282_p0 = scmp.lt.s32.totalorder %s54_s2, %s54_s2 }
  0x3d   :  { %p10278_p13 = scmp.ne.s32.totalorder %s54_s2, %s10277_s28  ;;  %p10283_p1 = scmp.lt.s32.totalorder %s10277_s28, %s10277_s28 }
  0x3f   :  { %p10284_p2 = por %p10283_p1, %p10282_p0 }
  0x41   :  { %p10285_p3 = pnand %p10284_p2, %p10278_p13 }
  0x43   :  { %10288 = shalt.err (!%p10285_p3)
}
  0x44   :  { %s10349_s1 = smov 4   ;;  %s10350_s30 = smov [#allocation9]  }
  0x45   :  { %59 = dma.hbm_to_vmem [thread:$0]  %s10807_s3, 2048, %s54_s2, [#allocation5], %s10347_s23, %s10347_s23, %s10349_s1  }
  0x46   :  { %s77_s14 = sshll.u32 %s10350_s30, 4  ;;  %s10351_s15 = smov [#allocation10]   ;;  %s78_s14 = int_to_ptr.vmem [resolvable:$true] %s77_s14 }
  0x47   :  { %s89_s16 = sshll.u32 %s10351_s15, 4  ;;  %s10289_s20 = scalar_lea.hbm %s10809_s5, 32768  ;;  %s90_s16 = int_to_ptr.vmem [resolvable:$true] %s89_s16 }
  0x48   :  { %p10290_p4 = scmp.ne.s32.totalorder %s10809_s5, %s10289_s20  ;;  %p10293_p5 = scmp.lt.u32.totalorder %s10289_s20, %s10809_s5 }
  0x4a   :  { %p10295_p6 = pnand %p10293_p5, %p10290_p4 }
  0x4c   :  { %10298 = shalt.err (!%p10295_p6)
}
  0x4d   :  { %s10299_s3 = scalar_lea.vmem %s78_s14, 32768  ;;  %p10304_p8 = scmp.lt.s32.totalorder %s78_s14, %s78_s14 }
  0x4e   :  { %p10300_p7 = scmp.ne.s32.totalorder %s78_s14, %s10299_s3  ;;  %p10305_p9 = scmp.lt.s32.totalorder %s10299_s3, %s10299_s3 }
  0x50   :  { %p10306_p10 = por %p10305_p9, %p10304_p8 }
  0x52   :  { %p10307_p11 = pnand %p10306_p10, %p10300_p7 }
  0x54   :  { %10310 = shalt.err (!%p10307_p11)
}
  0x55   :  { %83 = dma.hbm_to_vmem [thread:$0]  %s10809_s5, 32768, %s78_s14, [#allocation8], %s10346_s4, %s10346_s4, %s10347_s23  }
  0x56   :  { %s10311_s29 = scalar_lea.hbm %s10810_s6, 32768 }
  0x57   :  { %p10312_p12 = scmp.ne.s32.totalorder %s10810_s6, %s10311_s29  ;;  %p10315_p13 = scmp.lt.u32.totalorder %s10311_s29, %s10810_s6 }
  0x59   :  { %p10317_p0 = pnand %p10315_p13, %p10312_p12 }
  0x5b   :  { %10320 = shalt.err (!%p10317_p0)
}
  0x5c   :  { %s10321_s20 = scalar_lea.vmem %s90_s16, 32768  ;;  %p10326_p2 = scmp.lt.s32.totalorder %s90_s16, %s90_s16 }
  0x5d   :  { %p10322_p1 = scmp.ne.s32.totalorder %s90_s16, %s10321_s20  ;;  %p10327_p3 = scmp.lt.s32.totalorder %s10321_s20, %s10321_s20 }
  0x5f   :  { %p10328_p4 = por %p10327_p3, %p10326_p2 }
  0x61   :  { %p10329_p5 = pnand %p10328_p4, %p10322_p1 }
  0x63   :  { %10332 = shalt.err (!%p10329_p5)
}
  0x64   :  { %95 = dma.hbm_to_vmem [thread:$0]  %s10810_s6, 32768, %s90_s16, [#allocation11], %s10342_s18, %s10342_s18, %s10343_s19  }
  0x65   :  { %10333 = dma.done.wait [#allocation3], 32768  }
  0x66   :  { %10334 = vsyncadd [#allocation3], 4294934528 }
  0x67   :  { %10335 = dma.done.wait [#allocation5], 34816  }
  0x68   :  { %10336 = vsyncadd [#allocation5], 4294932480 }
  0x69   :  { %10337 = dma.done.wait [#allocation8], 34816  }
  0x6a   :  { %10338 = vsyncadd [#allocation8], 4294932480 }
  0x6b   :  { %10339 = dma.done.wait [#allocation11], 32768  }
  0x6c   :  { %10340 = vsyncadd [#allocation11], 4294934528  ;;  %v128_v0 = vld [vmem:[#allocation2] sm:$0xff]  ;;  %v388_v6 = vlaneseq  ;;  %v10352_v7 = vmov 1966171168  }
  0x6d   :  { %v136_v1 = vld [vmem:[#allocation2 + $0x40] sm:$0xff]  ;;  %v478_v8 = vunpack.c.l.s4 %v10352_v7  ;;  %v129_v7 = vld [vmem:[#allocation2 + $0x8] sm:$0xff] }
  0x6e   :  { %v144_v2 = vld [vmem:[#allocation2 + $0x80] sm:$0xff]  ;;  %v8233_v3 = vcombine.high %v128_v0, %v136_v1  ;;  %v8232_v4 = vcombine.low %v128_v0, %v136_v1  ;;  %v10513_v14 = vshrl.u32 %v388_v6, 7 }
  0x6f   :  { %v152_v5 = vld [vmem:[#allocation2 + $0xc0] sm:$0xff]  ;;  %v479_v15 = vunpack.c.0.s8 %v478_v8  ;;  %v137_v8 = vld [vmem:[#allocation2 + $0x48] sm:$0xff] }
  0x70   :  { %v8249_v9 = vcombine.high %v144_v2, %v152_v5  ;;  %v160_v10 = vld [vmem:[#allocation2 + $0x100] sm:$0xff]  ;;  %1773 = vmatprep.subr.bf16.mxu0 %v8233_v3  ;;  %v8248_v12 = vcombine.low %v144_v2, %v152_v5 }
  0x71   :  { %v168_v11 = vld [vmem:[#allocation2 + $0x140] sm:$0xff]  ;;  %1774 = vmatpush1.bf16.msra.mxu0 %v8232_v4  ;;  %v10516_v20 = vsub.s32 %v479_v15, %v10513_v14 }
  0x72   :  { %1775 = vmatprep.subr.bf16.mxu0 %v8249_v9  ;;  %v8265_v13 = vcombine.high %v160_v10, %v168_v11  ;;  %v176_v16 = vld [vmem:[#allocation2 + $0x180] sm:$0xff]  ;;  %v8264_v18 = vcombine.low %v160_v10, %v168_v11  ;;  %v145_v11 = vld [vmem:[#allocation2 + $0x88] sm:$0xff] }
  0x73   :  { %v184_v17 = vld [vmem:[#allocation2 + $0x1c0] sm:$0xff] }
  0x74   :  { %v8281_v19 = vcombine.high %v176_v16, %v184_v17  ;;  %v192_v21 = vld [vmem:[#allocation2 + $0x200] sm:$0xff]  ;;  %v8280_v25 = vcombine.low %v176_v16, %v184_v17  ;;  %v8234_v16 = vcombine.low %v129_v7, %v137_v8  ;;  %v161_v17 = vld [vmem:[#allocation2 + $0x108] sm:$0xff] }
  0x75   :  { %1776 = vmatpush1.bf16.msra.mxu0 %v8248_v12  ;;  %v200_v22 = vld [vmem:[#allocation2 + $0x240] sm:$0xff]  ;;  %v153_v12 = vld [vmem:[#allocation2 + $0xc8] sm:$0xff] }
  0x76   :  { %1777 = vmatprep.subr.bf16.mxu0 %v8265_v13  ;;  %v10521_v23 = vld.sshfl [vmem:[%s10804_s0] sm:$0x11 pattern:$0x75316420]  ;;  %v8297_v26 = vcombine.high %v192_v21, %v200_v22  ;;  %v8296_v30 = vcombine.low %v192_v21, %v200_v22  ;;  %v8235_v13 = vcombine.high %v129_v7, %v137_v8  ;;  %v8250_v21 = vcombine.low %v145_v11, %v153_v12  ;;  %v177_v22 = vld [vmem:[#allocation2 + $0x188] sm:$0xff] }
  0x77   :  { %v476_v24 = vcombine.high %v10521_v23, %v10521_v23  ;;  %v208_v28 = vld [vmem:[#allocation2 + $0x280] sm:$0xff]  ;;  %v10532_v15 = vrot.slane %v10521_v23, %v10516_v20  ;;  %v201_v23 = vld [vmem:[#allocation2 + $0x248] sm:$0xff] }
  0x78   :  { %v216_v29 = vld [vmem:[#allocation2 + $0x2c0] sm:$0xff]  ;;  %v377_v7 = vld [vmem:[#allocation2 + $0x7c8] sm:$0xff] }
  0x79   :  { %1778 = vmatpush1.bf16.msra.mxu0 %v8264_v18  ;;  %v10526_v27 = vrot.slane %v476_v24, %v10516_v20  ;;  %v8313_v31 = vcombine.high %v208_v28, %v216_v29  ;;  %v224_v32 = vld [vmem:[#allocation2 + $0x300] sm:$0xff]  ;;  %v8312_v34 = vcombine.low %v208_v28, %v216_v29  ;;  %v169_v18 = vld [vmem:[#allocation2 + $0x148] sm:$0xff] }
  0x7a   :  { %1779 = vmatprep.subr.bf16.mxu0 %v8281_v19  ;;  %v232_v33 = vld [vmem:[#allocation2 + $0x340] sm:$0xff]  ;;  %v8251_v19 = vcombine.high %v145_v11, %v153_v12  ;;  %v185_v24 = vld [vmem:[#allocation2 + $0x1c8] sm:$0xff]  ;;  %v138_v11 = vld [vmem:[#allocation2 + $0x50] sm:$0xff] }
  0x7b   :  { %1805 = vmatprep.mubr.bf16.mxu0 %v10526_v27  ;;  %2092 = vmatprep.mubr.bf16.mxu1 %v10526_v27  ;;  %v8329_v35 = vcombine.high %v224_v32, %v232_v33  ;;  %v240_v36 = vld [vmem:[#allocation2 + $0x380] sm:$0xff]  ;;  %v8328_v38 = vcombine.low %v224_v32, %v232_v33  ;;  %v193_v20 = vld [vmem:[#allocation2 + $0x208] sm:$0xff]  ;;  %v8283_v28 = vcombine.high %v177_v22, %v185_v24 }
  0x7c   :  { %v248_v37 = vld [vmem:[#allocation2 + $0x3c0] sm:$0xff]  ;;  %v8282_v29 = vcombine.low %v177_v22, %v185_v24  ;;  %v8299_v32 = vcombine.high %v193_v20, %v201_v23  ;;  %v8298_v33 = vcombine.low %v193_v20, %v201_v23  ;;  %v170_v22 = vld [vmem:[#allocation2 + $0x150] sm:$0xff] }
  0x7d   :  { %1780 = vmatpush1.bf16.msra.mxu0 %v8280_v25  ;;  %v8345_v39 = vcombine.high %v240_v36, %v248_v37  ;;  %v256_v40 = vld [vmem:[#allocation2 + $0x400] sm:$0xff]  ;;  %v8344_v42 = vcombine.low %v240_v36, %v248_v37  ;;  %v8267_v25 = vcombine.high %v161_v17, %v169_v18  ;;  %v186_v20 = vld [vmem:[#allocation2 + $0x1d0] sm:$0xff] }
  0x7e   :  { %1781 = vmatprep.subr.bf16.mxu0 %v8297_v26  ;;  %v264_v41 = vld [vmem:[#allocation2 + $0x440] sm:$0xff]  ;;  %v8266_v26 = vcombine.low %v161_v17, %v169_v18  ;;  %v154_v17 = vld [vmem:[#allocation2 + $0xd0] sm:$0xff] }
  0x7f   :  { %v272_v43 = vld [vmem:[#allocation2 + $0x480] sm:$0xff]  ;;  %v8361_v45 = vcombine.high %v256_v40, %v264_v41  ;;  %v8360_v46 = vcombine.low %v256_v40, %v264_v41 }
  0x80   :  { %v280_v44 = vld [vmem:[#allocation2 + $0x4c0] sm:$0xff] }
  0x81   :  { %1782 = vmatpush1.bf16.msra.mxu0 %v8296_v30  ;;  %v288_v47 = vld [vmem:[#allocation2 + $0x500] sm:$0xff]  ;;  %v8377_v49 = vcombine.high %v272_v43, %v280_v44  ;;  %v8376_v50 = vcombine.low %v272_v43, %v280_v44  ;;  %v209_v30 = vld [vmem:[#allocation2 + $0x288] sm:$0xff] }
  0x82   :  { %1783 = vmatprep.subr.bf16.mxu0 %v8313_v31  ;;  %v296_v48 = vld [vmem:[#allocation2 + $0x540] sm:$0xff]  ;;  %v217_v31 = vld [vmem:[#allocation2 + $0x2c8] sm:$0xff] }
  0x83   :  { %v304_v51 = vld [vmem:[#allocation2 + $0x580] sm:$0xff]  ;;  %v8393_v53 = vcombine.high %v288_v47, %v296_v48  ;;  %v8392_v54 = vcombine.low %v288_v47, %v296_v48  ;;  %v8315_v36 = vcombine.high %v209_v30, %v217_v31  ;;  %v8314_v37 = vcombine.low %v209_v30, %v217_v31  ;;  %v265_v43 = vld [vmem:[#allocation2 + $0x448] sm:$0xff]  ;;  %v202_v30 = vld [vmem:[#allocation2 + $0x250] sm:$0xff] }
  0x84   :  { %v312_v52 = vld [vmem:[#allocation2 + $0x5c0] sm:$0xff]  ;;  %v281_v47 = vld [vmem:[#allocation2 + $0x4c8] sm:$0xff] }
  0x85   :  { %1784 = vmatpush1.bf16.msra.mxu0 %v8312_v34  ;;  %v320_v55 = vld [vmem:[#allocation2 + $0x600] sm:$0xff]  ;;  %v8409_v57 = vcombine.high %v304_v51, %v312_v52  ;;  %v8408_v58 = vcombine.low %v304_v51, %v312_v52  ;;  %v225_v34 = vld [vmem:[#allocation2 + $0x308] sm:$0xff] }
  0x86   :  { %1785 = vmatprep.subr.bf16.mxu0 %v8329_v35  ;;  %v328_v56 = vld [vmem:[#allocation2 + $0x640] sm:$0xff]  ;;  %v233_v35 = vld [vmem:[#allocation2 + $0x348] sm:$0xff] }
  0x87   :  { %v336_v59 = vld [vmem:[#allocation2 + $0x680] sm:$0xff]  ;;  %v8425_v61 = vcombine.high %v320_v55, %v328_v56  ;;  %v8424_v62 = vcombine.low %v320_v55, %v328_v56  ;;  %v8331_v40 = vcombine.high %v225_v34, %v233_v35  ;;  %v8330_v41 = vcombine.low %v225_v34, %v233_v35  ;;  %v297_v51 = vld [vmem:[#allocation2 + $0x548] sm:$0xff]  ;;  %v218_v34 = vld [vmem:[#allocation2 + $0x2d0] sm:$0xff] }
  0x88   :  { %v344_v60 = vld [vmem:[#allocation2 + $0x6c0] sm:$0xff]  ;;  %v313_v55 = vld [vmem:[#allocation2 + $0x5c8] sm:$0xff] }
  0x89   :  { %1786 = vmatpush1.bf16.msra.mxu0 %v8328_v38  ;;  %v352_v63 = vld [vmem:[#allocation2 + $0x700] sm:$0xff]  ;;  %v8441_v1 = vcombine.high %v336_v59, %v344_v60  ;;  %v8440_v2 = vcombine.low %v336_v59, %v344_v60  ;;  %v241_v38 = vld [vmem:[#allocation2 + $0x388] sm:$0xff] }
  0x8a   :  { %1787 = vmatprep.subr.bf16.mxu0 %v8345_v39  ;;  %v360_v0 = vld [vmem:[#allocation2 + $0x740] sm:$0xff]  ;;  %v249_v39 = vld [vmem:[#allocation2 + $0x3c8] sm:$0xff] }
  0x8b   :  { %v368_v3 = vld [vmem:[#allocation2 + $0x780] sm:$0xff]  ;;  %v8457_v5 = vcombine.high %v352_v63, %v360_v0  ;;  %v8456_v6 = vcombine.low %v352_v63, %v360_v0  ;;  %v8347_v44 = vcombine.high %v241_v38, %v249_v39  ;;  %v329_v59 = vld [vmem:[#allocation2 + $0x648] sm:$0xff] }
  0x8c   :  { %v376_v4 = vld [vmem:[#allocation2 + $0x7c0] sm:$0xff]  ;;  %v345_v63 = vld [vmem:[#allocation2 + $0x6c8] sm:$0xff] }
  0x8d   :  { %1788 = vmatpush1.bf16.msra.mxu0 %v8344_v42  ;;  %v8473_v9 = vcombine.high %v368_v3, %v376_v4  ;;  %v8472_v10 = vcombine.low %v368_v3, %v376_v4  ;;  %v257_v42 = vld [vmem:[#allocation2 + $0x408] sm:$0xff] }
  0x8e   :  { %1789 = vmatprep.subr.bf16.mxu0 %v8361_v45  ;;  %v8346_v45 = vcombine.low %v241_v38, %v249_v39  ;;  %v8363_v48 = vcombine.high %v257_v42, %v265_v43  ;;  %v361_v3 = vld [vmem:[#allocation2 + $0x748] sm:$0xff]  ;;  %v234_v38 = vld [vmem:[#allocation2 + $0x350] sm:$0xff] }
  0x91   :  { %1790 = vmatpush1.bf16.msra.mxu0 %v8360_v46  ;;  %v273_v46 = vld [vmem:[#allocation2 + $0x488] sm:$0xff] }
  0x92   :  { %1791 = vmatprep.subr.bf16.mxu0 %v8377_v49  ;;  %v8362_v49 = vcombine.low %v257_v42, %v265_v43  ;;  %v8379_v52 = vcombine.high %v273_v46, %v281_v47  ;;  %v250_v42 = vld [vmem:[#allocation2 + $0x3d0] sm:$0xff] }
  0x95   :  { %1792 = vmatpush1.bf16.msra.mxu0 %v8376_v50  ;;  %v289_v50 = vld [vmem:[#allocation2 + $0x508] sm:$0xff] }
  0x96   :  { %1793 = vmatprep.subr.bf16.mxu0 %v8393_v53  ;;  %v8378_v53 = vcombine.low %v273_v46, %v281_v47  ;;  %v8395_v56 = vcombine.high %v289_v50, %v297_v51  ;;  %v266_v46 = vld [vmem:[#allocation2 + $0x450] sm:$0xff] }
  0x99   :  { %1794 = vmatpush1.bf16.msra.mxu0 %v8392_v54  ;;  %v305_v54 = vld [vmem:[#allocation2 + $0x588] sm:$0xff] }
  0x9a   :  { %1795 = vmatprep.subr.bf16.mxu0 %v8409_v57  ;;  %v8394_v57 = vcombine.low %v289_v50, %v297_v51  ;;  %v8411_v60 = vcombine.high %v305_v54, %v313_v55  ;;  %v282_v50 = vld [vmem:[#allocation2 + $0x4d0] sm:$0xff] }
  0x9d   :  { %1796 = vmatpush1.bf16.msra.mxu0 %v8408_v58  ;;  %v321_v58 = vld [vmem:[#allocation2 + $0x608] sm:$0xff] }
  0x9e   :  { %1797 = vmatprep.subr.bf16.mxu0 %v8425_v61  ;;  %v8410_v61 = vcombine.low %v305_v54, %v313_v55  ;;  %v8427_v0 = vcombine.high %v321_v58, %v329_v59  ;;  %v298_v54 = vld [vmem:[#allocation2 + $0x550] sm:$0xff] }
  0xa1   :  { %1798 = vmatpush1.bf16.msra.mxu0 %v8424_v62  ;;  %v337_v62 = vld [vmem:[#allocation2 + $0x688] sm:$0xff] }
  0xa2   :  { %1799 = vmatprep.subr.bf16.mxu0 %v8441_v1  ;;  %v8426_v1 = vcombine.low %v321_v58, %v329_v59  ;;  %v8443_v4 = vcombine.high %v337_v62, %v345_v63  ;;  %v314_v58 = vld [vmem:[#allocation2 + $0x5d0] sm:$0xff] }
  0xa5   :  { %1800 = vmatpush1.bf16.msra.mxu0 %v8440_v2  ;;  %v353_v2 = vld [vmem:[#allocation2 + $0x708] sm:$0xff] }
  0xa6   :  { %1801 = vmatprep.subr.bf16.mxu0 %v8457_v5  ;;  %v8442_v5 = vcombine.low %v337_v62, %v345_v63  ;;  %v8459_v8 = vcombine.high %v353_v2, %v361_v3  ;;  %v330_v62 = vld [vmem:[#allocation2 + $0x650] sm:$0xff] }
  0xa9   :  { %1802 = vmatpush1.bf16.msra.mxu0 %v8456_v6  ;;  %v369_v6 = vld [vmem:[#allocation2 + $0x788] sm:$0xff] }
  0xaa   :  { %1803 = vmatprep.subr.bf16.mxu0 %v8473_v9  ;;  %v8458_v9 = vcombine.low %v353_v2, %v361_v3  ;;  %v8475_v12 = vcombine.high %v369_v6, %v377_v7  ;;  %v346_v2 = vld [vmem:[#allocation2 + $0x6d0] sm:$0xff] }
  0xad   :  { %1804 = vmatpush1.bf16.msra.mxu0 %v8472_v10  ;;  %v130_v10 = vld [vmem:[#allocation2 + $0x10] sm:$0xff] }
  0xae   :  { %1814 = vmatprep.subr.bf16.mxu0 %v8235_v13  ;;  %v8474_v13 = vcombine.low %v369_v6, %v377_v7  ;;  %v8237_v18 = vcombine.high %v130_v10, %v138_v11  ;;  %v362_v6 = vld [vmem:[#allocation2 + $0x750] sm:$0xff] }
  0xb0   :  { %1806 = vmatmul.mubr.bf16.vlgmr.msra.gmra.mrb[0].mxu0 %v10532_v15 }
  0xb1   :  { %1815 = vmatpush1.bf16.msra.mxu0 %v8234_v16  ;;  %1846 = vmatprep.mubr.bf16.mxu0 %v10526_v27  ;;  %v146_v16 = vld [vmem:[#allocation2 + $0x90] sm:$0xff] }
  0xb2   :  { %1816 = vmatprep.subr.bf16.mxu0 %v8251_v19  ;;  %v8236_v19 = vcombine.low %v130_v10, %v138_v11  ;;  %v8253_v24 = vcombine.high %v146_v16, %v154_v17  ;;  %v378_v10 = vld [vmem:[#allocation2 + $0x7d0] sm:$0xff] }
  0xb5   :  { %1817 = vmatpush1.bf16.msra.mxu0 %v8250_v21  ;;  %v162_v21 = vld [vmem:[#allocation2 + $0x110] sm:$0xff] }
  0xb6   :  { %1818 = vmatprep.subr.bf16.mxu0 %v8267_v25  ;;  %v8252_v25 = vcombine.low %v146_v16, %v154_v17  ;;  %v8269_v23 = vcombine.high %v162_v21, %v170_v22  ;;  %v139_v16 = vld [vmem:[#allocation2 + $0x58] sm:$0xff] }
  0xb9   :  { %1819 = vmatpush1.bf16.msra.mxu0 %v8266_v26  ;;  %v178_v26 = vld [vmem:[#allocation2 + $0x190] sm:$0xff] }
  0xba   :  { %1820 = vmatprep.subr.bf16.mxu0 %v8283_v28  ;;  %v8268_v28 = vcombine.low %v162_v21, %v170_v22  ;;  %v8285_v31 = vcombine.high %v178_v26, %v186_v20  ;;  %v155_v21 = vld [vmem:[#allocation2 + $0xd8] sm:$0xff] }
  0xbd   :  { %1821 = vmatpush1.bf16.msra.mxu0 %v8282_v29  ;;  %v194_v29 = vld [vmem:[#allocation2 + $0x210] sm:$0xff] }
  0xbe   :  { %1822 = vmatprep.subr.bf16.mxu0 %v8299_v32  ;;  %v8284_v32 = vcombine.low %v178_v26, %v186_v20  ;;  %v8301_v35 = vcombine.high %v194_v29, %v202_v30  ;;  %v171_v26 = vld [vmem:[#allocation2 + $0x158] sm:$0xff] }
  0xc1   :  { %1823 = vmatpush1.bf16.msra.mxu0 %v8298_v33  ;;  %v210_v33 = vld [vmem:[#allocation2 + $0x290] sm:$0xff] }
  0xc2   :  { %1824 = vmatprep.subr.bf16.mxu0 %v8315_v36  ;;  %v8300_v36 = vcombine.low %v194_v29, %v202_v30  ;;  %v8317_v39 = vcombine.high %v210_v33, %v218_v34  ;;  %v187_v29 = vld [vmem:[#allocation2 + $0x1d8] sm:$0xff] }
  0xc5   :  { %1825 = vmatpush1.bf16.msra.mxu0 %v8314_v37  ;;  %v226_v37 = vld [vmem:[#allocation2 + $0x310] sm:$0xff] }
  0xc6   :  { %1826 = vmatprep.subr.bf16.mxu0 %v8331_v40  ;;  %v8316_v40 = vcombine.low %v210_v33, %v218_v34  ;;  %v8333_v43 = vcombine.high %v226_v37, %v234_v38  ;;  %v203_v33 = vld [vmem:[#allocation2 + $0x258] sm:$0xff] }
  0xc9   :  { %1827 = vmatpush1.bf16.msra.mxu0 %v8330_v41  ;;  %v242_v41 = vld [vmem:[#allocation2 + $0x390] sm:$0xff] }
  0xca   :  { %1828 = vmatprep.subr.bf16.mxu0 %v8347_v44  ;;  %v8332_v44 = vcombine.low %v226_v37, %v234_v38  ;;  %v8349_v47 = vcombine.high %v242_v41, %v250_v42  ;;  %v219_v37 = vld [vmem:[#allocation2 + $0x2d8] sm:$0xff] }
  0xcd   :  { %1829 = vmatpush1.bf16.msra.mxu0 %v8346_v45  ;;  %v258_v45 = vld [vmem:[#allocation2 + $0x410] sm:$0xff] }
  0xce   :  { %1830 = vmatprep.subr.bf16.mxu0 %v8363_v48  ;;  %v8348_v48 = vcombine.low %v242_v41, %v250_v42  ;;  %v8365_v51 = vcombine.high %v258_v45, %v266_v46  ;;  %v235_v41 = vld [vmem:[#allocation2 + $0x358] sm:$0xff] }
  0xd1   :  { %1831 = vmatpush1.bf16.msra.mxu0 %v8362_v49  ;;  %v274_v49 = vld [vmem:[#allocation2 + $0x490] sm:$0xff] }
  0xd2   :  { %1832 = vmatprep.subr.bf16.mxu0 %v8379_v52  ;;  %v8364_v52 = vcombine.low %v258_v45, %v266_v46  ;;  %v8381_v55 = vcombine.high %v274_v49, %v282_v50  ;;  %v251_v45 = vld [vmem:[#allocation2 + $0x3d8] sm:$0xff] }
  0xd5   :  { %1833 = vmatpush1.bf16.msra.mxu0 %v8378_v53  ;;  %v290_v53 = vld [vmem:[#allocation2 + $0x510] sm:$0xff] }
  0xd6   :  { %1834 = vmatprep.subr.bf16.mxu0 %v8395_v56  ;;  %v8380_v56 = vcombine.low %v274_v49, %v282_v50  ;;  %v8397_v59 = vcombine.high %v290_v53, %v298_v54  ;;  %v267_v49 = vld [vmem:[#allocation2 + $0x458] sm:$0xff] }
  0xd9   :  { %1835 = vmatpush1.bf16.msra.mxu0 %v8394_v57  ;;  %v306_v57 = vld [vmem:[#allocation2 + $0x590] sm:$0xff] }
  0xda   :  { %1836 = vmatprep.subr.bf16.mxu0 %v8411_v60  ;;  %v8396_v60 = vcombine.low %v290_v53, %v298_v54  ;;  %v8413_v63 = vcombine.high %v306_v57, %v314_v58  ;;  %v283_v53 = vld [vmem:[#allocation2 + $0x4d8] sm:$0xff] }
  0xdd   :  { %1837 = vmatpush1.bf16.msra.mxu0 %v8410_v61  ;;  %v322_v61 = vld [vmem:[#allocation2 + $0x610] sm:$0xff] }
  0xde   :  { %1838 = vmatprep.subr.bf16.mxu0 %v8427_v0  ;;  %v8412_v0 = vcombine.low %v306_v57, %v314_v58  ;;  %v8429_v3 = vcombine.high %v322_v61, %v330_v62  ;;  %v299_v57 = vld [vmem:[#allocation2 + $0x558] sm:$0xff] }
  0xe1   :  { %1839 = vmatpush1.bf16.msra.mxu0 %v8426_v1  ;;  %v338_v1 = vld [vmem:[#allocation2 + $0x690] sm:$0xff] }
  0xe2   :  { %1840 = vmatprep.subr.bf16.mxu0 %v8443_v4  ;;  %v8428_v4 = vcombine.low %v322_v61, %v330_v62  ;;  %v8445_v7 = vcombine.high %v338_v1, %v346_v2  ;;  %v315_v61 = vld [vmem:[#allocation2 + $0x5d8] sm:$0xff] }
  0xe5   :  { %1841 = vmatpush1.bf16.msra.mxu0 %v8442_v5  ;;  %v354_v5 = vld [vmem:[#allocation2 + $0x710] sm:$0xff] }
  0xe6   :  { %1842 = vmatprep.subr.bf16.mxu0 %v8459_v8  ;;  %v8444_v8 = vcombine.low %v338_v1, %v346_v2  ;;  %v8461_v11 = vcombine.high %v354_v5, %v362_v6  ;;  %v331_v1 = vld [vmem:[#allocation2 + $0x658] sm:$0xff] }
  0xe9   :  { %1843 = vmatpush1.bf16.msra.mxu0 %v8458_v9  ;;  %v370_v9 = vld [vmem:[#allocation2 + $0x790] sm:$0xff] }
  0xea   :  { %1844 = vmatprep.subr.bf16.mxu0 %v8475_v12  ;;  %v8460_v12 = vcombine.low %v354_v5, %v362_v6  ;;  %v8477_v17 = vcombine.high %v370_v9, %v378_v10  ;;  %v347_v5 = vld [vmem:[#allocation2 + $0x6d8] sm:$0xff] }
  0xed   :  { %1845 = vmatpush1.bf16.msra.mxu0 %v8474_v13  ;;  %v131_v13 = vld [vmem:[#allocation2 + $0x18] sm:$0xff] }
  0xee   :  { %1855 = vmatprep.subr.bf16.mxu0 %v8237_v18  ;;  %v8476_v18 = vcombine.low %v370_v9, %v378_v10  ;;  %v8239_v22 = vcombine.high %v131_v13, %v139_v16  ;;  %v363_v9 = vld [vmem:[#allocation2 + $0x758] sm:$0xff] }
  0xf0   :  { %1847 = vmatmul.mubr.bf16.vlgmr.msra.gmra.mrb[4].mxu0 %v10532_v15 }
  0xf1   :  { %1856 = vmatpush1.bf16.msra.mxu0 %v8236_v19  ;;  %1887 = vmatprep.mubr.bf16.mxu0 %v10526_v27  ;;  %v147_v19 = vld [vmem:[#allocation2 + $0x98] sm:$0xff] }
  0xf2   :  { %1857 = vmatprep.subr.bf16.mxu0 %v8253_v24  ;;  %v8238_v24 = vcombine.low %v131_v13, %v139_v16  ;;  %v8255_v20 = vcombine.high %v147_v19, %v155_v21  ;;  %v379_v13 = vld [vmem:[#allocation2 + $0x7d8] sm:$0xff] }
  0xf5   :  { %1858 = vmatpush1.bf16.msra.mxu0 %v8252_v25  ;;  %v163_v25 = vld [vmem:[#allocation2 + $0x118] sm:$0xff] }
  0xf6   :  { %1859 = vmatprep.subr.bf16.mxu0 %v8269_v23  ;;  %v8254_v23 = vcombine.low %v147_v19, %v155_v21  ;;  %v8271_v30 = vcombine.high %v163_v25, %v171_v26  ;;  %v140_v21 = vld [vmem:[#allocation2 + $0x60] sm:$0xff] }
  0xf9   :  { %1860 = vmatpush1.bf16.msra.mxu0 %v8268_v28  ;;  %v179_v28 = vld [vmem:[#allocation2 + $0x198] sm:$0xff] }
  0xfa   :  { %1861 = vmatprep.subr.bf16.mxu0 %v8285_v31  ;;  %v8270_v31 = vcombine.low %v163_v25, %v171_v26  ;;  %v8287_v34 = vcombine.high %v179_v28, %v187_v29  ;;  %v148_v25 = vld [vmem:[#allocation2 + $0xa0] sm:$0xff] }
  0xfb   :  { %v156_v26 = vld [vmem:[#allocation2 + $0xe0] sm:$0xff] }
  0xfd   :  { %1862 = vmatpush1.bf16.msra.mxu0 %v8284_v32  ;;  %v195_v32 = vld [vmem:[#allocation2 + $0x218] sm:$0xff] }
  0xfe   :  { %1863 = vmatprep.subr.bf16.mxu0 %v8301_v35  ;;  %v8286_v35 = vcombine.low %v179_v28, %v187_v29  ;;  %v8303_v38 = vcombine.high %v195_v32, %v203_v33  ;;  %v164_v28 = vld [vmem:[#allocation2 + $0x120] sm:$0xff] }
  0xff   :  { %v172_v29 = vld [vmem:[#allocation2 + $0x160] sm:$0xff] }
 0x101   :  { %1864 = vmatpush1.bf16.msra.mxu0 %v8300_v36  ;;  %v211_v36 = vld [vmem:[#allocation2 + $0x298] sm:$0xff] }
 0x102   :  { %1865 = vmatprep.subr.bf16.mxu0 %v8317_v39  ;;  %v8302_v39 = vcombine.low %v195_v32, %v203_v33  ;;  %v8319_v42 = vcombine.high %v211_v36, %v219_v37  ;;  %v180_v32 = vld [vmem:[#allocation2 + $0x1a0] sm:$0xff] }
 0x103   :  { %v188_v33 = vld [vmem:[#allocation2 + $0x1e0] sm:$0xff] }
 0x105   :  { %1866 = vmatpush1.bf16.msra.mxu0 %v8316_v40  ;;  %v227_v40 = vld [vmem:[#allocation2 + $0x318] sm:$0xff] }
 0x106   :  { %1867 = vmatprep.subr.bf16.mxu0 %v8333_v43  ;;  %v8318_v43 = vcombine.low %v211_v36, %v219_v37  ;;  %v8335_v46 = vcombine.high %v227_v40, %v235_v41  ;;  %v196_v36 = vld [vmem:[#allocation2 + $0x220] sm:$0xff] }
 0x107   :  { %v204_v37 = vld [vmem:[#allocation2 + $0x260] sm:$0xff] }
 0x109   :  { %1868 = vmatpush1.bf16.msra.mxu0 %v8332_v44  ;;  %v243_v44 = vld [vmem:[#allocation2 + $0x398] sm:$0xff] }
 0x10a   :  { %1869 = vmatprep.subr.bf16.mxu0 %v8349_v47  ;;  %v8334_v47 = vcombine.low %v227_v40, %v235_v41  ;;  %v8351_v50 = vcombine.high %v243_v44, %v251_v45  ;;  %v212_v40 = vld [vmem:[#allocation2 + $0x2a0] sm:$0xff] }
 0x10b   :  { %v220_v41 = vld [vmem:[#allocation2 + $0x2e0] sm:$0xff] }
 0x10d   :  { %1870 = vmatpush1.bf16.msra.mxu0 %v8348_v48  ;;  %v259_v48 = vld [vmem:[#allocation2 + $0x418] sm:$0xff] }
 0x10e   :  { %1871 = vmatprep.subr.bf16.mxu0 %v8365_v51  ;;  %v8350_v51 = vcombine.low %v243_v44, %v251_v45  ;;  %v8367_v54 = vcombine.high %v259_v48, %v267_v49  ;;  %v228_v44 = vld [vmem:[#allocation2 + $0x320] sm:$0xff] }
 0x10f   :  { %v236_v45 = vld [vmem:[#allocation2 + $0x360] sm:$0xff] }
 0x111   :  { %1872 = vmatpush1.bf16.msra.mxu0 %v8364_v52  ;;  %v275_v52 = vld [vmem:[#allocation2 + $0x498] sm:$0xff] }
 0x112   :  { %1873 = vmatprep.subr.bf16.mxu0 %v8381_v55  ;;  %v8366_v55 = vcombine.low %v259_v48, %v267_v49  ;;  %v8383_v58 = vcombine.high %v275_v52, %v283_v53  ;;  %v244_v49 = vld [vmem:[#allocation2 + $0x3a0] sm:$0xff] }
 0x115   :  { %1874 = vmatpush1.bf16.msra.mxu0 %v8380_v56  ;;  %v291_v56 = vld [vmem:[#allocation2 + $0x518] sm:$0xff] }
 0x116   :  { %1875 = vmatprep.subr.bf16.mxu0 %v8397_v59  ;;  %v8382_v59 = vcombine.low %v275_v52, %v283_v53  ;;  %v8399_v62 = vcombine.high %v291_v56, %v299_v57  ;;  %v8336_v53 = vcombine.low %v228_v44, %v236_v45 }
 0x119   :  { %1876 = vmatpush1.bf16.msra.mxu0 %v8396_v60  ;;  %v307_v60 = vld [vmem:[#allocation2 + $0x598] sm:$0xff] }
 0x11a   :  { %1877 = vmatprep.subr.bf16.mxu0 %v8413_v63  ;;  %v8398_v63 = vcombine.low %v291_v56, %v299_v57  ;;  %v8415_v2 = vcombine.high %v307_v60, %v315_v61  ;;  %v260_v56 = vld [vmem:[#allocation2 + $0x420] sm:$0xff] }
 0x11b   :  { %v268_v57 = vld [vmem:[#allocation2 + $0x460] sm:$0xff] }
 0x11d   :  { %1878 = vmatpush1.bf16.msra.mxu0 %v8412_v0  ;;  %v323_v0 = vld [vmem:[#allocation2 + $0x618] sm:$0xff] }
 0x11e   :  { %1879 = vmatprep.subr.bf16.mxu0 %v8429_v3  ;;  %v8414_v3 = vcombine.low %v307_v60, %v315_v61  ;;  %v8431_v6 = vcombine.high %v323_v0, %v331_v1  ;;  %v276_v60 = vld [vmem:[#allocation2 + $0x4a0] sm:$0xff] }
 0x11f   :  { %v284_v61 = vld [vmem:[#allocation2 + $0x4e0] sm:$0xff] }
 0x121   :  { %1880 = vmatpush1.bf16.msra.mxu0 %v8428_v4  ;;  %v339_v4 = vld [vmem:[#allocation2 + $0x698] sm:$0xff] }
 0x122   :  { %1881 = vmatprep.subr.bf16.mxu0 %v8445_v7  ;;  %v8430_v7 = vcombine.low %v323_v0, %v331_v1  ;;  %v8447_v10 = vcombine.high %v339_v4, %v347_v5  ;;  %v292_v0 = vld [vmem:[#allocation2 + $0x520] sm:$0xff] }
 0x123   :  { %v300_v1 = vld [vmem:[#allocation2 + $0x560] sm:$0xff] }
 0x125   :  { %1882 = vmatpush1.bf16.msra.mxu0 %v8444_v8  ;;  %v355_v8 = vld [vmem:[#allocation2 + $0x718] sm:$0xff] }
 0x126   :  { %1883 = vmatprep.subr.bf16.mxu0 %v8461_v11  ;;  %v8446_v11 = vcombine.low %v339_v4, %v347_v5  ;;  %v8463_v16 = vcombine.high %v355_v8, %v363_v9  ;;  %v308_v4 = vld [vmem:[#allocation2 + $0x5a0] sm:$0xff] }
 0x127   :  { %v316_v5 = vld [vmem:[#allocation2 + $0x5e0] sm:$0xff] }
 0x129   :  { %1884 = vmatpush1.bf16.msra.mxu0 %v8460_v12  ;;  %v371_v12 = vld [vmem:[#allocation2 + $0x798] sm:$0xff] }
 0x12a   :  { %1885 = vmatprep.subr.bf16.mxu0 %v8477_v17  ;;  %v8462_v17 = vcombine.low %v355_v8, %v363_v9  ;;  %v8479_v19 = vcombine.high %v371_v12, %v379_v13  ;;  %v324_v8 = vld [vmem:[#allocation2 + $0x620] sm:$0xff] }
 0x12b   :  { %v332_v9 = vld [vmem:[#allocation2 + $0x660] sm:$0xff] }
 0x12d   :  { %1886 = vmatpush1.bf16.msra.mxu0 %v8476_v18  ;;  %v132_v18 = vld [vmem:[#allocation2 + $0x20] sm:$0xff] }
 0x12e   :  { %1896 = vmatprep.subr.bf16.mxu0 %v8239_v22  ;;  %v8478_v22 = vcombine.low %v371_v12, %v379_v13  ;;  %v340_v12 = vld [vmem:[#allocation2 + $0x6a0] sm:$0xff] }
 0x12f   :  { %v348_v13 = vld [vmem:[#allocation2 + $0x6e0] sm:$0xff] }
 0x130   :  { %1888 = vmatmul.mubr.bf16.vlgmr.msra.gmra.mrb[8].mxu0 %v10532_v15 }
 0x131   :  { %1897 = vmatpush1.bf16.msra.mxu0 %v8238_v24  ;;  %1928 = vmatprep.mubr.bf16.mxu0 %v10526_v27  ;;  %v8241_v24 = vcombine.high %v132_v18, %v140_v21 }
 0x132   :  { %1898 = vmatprep.subr.bf16.mxu0 %v8255_v20  ;;  %v8240_v20 = vcombine.low %v132_v18, %v140_v21  ;;  %v356_v18 = vld [vmem:[#allocation2 + $0x720] sm:$0xff]  ;;  %v8448_v21 = vcombine.low %v340_v12, %v348_v13 }
 0x135   :  { %1899 = vmatpush1.bf16.msra.mxu0 %v8254_v23  ;;  %v8257_v23 = vcombine.high %v148_v25, %v156_v26 }
 0x136   :  { %1900 = vmatprep.subr.bf16.mxu0 %v8271_v30  ;;  %v8256_v30 = vcombine.low %v148_v25, %v156_v26  ;;  %v380_v25 = vld [vmem:[#allocation2 + $0x7e0] sm:$0xff] }
 0x139   :  { %1901 = vmatpush1.bf16.msra.mxu0 %v8270_v31  ;;  %v8273_v31 = vcombine.high %v164_v28, %v172_v29 }
 0x13a   :  { %1902 = vmatprep.subr.bf16.mxu0 %v8287_v34  ;;  %v8272_v34 = vcombine.low %v164_v28, %v172_v29  ;;  %v141_v28 = vld [vmem:[#allocation2 + $0x68] sm:$0xff] }
 0x13d   :  { %1903 = vmatpush1.bf16.msra.mxu0 %v8286_v35  ;;  %v8289_v35 = vcombine.high %v180_v32, %v188_v33 }
 0x13e   :  { %1904 = vmatprep.subr.bf16.mxu0 %v8303_v38  ;;  %v8288_v38 = vcombine.low %v180_v32, %v188_v33  ;;  %v157_v32 = vld [vmem:[#allocation2 + $0xe8] sm:$0xff] }
 0x141   :  { %1905 = vmatpush1.bf16.msra.mxu0 %v8302_v39  ;;  %v8305_v39 = vcombine.high %v196_v36, %v204_v37 }
 0x142   :  { %1906 = vmatprep.subr.bf16.mxu0 %v8319_v42  ;;  %v8304_v42 = vcombine.low %v196_v36, %v204_v37  ;;  %v173_v36 = vld [vmem:[#allocation2 + $0x168] sm:$0xff] }
 0x145   :  { %1907 = vmatpush1.bf16.msra.mxu0 %v8318_v43  ;;  %v8321_v43 = vcombine.high %v212_v40, %v220_v41 }
 0x146   :  { %1908 = vmatprep.subr.bf16.mxu0 %v8335_v46  ;;  %v8320_v46 = vcombine.low %v212_v40, %v220_v41  ;;  %v189_v40 = vld [vmem:[#allocation2 + $0x1e8] sm:$0xff] }
 0x149   :  { %1909 = vmatpush1.bf16.msra.mxu0 %v8334_v47  ;;  %v8337_v47 = vcombine.high %v228_v44, %v236_v45  ;;  %v205_v44 = vld [vmem:[#allocation2 + $0x268] sm:$0xff] }
 0x14a   :  { %1910 = vmatprep.subr.bf16.mxu0 %v8351_v50  ;;  %v252_v50 = vld [vmem:[#allocation2 + $0x3e0] sm:$0xff] }
 0x14d   :  { %1911 = vmatpush1.bf16.msra.mxu0 %v8350_v51 }
 0x14e   :  { %1912 = vmatprep.subr.bf16.mxu0 %v8367_v54 }
 0x151   :  { %1913 = vmatpush1.bf16.msra.mxu0 %v8366_v55  ;;  %v8353_v55 = vcombine.high %v244_v49, %v252_v50 }
 0x152   :  { %1914 = vmatprep.subr.bf16.mxu0 %v8383_v58  ;;  %v8352_v58 = vcombine.low %v244_v49, %v252_v50  ;;  %v221_v49 = vld [vmem:[#allocation2 + $0x2e8] sm:$0xff] }
 0x155   :  { %1915 = vmatpush1.bf16.msra.mxu0 %v8382_v59  ;;  %v8369_v59 = vcombine.high %v260_v56, %v268_v57 }
 0x156   :  { %1916 = vmatprep.subr.bf16.mxu0 %v8399_v62  ;;  %v8368_v62 = vcombine.low %v260_v56, %v268_v57 }
 0x159   :  { %1917 = vmatpush1.bf16.msra.mxu0 %v8398_v63  ;;  %v8385_v63 = vcombine.high %v276_v60, %v284_v61 }
 0x15a   :  { %1918 = vmatprep.subr.bf16.mxu0 %v8415_v2  ;;  %v8384_v2 = vcombine.low %v276_v60, %v284_v61 }
 0x15d   :  { %1919 = vmatpush1.bf16.msra.mxu0 %v8414_v3  ;;  %v8401_v3 = vcombine.high %v292_v0, %v300_v1 }
 0x15e   :  { %1920 = vmatprep.subr.bf16.mxu0 %v8431_v6  ;;  %v8400_v6 = vcombine.low %v292_v0, %v300_v1  ;;  %v261_v1 = vld [vmem:[#allocation2 + $0x428] sm:$0xff] }
 0x161   :  { %1921 = vmatpush1.bf16.msra.mxu0 %v8430_v7  ;;  %v8417_v7 = vcombine.high %v308_v4, %v316_v5 }
 0x162   :  { %1922 = vmatprep.subr.bf16.mxu0 %v8447_v10  ;;  %v8416_v10 = vcombine.low %v308_v4, %v316_v5  ;;  %v277_v5 = vld [vmem:[#allocation2 + $0x4a8] sm:$0xff] }
 0x165   :  { %1923 = vmatpush1.bf16.msra.mxu0 %v8446_v11  ;;  %v8433_v11 = vcombine.high %v324_v8, %v332_v9 }
 0x166   :  { %1924 = vmatprep.subr.bf16.mxu0 %v8463_v16  ;;  %v8432_v16 = vcombine.low %v324_v8, %v332_v9  ;;  %v293_v9 = vld [vmem:[#allocation2 + $0x528] sm:$0xff] }
 0x169   :  { %1925 = vmatpush1.bf16.msra.mxu0 %v8462_v17  ;;  %v8449_v17 = vcombine.high %v340_v12, %v348_v13  ;;  %v309_v13 = vld [vmem:[#allocation2 + $0x5a8] sm:$0xff] }
 0x16a   :  { %1926 = vmatprep.subr.bf16.mxu0 %v8479_v19  ;;  %v364_v19 = vld [vmem:[#allocation2 + $0x760] sm:$0xff] }
 0x16b   :  { %v8464_v26 = vcombine.low %v356_v18, %v364_v19 }
 0x16d   :  { %1927 = vmatpush1.bf16.msra.mxu0 %v8478_v22  ;;  %v8465_v22 = vcombine.high %v356_v18, %v364_v19  ;;  %v325_v19 = vld [vmem:[#allocation2 + $0x628] sm:$0xff] }
 0x16e   :  { %1937 = vmatprep.subr.bf16.mxu0 %v8241_v24  ;;  %v372_v24 = vld [vmem:[#allocation2 + $0x7a0] sm:$0xff] }
 0x16f   :  { %v8480_v29 = vcombine.low %v372_v24, %v380_v25 }
 0x170   :  { %1929 = vmatmul.mubr.bf16.vlgmr.msra.gmra.mrb[12].mxu0 %v10532_v15 }
 0x171   :  { %1938 = vmatpush1.bf16.msra.mxu0 %v8240_v20  ;;  %1969 = vmatprep.mubr.bf16.mxu0 %v10526_v27  ;;  %v8481_v20 = vcombine.high %v372_v24, %v380_v25  ;;  %v341_v25 = vld [vmem:[#allocation2 + $0x6a8] sm:$0xff] }
 0x172   :  { %1939 = vmatprep.subr.bf16.mxu0 %v8257_v23  ;;  %v133_v23 = vld [vmem:[#allocation2 + $0x28] sm:$0xff] }
 0x173   :  { %v8242_v33 = vcombine.low %v133_v23, %v141_v28 }
 0x175   :  { %1940 = vmatpush1.bf16.msra.mxu0 %v8256_v30  ;;  %v8243_v30 = vcombine.high %v133_v23, %v141_v28  ;;  %v357_v28 = vld [vmem:[#allocation2 + $0x728] sm:$0xff] }
 0x176   :  { %1941 = vmatprep.subr.bf16.mxu0 %v8273_v31  ;;  %v149_v31 = vld [vmem:[#allocation2 + $0xa8] sm:$0xff] }
 0x177   :  { %v8258_v37 = vcombine.low %v149_v31, %v157_v32 }
 0x179   :  { %1942 = vmatpush1.bf16.msra.mxu0 %v8272_v34  ;;  %v8259_v34 = vcombine.high %v149_v31, %v157_v32  ;;  %v373_v32 = vld [vmem:[#allocation2 + $0x7a8] sm:$0xff] }
 0x17a   :  { %1943 = vmatprep.subr.bf16.mxu0 %v8289_v35  ;;  %v165_v35 = vld [vmem:[#allocation2 + $0x128] sm:$0xff] }
 0x17b   :  { %v8274_v41 = vcombine.low %v165_v35, %v173_v36 }
 0x17d   :  { %1944 = vmatpush1.bf16.msra.mxu0 %v8288_v38  ;;  %v8275_v38 = vcombine.high %v165_v35, %v173_v36  ;;  %v134_v36 = vld [vmem:[#allocation2 + $0x30] sm:$0xff] }
 0x17e   :  { %1945 = vmatprep.subr.bf16.mxu0 %v8305_v39  ;;  %v181_v39 = vld [vmem:[#allocation2 + $0x1a8] sm:$0xff] }
 0x17f   :  { %v8290_v45 = vcombine.low %v181_v39, %v189_v40 }
 0x181   :  { %1946 = vmatpush1.bf16.msra.mxu0 %v8304_v42  ;;  %v8291_v42 = vcombine.high %v181_v39, %v189_v40  ;;  %v150_v40 = vld [vmem:[#allocation2 + $0xb0] sm:$0xff] }
 0x182   :  { %1947 = vmatprep.subr.bf16.mxu0 %v8321_v43  ;;  %v197_v43 = vld [vmem:[#allocation2 + $0x228] sm:$0xff] }
 0x183   :  { %v10542_v48 = vpop.f32.mrb[0].mxu0  ;;  %v8306_v50 = vcombine.low %v197_v43, %v205_v44 }
 0x184   :  { %v10544_v51 = vpop.f32.mrb[1].mxu0 }
 0x185   :  { %v1811_v52 = vpop.f32.mrb[2].mxu0  ;;  %1948 = vmatpush1.bf16.msra.mxu0 %v8320_v46  ;;  %v8307_v46 = vcombine.high %v197_v43, %v205_v44  ;;  %v166_v44 = vld [vmem:[#allocation2 + $0x130] sm:$0xff] }
 0x186   :  { %v1812_v54 = vpop.f32.mrb[3].mxu0  ;;  %1949 = vmatprep.subr.bf16.mxu0 %v8337_v47  ;;  %v213_v47 = vld [vmem:[#allocation2 + $0x2a8] sm:$0xff] }
 0x187   :  { %v8323_v52 = vcombine.high %v213_v47, %v221_v49  ;;  %v237_v54 = vld [vmem:[#allocation2 + $0x368] sm:$0xff] }
 0x189   :  { %1950 = vmatpush1.bf16.msra.mxu0 %v8336_v53  ;;  %v229_v53 = vld [vmem:[#allocation2 + $0x328] sm:$0xff] }
 0x18a   :  { %1951 = vmatprep.subr.bf16.mxu0 %v8353_v55  ;;  %v8322_v55 = vcombine.low %v213_v47, %v221_v49  ;;  %v8339_v56 = vcombine.high %v229_v53, %v237_v54  ;;  %v182_v49 = vld [vmem:[#allocation2 + $0x1b0] sm:$0xff] }
 0x18d   :  { %1952 = vmatpush1.bf16.msra.mxu0 %v8352_v58  ;;  %v245_v58 = vld [vmem:[#allocation2 + $0x3a8] sm:$0xff] }
 0x18e   :  { %1953 = vmatprep.subr.bf16.mxu0 %v8369_v59  ;;  %v253_v59 = vld [vmem:[#allocation2 + $0x3e8] sm:$0xff] }
 0x18f   :  { %v8355_v0 = vcombine.high %v245_v58, %v253_v59 }
 0x191   :  { %1954 = vmatpush1.bf16.msra.mxu0 %v8368_v62  ;;  %v8338_v62 = vcombine.low %v229_v53, %v237_v54  ;;  %v198_v54 = vld [vmem:[#allocation2 + $0x230] sm:$0xff] }
 0x192   :  { %1955 = vmatprep.subr.bf16.mxu0 %v8385_v63 }
 0x195   :  { %1956 = vmatpush1.bf16.msra.mxu0 %v8384_v2  ;;  %v269_v2 = vld [vmem:[#allocation2 + $0x468] sm:$0xff] }
 0x196   :  { %1957 = vmatprep.subr.bf16.mxu0 %v8401_v3  ;;  %v8354_v3 = vcombine.low %v245_v58, %v253_v59  ;;  %v8371_v4 = vcombine.high %v261_v1, %v269_v2  ;;  %v214_v59 = vld [vmem:[#allocation2 + $0x2b0] sm:$0xff] }
 0x199   :  { %1958 = vmatpush1.bf16.msra.mxu0 %v8400_v6  ;;  %v285_v6 = vld [vmem:[#allocation2 + $0x4e8] sm:$0xff] }
 0x19a   :  { %1959 = vmatprep.subr.bf16.mxu0 %v8417_v7  ;;  %v8370_v7 = vcombine.low %v261_v1, %v269_v2  ;;  %v8387_v8 = vcombine.high %v277_v5, %v285_v6 }
 0x19d   :  { %1960 = vmatpush1.bf16.msra.mxu0 %v8416_v10  ;;  %v301_v10 = vld [vmem:[#allocation2 + $0x568] sm:$0xff] }
 0x19e   :  { %1961 = vmatprep.subr.bf16.mxu0 %v8433_v11  ;;  %v8386_v11 = vcombine.low %v277_v5, %v285_v6  ;;  %v8403_v12 = vcombine.high %v293_v9, %v301_v10  ;;  %v254_v5 = vld [vmem:[#allocation2 + $0x3f0] sm:$0xff] }
 0x1a1   :  { %1962 = vmatpush1.bf16.msra.mxu0 %v8432_v16  ;;  %v317_v16 = vld [vmem:[#allocation2 + $0x5e8] sm:$0xff] }
 0x1a2   :  { %1963 = vmatprep.subr.bf16.mxu0 %v8449_v17  ;;  %v8402_v17 = vcombine.low %v293_v9, %v301_v10  ;;  %v8419_v18 = vcombine.high %v309_v13, %v317_v16 }
 0x1a5   :  { %1964 = vmatpush1.bf16.msra.mxu0 %v8448_v21  ;;  %v333_v21 = vld [vmem:[#allocation2 + $0x668] sm:$0xff] }
 0x1a6   :  { %1965 = vmatprep.subr.bf16.mxu0 %v8465_v22  ;;  %v8418_v22 = vcombine.low %v309_v13, %v317_v16  ;;  %v8435_v24 = vcombine.high %v325_v19, %v333_v21 }
 0x1a9   :  { %1966 = vmatpush1.bf16.msra.mxu0 %v8464_v26  ;;  %v349_v26 = vld [vmem:[#allocation2 + $0x6e8] sm:$0xff] }
 0x1aa   :  { %1967 = vmatprep.subr.bf16.mxu0 %v8481_v20  ;;  %v8434_v20 = vcombine.low %v325_v19, %v333_v21  ;;  %v8451_v23 = vcombine.high %v341_v25, %v349_v26 }
 0x1ad   :  { %1968 = vmatpush1.bf16.msra.mxu0 %v8480_v29  ;;  %v365_v29 = vld [vmem:[#allocation2 + $0x768] sm:$0xff] }
 0x1ae   :  { %1978 = vmatprep.subr.bf16.mxu0 %v8243_v30  ;;  %v8450_v30 = vcombine.low %v341_v25, %v349_v26  ;;  %v8467_v31 = vcombine.high %v357_v28, %v365_v29 }
 0x1b0   :  { %1970 = vmatmul.mubr.bf16.vlgmr.msra.gmra.mrb[16].mxu0 %v10532_v15 }
 0x1b1   :  { %1979 = vmatpush1.bf16.msra.mxu0 %v8242_v33  ;;  %2010 = vmatprep.mubr.bf16.mxu0 %v10526_v27  ;;  %v381_v33 = vld [vmem:[#allocation2 + $0x7e8] sm:$0xff] }
 0x1b2   :  { %1980 = vmatprep.subr.bf16.mxu0 %v8259_v34  ;;  %v8466_v34 = vcombine.low %v357_v28, %v365_v29  ;;  %v8483_v35 = vcombine.high %v373_v32, %v381_v33 }
 0x1b5   :  { %1981 = vmatpush1.bf16.msra.mxu0 %v8258_v37  ;;  %v142_v37 = vld [vmem:[#allocation2 + $0x70] sm:$0xff] }
 0x1b6   :  { %1982 = vmatprep.subr.bf16.mxu0 %v8275_v38  ;;  %v8482_v38 = vcombine.low %v373_v32, %v381_v33  ;;  %v8245_v39 = vcombine.high %v134_v36, %v142_v37 }
 0x1b9   :  { %1983 = vmatpush1.bf16.msra.mxu0 %v8274_v41  ;;  %v158_v41 = vld [vmem:[#allocation2 + $0xf0] sm:$0xff] }
 0x1ba   :  { %1984 = vmatprep.subr.bf16.mxu0 %v8291_v42  ;;  %v8244_v42 = vcombine.low %v134_v36, %v142_v37  ;;  %v8261_v43 = vcombine.high %v150_v40, %v158_v41 }
 0x1bd   :  { %1985 = vmatpush1.bf16.msra.mxu0 %v8290_v45  ;;  %v174_v45 = vld [vmem:[#allocation2 + $0x170] sm:$0xff] }
 0x1be   :  { %1986 = vmatprep.subr.bf16.mxu0 %v8307_v46  ;;  %v8260_v46 = vcombine.low %v150_v40, %v158_v41  ;;  %v8277_v47 = vcombine.high %v166_v44, %v174_v45  ;;  %v366_v40 = vld [vmem:[#allocation2 + $0x770] sm:$0xff]  ;;  %v10564_v41 = vld [vmem:[%s10811_s7] sm:$0xff] }
 0x1c1   :  { %1987 = vmatpush1.bf16.msra.mxu0 %v8306_v50  ;;  %v190_v50 = vld [vmem:[#allocation2 + $0x1f0] sm:$0xff] }
 0x1c2   :  { %1988 = vmatprep.subr.bf16.mxu0 %v8323_v52  ;;  %v8276_v52 = vcombine.low %v166_v44, %v174_v45  ;;  %v8293_v53 = vcombine.high %v182_v49, %v190_v50  ;;  %v374_v45 = vld [vmem:[#allocation2 + $0x7b0] sm:$0xff] }
 0x1c3   :  { %v10548_v57 = vpop.f32.mrb[4].mxu0 }
 0x1c4   :  { %v10550_v60 = vpop.f32.mrb[5].mxu0 }
 0x1c5   :  { %v1852_v61 = vpop.f32.mrb[6].mxu0  ;;  %1989 = vmatpush1.bf16.msra.mxu0 %v8322_v55  ;;  %v206_v55 = vld [vmem:[#allocation2 + $0x270] sm:$0xff] }
 0x1c6   :  { %v1853_v63 = vpop.f32.mrb[7].mxu0  ;;  %1990 = vmatprep.subr.bf16.mxu0 %v8339_v56  ;;  %v8292_v56 = vcombine.low %v182_v49, %v190_v50  ;;  %v8309_v58 = vcombine.high %v198_v54, %v206_v55  ;;  %v222_v61 = vld [vmem:[#allocation2 + $0x2f0] sm:$0xff] }
 0x1c7   :  { %v230_v63 = vld [vmem:[#allocation2 + $0x330] sm:$0xff]  ;;  %v8324_v1 = vcombine.low %v214_v59, %v222_v61 }
 0x1c9   :  { %1991 = vmatpush1.bf16.msra.mxu0 %v8338_v62  ;;  %v8308_v62 = vcombine.low %v198_v54, %v206_v55  ;;  %v9385_v55 = vld [vmem:[#allocation4] ss:$8 sps:$4 sm:$0xff]  }
 0x1ca   :  { %1992 = vmatprep.subr.bf16.mxu0 %v8355_v0  ;;  %v238_v0 = vld [vmem:[#allocation2 + $0x370] sm:$0xff] }
 0x1cb   :  { %v8341_v2 = vcombine.high %v230_v63, %v238_v0 }
 0x1cd   :  { %1993 = vmatpush1.bf16.msra.mxu0 %v8354_v3 }
 0x1ce   :  { %1994 = vmatprep.subr.bf16.mxu0 %v8371_v4  ;;  %v246_v4 = vld [vmem:[#allocation2 + $0x3b0] sm:$0xff] }
 0x1cf   :  { %v8357_v10 = vcombine.high %v246_v4, %v254_v5  ;;  %v8356_v13 = vcombine.low %v246_v4, %v254_v5  ;;  %v9405_v4 = vld [vmem:[#allocation4 + $0x64] ss:$8 sps:$4 sm:$0xff]  }
 0x1d1   :  { %1995 = vmatpush1.bf16.msra.mxu0 %v8370_v7 }
 0x1d2   :  { %1996 = vmatprep.subr.bf16.mxu0 %v8387_v8  ;;  %v8340_v8 = vcombine.low %v230_v63, %v238_v0  ;;  %v9399_v63 = vld [vmem:[#allocation4 + $0x44] ss:$8 sps:$4 sm:$0xff]   ;;  %v9397_v0 = vld [vmem:[#allocation4 + $0x40] ss:$8 sps:$4 sm:$0xff]  }
 0x1d5   :  { %1997 = vmatpush1.bf16.msra.mxu0 %v8386_v11  ;;  %v262_v11 = vld [vmem:[#allocation2 + $0x430] sm:$0xff] }
 0x1d6   :  { %1998 = vmatprep.subr.bf16.mxu0 %v8403_v12  ;;  %v270_v12 = vld [vmem:[#allocation2 + $0x470] sm:$0xff] }
 0x1d7   :  { %v8373_v16 = vcombine.high %v262_v11, %v270_v12  ;;  %v8372_v19 = vcombine.low %v262_v11, %v270_v12  ;;  %v9408_v11 = vld [vmem:[#allocation4 + $0x74] ss:$8 sps:$4 sm:$0xff]   ;;  %v9406_v12 = vld [vmem:[#allocation4 + $0x70] ss:$8 sps:$4 sm:$0xff]  }
 0x1d9   :  { %1999 = vmatpush1.bf16.msra.mxu0 %v8402_v17  ;;  %v278_v17 = vld [vmem:[#allocation2 + $0x4b0] sm:$0xff] }
 0x1da   :  { %2000 = vmatprep.subr.bf16.mxu0 %v8419_v18  ;;  %v286_v18 = vld [vmem:[#allocation2 + $0x4f0] sm:$0xff] }
 0x1db   :  { %v8389_v21 = vcombine.high %v278_v17, %v286_v18  ;;  %v8388_v25 = vcombine.low %v278_v17, %v286_v18  ;;  %v9414_v17 = vld [vmem:[#allocation4 + $0x94] ss:$8 sps:$4 sm:$0xff]   ;;  %v9412_v18 = vld [vmem:[#allocation4 + $0x90] ss:$8 sps:$4 sm:$0xff]  }
 0x1dd   :  { %2001 = vmatpush1.bf16.msra.mxu0 %v8418_v22  ;;  %v294_v22 = vld [vmem:[#allocation2 + $0x530] sm:$0xff] }
 0x1de   :  { %2002 = vmatprep.subr.bf16.mxu0 %v8435_v24  ;;  %v302_v24 = vld [vmem:[#allocation2 + $0x570] sm:$0xff] }
 0x1df   :  { %v8405_v26 = vcombine.high %v294_v22, %v302_v24  ;;  %v8404_v28 = vcombine.low %v294_v22, %v302_v24  ;;  %v9420_v22 = vld [vmem:[#allocation4 + $0xb4] ss:$8 sps:$4 sm:$0xff]   ;;  %v9418_v24 = vld [vmem:[#allocation4 + $0xb0] ss:$8 sps:$4 sm:$0xff]  }
 0x1e1   :  { %2003 = vmatpush1.bf16.msra.mxu0 %v8434_v20  ;;  %v310_v20 = vld [vmem:[#allocation2 + $0x5b0] sm:$0xff] }
 0x1e2   :  { %2004 = vmatprep.subr.bf16.mxu0 %v8451_v23  ;;  %v318_v23 = vld [vmem:[#allocation2 + $0x5f0] sm:$0xff] }
 0x1e3   :  { %v8421_v29 = vcombine.high %v310_v20, %v318_v23  ;;  %v8420_v32 = vcombine.low %v310_v20, %v318_v23  ;;  %v10575_v20 = vsub.s32 0, %v10513_v14  ;;  %v9426_v23 = vld [vmem:[#allocation4 + $0xd4] ss:$8 sps:$4 sm:$0xff]  }
 0x1e5   :  { %2005 = vmatpush1.bf16.msra.mxu0 %v8450_v30  ;;  %v326_v30 = vld [vmem:[#allocation2 + $0x630] sm:$0xff] }
 0x1e6   :  { %2006 = vmatprep.subr.bf16.mxu0 %v8467_v31  ;;  %v334_v31 = vld [vmem:[#allocation2 + $0x670] sm:$0xff] }
 0x1e7   :  { %v8437_v33 = vcombine.high %v326_v30, %v334_v31  ;;  %v8436_v36 = vcombine.low %v326_v30, %v334_v31  ;;  %v391_v30 = vrot.slane %v10564_v41, %v10575_v20  ;;  %v9429_v31 = vld [vmem:[#allocation4 + $0xe4] ss:$8 sps:$4 sm:$0xff]  }
 0x1e9   :  { %2007 = vmatpush1.bf16.msra.mxu0 %v8466_v34  ;;  %v342_v34 = vld [vmem:[#allocation2 + $0x6b0] sm:$0xff] }
 0x1ea   :  { %2008 = vmatprep.subr.bf16.mxu0 %v8483_v35  ;;  %v350_v35 = vld [vmem:[#allocation2 + $0x6f0] sm:$0xff] }
 0x1eb   :  { %v8453_v37 = vcombine.high %v342_v34, %v350_v35 }
 0x1ed   :  { %2009 = vmatpush1.bf16.msra.mxu0 %v8482_v38  ;;  %v10559_v38 = vsub.s32 1, %v10513_v14 }
 0x1ee   :  { %2019 = vmatprep.subr.bf16.mxu0 %v8245_v39  ;;  %v358_v39 = vld [vmem:[#allocation2 + $0x730] sm:$0xff] }
 0x1ef   :  { %v395_v44 = vrot.slane %v10564_v41, %v10559_v38 }
 0x1f0   :  { %2011 = vmatmul.mubr.bf16.vlgmr.msra.gmra.mrb[20].mxu0 %v10532_v15 }
 0x1f1   :  { %2020 = vmatpush1.bf16.msra.mxu0 %v8244_v42  ;;  %2051 = vmatprep.mubr.bf16.mxu0 %v10526_v27  ;;  %v8325_v27 = vcombine.high %v214_v59, %v222_v61  ;;  %v8452_v42 = vcombine.low %v342_v34, %v350_v35  ;;  %v1810_v50 = vadd.f32 %v10544_v51, %v395_v44  ;;  %v9388_v59 = vld [vmem:[#allocation4 + $0x10] ss:$8 sps:$4 sm:$0xff]   ;;  %v9393_v61 = vld [vmem:[#allocation4 + $0x24] ss:$8 sps:$4 sm:$0xff]   ;;  %v9396_v51 = vld [vmem:[#allocation4 + $0x34] ss:$8 sps:$4 sm:$0xff]  }
 0x1f2   :  { %2021 = vmatprep.subr.bf16.mxu0 %v8261_v43  ;;  %v8469_v43 = vcombine.high %v358_v39, %v366_v40  ;;  %v1808_v34 = vadd.f32 %v10542_v48, %v391_v30  ;;  %v9432_v35 = vld [vmem:[#allocation4 + $0xf4] ss:$8 sps:$4 sm:$0xff]   ;;  %v9436_v48 = vld [vmem:[#allocation4 + $0x110] ss:$8 sps:$4 sm:$0xff]  }
 0x1f3   :  { %v2102_v54 = vmax.f32 %v1810_v50, 0.0  ;;  %v9442_v50 = vld [vmem:[#allocation4 + $0x130] ss:$8 sps:$4 sm:$0xff]  }
 0x1f4   :  { %v183_v30 = vld [vmem:[#allocation2 + $0x1b8] sm:$0xff] }
 0x1f5   :  { %2022 = vmatpush1.bf16.msra.mxu0 %v8260_v46  ;;  %v382_v46 = vld [vmem:[#allocation2 + $0x7f0] sm:$0xff] }
 0x1f6   :  { %2023 = vmatprep.subr.bf16.mxu0 %v8277_v47  ;;  %v8468_v47 = vcombine.low %v358_v39, %v366_v40  ;;  %v8485_v49 = vcombine.high %v374_v45, %v382_v46  ;;  %v2101_v39 = vmax.f32 %v1808_v34, 0.0  ;;  %v9435_v40 = vld [vmem:[#allocation4 + $0x104] ss:$8 sps:$4 sm:$0xff]   ;;  %v9469_v34 = vld [vmem:[#allocation4 + $0x1c0] ss:$8 sps:$4 sm:$0xff]  }
 0x1f8   :  { %v2117_v44 = vpack.c.bf16 %v2101_v39, %v2101_v39  ;;  %v207_v39 = vld [vmem:[#allocation2 + $0x278] sm:$0xff] }
 0x1f9   :  { %2024 = vmatpush1.bf16.msra.mxu0 %v8276_v52  ;;  %v8484_v52 = vcombine.low %v374_v45, %v382_v46  ;;  %v9438_v45 = vld [vmem:[#allocation4 + $0x114] ss:$8 sps:$4 sm:$0xff]  }
 0x1fa   :  { %2025 = vmatprep.subr.bf16.mxu0 %v8293_v53  ;;  %v9387_v53 = vld [vmem:[#allocation4 + $0x4] ss:$8 sps:$4 sm:$0xff]  }
 0x1fd   :  { %2026 = vmatpush1.bf16.msra.mxu0 %v8292_v56  ;;  %v9390_v56 = vld [vmem:[#allocation4 + $0x14] ss:$8 sps:$4 sm:$0xff]  }
 0x1fe   :  { %2027 = vmatprep.subr.bf16.mxu0 %v8309_v58  ;;  %v2118_v58 = vpack.c.bf16 %v2102_v54, %v2102_v54  ;;  %v9450_v54 = vld [vmem:[#allocation4 + $0x154] ss:$8 sps:$4 sm:$0xff]  }
 0x201   :  { %2028 = vmatpush1.bf16.msra.mxu0 %v8308_v62  ;;  %v9391_v62 = vld [vmem:[#allocation4 + $0x20] ss:$8 sps:$4 sm:$0xff]  }
 0x202   :  { %2029 = vmatprep.subr.bf16.mxu0 %v8325_v27  ;;  %v9394_v27 = vld [vmem:[#allocation4 + $0x30] ss:$8 sps:$4 sm:$0xff]  }
 0x203   :  { %v10554_v3 = vpop.f32.mrb[8].mxu0 }
 0x204   :  { %v10556_v6 = vpop.f32.mrb[9].mxu0 }
 0x205   :  { %v1893_v7 = vpop.f32.mrb[10].mxu0  ;;  %2030 = vmatpush1.bf16.msra.mxu0 %v8324_v1  ;;  %v9402_v1 = vld [vmem:[#allocation4 + $0x54] ss:$8 sps:$4 sm:$0xff]  }
 0x206   :  { %v1894_v9 = vpop.f32.mrb[11].mxu0  ;;  %2031 = vmatprep.subr.bf16.mxu0 %v8341_v2  ;;  %v9400_v2 = vld [vmem:[#allocation4 + $0x50] ss:$8 sps:$4 sm:$0xff]  }
 0x207   :  { %v9403_v9 = vld [vmem:[#allocation4 + $0x60] ss:$8 sps:$4 sm:$0xff]  }
 0x209   :  { %2032 = vmatpush1.bf16.msra.mxu0 %v8340_v8 }
 0x20a   :  { %2033 = vmatprep.subr.bf16.mxu0 %v8357_v10 }
 0x20d   :  { %2034 = vmatpush1.bf16.msra.mxu0 %v8356_v13  ;;  %v9411_v13 = vld [vmem:[#allocation4 + $0x84] ss:$8 sps:$4 sm:$0xff]  }
 0x20e   :  { %2035 = vmatprep.subr.bf16.mxu0 %v8373_v16  ;;  %v9409_v16 = vld [vmem:[#allocation4 + $0x80] ss:$8 sps:$4 sm:$0xff]  }
 0x211   :  { %2036 = vmatpush1.bf16.msra.mxu0 %v8372_v19  ;;  %v9417_v19 = vld [vmem:[#allocation4 + $0xa4] ss:$8 sps:$4 sm:$0xff]  }
 0x212   :  { %2037 = vmatprep.subr.bf16.mxu0 %v8389_v21  ;;  %v9415_v21 = vld [vmem:[#allocation4 + $0xa0] ss:$8 sps:$4 sm:$0xff]  }
 0x215   :  { %2038 = vmatpush1.bf16.msra.mxu0 %v8388_v25  ;;  %v9423_v25 = vld [vmem:[#allocation4 + $0xc4] ss:$8 sps:$4 sm:$0xff]  }
 0x216   :  { %2039 = vmatprep.subr.bf16.mxu0 %v8405_v26  ;;  %v9421_v26 = vld [vmem:[#allocation4 + $0xc0] ss:$8 sps:$4 sm:$0xff]  }
 0x219   :  { %2040 = vmatpush1.bf16.msra.mxu0 %v8404_v28  ;;  %v10578_v28 = vsub.s32 3, %v10513_v14 }
 0x21a   :  { %2041 = vmatprep.subr.bf16.mxu0 %v8421_v29  ;;  %v9424_v29 = vld [vmem:[#allocation4 + $0xd0] ss:$8 sps:$4 sm:$0xff]  }
 0x21d   :  { %2042 = vmatpush1.bf16.msra.mxu0 %v8420_v32  ;;  %v403_v32 = vrot.slane %v10564_v41, %v10578_v28 }
 0x21e   :  { %2043 = vmatprep.subr.bf16.mxu0 %v8437_v33  ;;  %v9427_v33 = vld [vmem:[#allocation4 + $0xe0] ss:$8 sps:$4 sm:$0xff]  }
 0x221   :  { %2044 = vmatpush1.bf16.msra.mxu0 %v8436_v36  ;;  %v1851_v36 = vadd.f32 %v10550_v60, %v403_v32  ;;  %v9439_v60 = vld [vmem:[#allocation4 + $0x120] ss:$8 sps:$4 sm:$0xff]  }
 0x222   :  { %2045 = vmatprep.subr.bf16.mxu0 %v8453_v37  ;;  %v9430_v37 = vld [vmem:[#allocation4 + $0xf0] ss:$8 sps:$4 sm:$0xff]  }
 0x225   :  { %2046 = vmatpush1.bf16.msra.mxu0 %v8452_v42  ;;  %v2104_v42 = vmax.f32 %v1851_v36, 0.0  ;;  %v9474_v36 = vld [vmem:[#allocation4 + $0x1d4] ss:$8 sps:$4 sm:$0xff]  }
 0x226   :  { %2047 = vmatprep.subr.bf16.mxu0 %v8469_v43  ;;  %v9433_v43 = vld [vmem:[#allocation4 + $0x100] ss:$8 sps:$4 sm:$0xff]  }
 0x227   :  { %v2120_v46 = vpack.c.bf16 %v2104_v42, %v2104_v42 }
 0x229   :  { %2048 = vmatpush1.bf16.msra.mxu0 %v8468_v47  ;;  %v9441_v47 = vld [vmem:[#allocation4 + $0x124] ss:$8 sps:$4 sm:$0xff]  }
 0x22a   :  { %2049 = vmatprep.subr.bf16.mxu0 %v8485_v49  ;;  %v9444_v49 = vld [vmem:[#allocation4 + $0x134] ss:$8 sps:$4 sm:$0xff]  }
 0x22d   :  { %2050 = vmatpush1.bf16.msra.mxu0 %v8484_v52  ;;  %v9447_v52 = vld [vmem:[#allocation4 + $0x144] ss:$8 sps:$4 sm:$0xff]  }
 0x22e   :  { %3681 = vmatprep.subr.bf16.mxu0 %v9387_v53  ;;  %v9445_v53 = vld [vmem:[#allocation4 + $0x140] ss:$8 sps:$4 sm:$0xff]  }
 0x230   :  { %2052 = vmatmul.mubr.bf16.vlgmr.msra.gmra.mrb[24].mxu0 %v10532_v15 }
 0x231   :  { %3682 = vmatpush1.bf16.msra.mxu0 %v9385_v55  ;;  %3713 = vmatprep.mubr.bf16.mxu0 %v2118_v58  ;;  %v9448_v55 = vld [vmem:[#allocation4 + $0x150] ss:$8 sps:$4 sm:$0xff]  }
 0x232   :  { %3683 = vmatprep.subr.bf16.mxu0 %v9390_v56  ;;  %v9453_v56 = vld [vmem:[#allocation4 + $0x164] ss:$8 sps:$4 sm:$0xff]  }
 0x235   :  { %3684 = vmatpush1.bf16.msra.mxu0 %v9388_v59 }
 0x236   :  { %3685 = vmatprep.subr.bf16.mxu0 %v9393_v61 }
 0x239   :  { %3686 = vmatpush1.bf16.msra.mxu0 %v9391_v62  ;;  %v9451_v62 = vld [vmem:[#allocation4 + $0x160] ss:$8 sps:$4 sm:$0xff]  }
 0x23a   :  { %3687 = vmatprep.subr.bf16.mxu0 %v9396_v51 }
 0x23d   :  { %3688 = vmatpush1.bf16.msra.mxu0 %v9394_v27  ;;  %v9456_v27 = vld [vmem:[#allocation4 + $0x174] ss:$8 sps:$4 sm:$0xff]  }
 0x23e   :  { %3689 = vmatprep.subr.bf16.mxu0 %v9399_v63  ;;  %v9454_v63 = vld [vmem:[#allocation4 + $0x170] ss:$8 sps:$4 sm:$0xff]  }
 0x241   :  { %3690 = vmatpush1.bf16.msra.mxu0 %v9397_v0  ;;  %v9459_v0 = vld [vmem:[#allocation4 + $0x184] ss:$8 sps:$4 sm:$0xff]  }
 0x242   :  { %3691 = vmatprep.subr.bf16.mxu0 %v9402_v1  ;;  %v9457_v1 = vld [vmem:[#allocation4 + $0x180] ss:$8 sps:$4 sm:$0xff]  }
 0x243   :  { %v10570_v5 = vpop.f32.mrb[12].mxu0 }
 0x244   :  { %v10572_v7 = vpop.f32.mrb[13].mxu0 }
 0x245   :  { %v1934_v8 = vpop.f32.mrb[14].mxu0  ;;  %3692 = vmatpush1.bf16.msra.mxu0 %v9400_v2  ;;  %v9462_v2 = vld [vmem:[#allocation4 + $0x194] ss:$8 sps:$4 sm:$0xff]  }
 0x246   :  { %v1935_v10 = vpop.f32.mrb[15].mxu0  ;;  %3693 = vmatprep.subr.bf16.mxu0 %v9405_v4  ;;  %v135_v4 = vld [vmem:[#allocation2 + $0x38] sm:$0xff] }
 0x247   :  { %v143_v8 = vld [vmem:[#allocation2 + $0x78] sm:$0xff] }
 0x248   :  { %v8246_v10 = vcombine.low %v135_v4, %v143_v8 }
 0x249   :  { %3694 = vmatpush1.bf16.msra.mxu0 %v9403_v9  ;;  %v8247_v9 = vcombine.high %v135_v4, %v143_v8 }
 0x24a   :  { %3695 = vmatprep.subr.bf16.mxu0 %v9408_v11  ;;  %v9460_v11 = vld [vmem:[#allocation4 + $0x190] ss:$8 sps:$4 sm:$0xff]  }
 0x24b   :  { %2060 = vmatprep.subr.bf16.mxu1 %v8247_v9  ;;  %v9481_v9 = vld [vmem:[#allocation4 + $0x200] ss:$8 sps:$4 sm:$0xff]  }
 0x24c   :  { %2061 = vmatpush1.bf16.msra.mxu1 %v8246_v10 }
 0x24d   :  { %3696 = vmatpush1.bf16.msra.mxu0 %v9406_v12  ;;  %v9465_v12 = vld [vmem:[#allocation4 + $0x1a4] ss:$8 sps:$4 sm:$0xff]  }
 0x24e   :  { %3697 = vmatprep.subr.bf16.mxu0 %v9411_v13  ;;  %v151_v13 = vld [vmem:[#allocation2 + $0xb8] sm:$0xff] }
 0x251   :  { %3698 = vmatpush1.bf16.msra.mxu0 %v9409_v16  ;;  %v159_v16 = vld [vmem:[#allocation2 + $0xf8] sm:$0xff] }
 0x252   :  { %3699 = vmatprep.subr.bf16.mxu0 %v9414_v17  ;;  %v8263_v17 = vcombine.high %v151_v13, %v159_v16 }
 0x254   :  { %2062 = vmatprep.subr.bf16.mxu1 %v8263_v17 }
 0x255   :  { %3700 = vmatpush1.bf16.msra.mxu0 %v9412_v18  ;;  %v8262_v18 = vcombine.low %v151_v13, %v159_v16 }
 0x256   :  { %3701 = vmatprep.subr.bf16.mxu0 %v9417_v19  ;;  %v9463_v19 = vld [vmem:[#allocation4 + $0x1a0] ss:$8 sps:$4 sm:$0xff]  }
 0x257   :  { %2063 = vmatpush1.bf16.msra.mxu1 %v8262_v18  ;;  %v9484_v18 = vld [vmem:[#allocation4 + $0x210] ss:$8 sps:$4 sm:$0xff]  }
 0x259   :  { %3702 = vmatpush1.bf16.msra.mxu0 %v9415_v21  ;;  %v9468_v21 = vld [vmem:[#allocation4 + $0x1b4] ss:$8 sps:$4 sm:$0xff]  }
 0x25a   :  { %3703 = vmatprep.subr.bf16.mxu0 %v9420_v22  ;;  %v167_v22 = vld [vmem:[#allocation2 + $0x138] sm:$0xff] }
 0x25d   :  { %3704 = vmatpush1.bf16.msra.mxu0 %v9418_v24  ;;  %v175_v24 = vld [vmem:[#allocation2 + $0x178] sm:$0xff] }
 0x25e   :  { %3705 = vmatprep.subr.bf16.mxu0 %v9423_v25  ;;  %v8279_v25 = vcombine.high %v167_v22, %v175_v24 }
 0x260   :  { %2064 = vmatprep.subr.bf16.mxu1 %v8279_v25 }
 0x261   :  { %3706 = vmatpush1.bf16.msra.mxu0 %v9421_v26  ;;  %v8278_v26 = vcombine.low %v167_v22, %v175_v24  ;;  %v287_v22 = vld [vmem:[#allocation2 + $0x4f8] sm:$0xff] }
 0x262   :  { %3707 = vmatprep.subr.bf16.mxu0 %v9426_v23  ;;  %v9466_v23 = vld [vmem:[#allocation4 + $0x1b0] ss:$8 sps:$4 sm:$0xff]  }
 0x263   :  { %2065 = vmatpush1.bf16.msra.mxu1 %v8278_v26  ;;  %v9487_v26 = vld [vmem:[#allocation4 + $0x220] ss:$8 sps:$4 sm:$0xff]  }
 0x265   :  { %3708 = vmatpush1.bf16.msra.mxu0 %v9424_v29  ;;  %v9471_v29 = vld [vmem:[#allocation4 + $0x1c4] ss:$8 sps:$4 sm:$0xff]  }
 0x266   :  { %3709 = vmatprep.subr.bf16.mxu0 %v9429_v31  ;;  %v191_v31 = vld [vmem:[#allocation2 + $0x1f8] sm:$0xff] }
 0x267   :  { %v8295_v32 = vcombine.high %v183_v30, %v191_v31 }
 0x269   :  { %3710 = vmatpush1.bf16.msra.mxu0 %v9427_v33  ;;  %v8294_v33 = vcombine.low %v183_v30, %v191_v31  ;;  %2066 = vmatprep.subr.bf16.mxu1 %v8295_v32  ;;  %v303_v30 = vld [vmem:[#allocation2 + $0x578] sm:$0xff] }
 0x26a   :  { %3711 = vmatprep.subr.bf16.mxu0 %v9432_v35  ;;  %v10591_v35 = vsub.s32 2, %v10513_v14 }
 0x26b   :  { %2067 = vmatpush1.bf16.msra.mxu1 %v8294_v33  ;;  %v9490_v33 = vld [vmem:[#allocation4 + $0x230] ss:$8 sps:$4 sm:$0xff]  }
 0x26d   :  { %3712 = vmatpush1.bf16.msra.mxu0 %v9430_v37  ;;  %v199_v37 = vld [vmem:[#allocation2 + $0x238] sm:$0xff] }
 0x26e   :  { %3722 = vmatprep.subr.bf16.mxu0 %v9435_v40  ;;  %v10594_v40 = vsub.s32 5, %v10513_v14  ;;  %v8311_v42 = vcombine.high %v199_v37, %v207_v39 }
 0x270   :  { %3714 = vmatmul.mubr.bf16.vlgmr.msra.gmra.mrb[28].mxu0 %v2117_v44  ;;  %v9472_v44 = vld [vmem:[#allocation4 + $0x1d0] ss:$8 sps:$4 sm:$0xff]   ;;  %2068 = vmatprep.subr.bf16.mxu1 %v8311_v42 }
 0x271   :  { %3723 = vmatpush1.bf16.msra.mxu0 %v9433_v43  ;;  %3754 = vmatprep.mubr.bf16.mxu0 %v2120_v46  ;;  %v8310_v43 = vcombine.low %v199_v37, %v207_v39  ;;  %v9477_v46 = vld [vmem:[#allocation4 + $0x1e4] ss:$8 sps:$4 sm:$0xff]   ;;  %v319_v37 = vld [vmem:[#allocation2 + $0x5f8] sm:$0xff] }
 0x272   :  { %3724 = vmatprep.subr.bf16.mxu0 %v9438_v45  ;;  %v399_v45 = vrot.slane %v10564_v41, %v10591_v35 }
 0x273   :  { %2069 = vmatpush1.bf16.msra.mxu1 %v8310_v43  ;;  %v9493_v43 = vld [vmem:[#allocation4 + $0x240] ss:$8 sps:$4 sm:$0xff]  }
 0x275   :  { %3725 = vmatpush1.bf16.msra.mxu0 %v9436_v48  ;;  %v215_v48 = vld [vmem:[#allocation2 + $0x2b8] sm:$0xff] }
 0x276   :  { %3726 = vmatprep.subr.bf16.mxu0 %v9441_v47  ;;  %v223_v47 = vld [vmem:[#allocation2 + $0x2f8] sm:$0xff] }
 0x279   :  { %3727 = vmatpush1.bf16.msra.mxu0 %v9439_v60  ;;  %v411_v60 = vrot.slane %v10564_v41, %v10594_v40 }
 0x27a   :  { %3728 = vmatprep.subr.bf16.mxu0 %v9444_v49  ;;  %v8327_v49 = vcombine.high %v215_v48, %v223_v47 }
 0x27c   :  { %2070 = vmatprep.subr.bf16.mxu1 %v8327_v49  ;;  %v9501_v49 = vld [vmem:[#allocation4 + $0x264] ss:$8 sps:$4 sm:$0xff]  }
 0x27d   :  { %3729 = vmatpush1.bf16.msra.mxu0 %v9442_v50  ;;  %v8326_v50 = vcombine.low %v215_v48, %v223_v47 }
 0x27e   :  { %3730 = vmatprep.subr.bf16.mxu0 %v9447_v52  ;;  %v9475_v52 = vld [vmem:[#allocation4 + $0x1e0] ss:$8 sps:$4 sm:$0xff]  }
 0x27f   :  { %2071 = vmatpush1.bf16.msra.mxu1 %v8326_v50  ;;  %v343_v50 = vld [vmem:[#allocation2 + $0x6b8] sm:$0xff] }
 0x281   :  { %3731 = vmatpush1.bf16.msra.mxu0 %v9445_v53  ;;  %v1849_v53 = vadd.f32 %v10548_v57, %v399_v45  ;;  %v327_v45 = vld [vmem:[#allocation2 + $0x638] sm:$0xff] }
 0x282   :  { %3732 = vmatprep.subr.bf16.mxu0 %v9450_v54  ;;  %v9480_v54 = vld [vmem:[#allocation4 + $0x1f4] ss:$8 sps:$4 sm:$0xff]  }
 0x283   :  { %v10586_v58 = vpop.f32.mrb[16].mxu0 }
 0x284   :  { %v10588_v59 = vpop.f32.mrb[17].mxu0 }
 0x285   :  { %v1975_v61 = vpop.f32.mrb[18].mxu0  ;;  %3733 = vmatpush1.bf16.msra.mxu0 %v9448_v55  ;;  %v231_v55 = vld [vmem:[#allocation2 + $0x338] sm:$0xff] }
 0x286   :  { %v1976_v51 = vpop.f32.mrb[19].mxu0  ;;  %3734 = vmatprep.subr.bf16.mxu0 %v9453_v56  ;;  %v239_v56 = vld [vmem:[#allocation2 + $0x378] sm:$0xff]  ;;  %v1892_v61 = vadd.f32 %v10556_v6, %v411_v60 }
 0x287   :  { %v8342_v51 = vcombine.low %v231_v55, %v239_v56  ;;  %v9486_v6 = vld [vmem:[#allocation4 + $0x214] ss:$8 sps:$4 sm:$0xff]   ;;  %v9496_v60 = vld [vmem:[#allocation4 + $0x250] ss:$8 sps:$4 sm:$0xff]  }
 0x288   :  { %v2106_v4 = vmax.f32 %v1892_v61, 0.0 }
 0x289   :  { %3735 = vmatpush1.bf16.msra.mxu0 %v9451_v62  ;;  %v8343_v62 = vcombine.high %v231_v55, %v239_v56 }
 0x28a   :  { %3736 = vmatprep.subr.bf16.mxu0 %v9456_v27  ;;  %v9478_v27 = vld [vmem:[#allocation4 + $0x1f0] ss:$8 sps:$4 sm:$0xff]   ;;  %v2122_v13 = vpack.c.bf16 %v2106_v4, %v2106_v4 }
 0x28b   :  { %2072 = vmatprep.subr.bf16.mxu1 %v8343_v62  ;;  %v9499_v62 = vld [vmem:[#allocation4 + $0x260] ss:$8 sps:$4 sm:$0xff]   ;;  %v9502_v4 = vld [vmem:[#allocation4 + $0x270] ss:$8 sps:$4 sm:$0xff]  }
 0x28c   :  { %2073 = vmatpush1.bf16.msra.mxu1 %v8342_v51 }
 0x28d   :  { %3737 = vmatpush1.bf16.msra.mxu0 %v9454_v63  ;;  %v2103_v63 = vmax.f32 %v1849_v53, 0.0 }
 0x28e   :  { %3738 = vmatprep.subr.bf16.mxu0 %v9459_v0  ;;  %v9483_v0 = vld [vmem:[#allocation4 + $0x204] ss:$8 sps:$4 sm:$0xff]  }
 0x28f   :  { %v2119_v10 = vpack.c.bf16 %v2103_v63, %v2103_v63  ;;  %v359_v63 = vld [vmem:[#allocation2 + $0x738] sm:$0xff] }
 0x291   :  { %3739 = vmatpush1.bf16.msra.mxu0 %v9457_v1  ;;  %v247_v1 = vld [vmem:[#allocation2 + $0x3b8] sm:$0xff] }
 0x292   :  { %3740 = vmatprep.subr.bf16.mxu0 %v9462_v2  ;;  %v255_v2 = vld [vmem:[#allocation2 + $0x3f8] sm:$0xff] }
 0x293   :  { %v8359_v57 = vcombine.high %v247_v1, %v255_v2  ;;  %v8358_v8 = vcombine.low %v247_v1, %v255_v2 }
 0x295   :  { %3741 = vmatpush1.bf16.msra.mxu0 %v9460_v11  ;;  %2074 = vmatprep.subr.bf16.mxu1 %v8359_v57  ;;  %v263_v11 = vld [vmem:[#allocation2 + $0x438] sm:$0xff]  ;;  %v9507_v57 = vld [vmem:[#allocation4 + $0x284] ss:$8 sps:$4 sm:$0xff]  }
 0x296   :  { %3742 = vmatprep.subr.bf16.mxu0 %v9465_v12  ;;  %2075 = vmatpush1.bf16.msra.mxu1 %v8358_v8  ;;  %v271_v12 = vld [vmem:[#allocation2 + $0x478] sm:$0xff] }
 0x297   :  { %v8375_v16 = vcombine.high %v263_v11, %v271_v12  ;;  %v8374_v17 = vcombine.low %v263_v11, %v271_v12  ;;  %v375_v8 = vld [vmem:[#allocation2 + $0x7b8] sm:$0xff]  ;;  %v9505_v11 = vld [vmem:[#allocation4 + $0x280] ss:$8 sps:$4 sm:$0xff]  }
 0x298   :  { %v9510_v12 = vld [vmem:[#allocation4 + $0x294] ss:$8 sps:$4 sm:$0xff]  }
 0x299   :  { %3743 = vmatpush1.bf16.msra.mxu0 %v9463_v19  ;;  %v9489_v19 = vld [vmem:[#allocation4 + $0x224] ss:$8 sps:$4 sm:$0xff]   ;;  %2076 = vmatprep.subr.bf16.mxu1 %v8375_v16 }
 0x29a   :  { %3744 = vmatprep.subr.bf16.mxu0 %v9468_v21  ;;  %v279_v21 = vld [vmem:[#allocation2 + $0x4b8] sm:$0xff]  ;;  %2077 = vmatpush1.bf16.msra.mxu1 %v8374_v17  ;;  %v9513_v16 = vld [vmem:[#allocation4 + $0x2a4] ss:$8 sps:$4 sm:$0xff]   ;;  %v9511_v17 = vld [vmem:[#allocation4 + $0x2a0] ss:$8 sps:$4 sm:$0xff]  }
 0x29b   :  { %v8391_v24 = vcombine.high %v279_v21, %v287_v22  ;;  %v8390_v25 = vcombine.low %v279_v21, %v287_v22  ;;  %v9519_v21 = vld [vmem:[#allocation4 + $0x2c4] ss:$8 sps:$4 sm:$0xff]   ;;  %v9517_v22 = vld [vmem:[#allocation4 + $0x2c0] ss:$8 sps:$4 sm:$0xff]  }
 0x29d   :  { %3745 = vmatpush1.bf16.msra.mxu0 %v9466_v23  ;;  %2078 = vmatprep.subr.bf16.mxu1 %v8391_v24  ;;  %v9492_v23 = vld [vmem:[#allocation4 + $0x234] ss:$8 sps:$4 sm:$0xff]   ;;  %v10608_v24 = vsub.s32 4, %v10513_v14 }
 0x29e   :  { %3746 = vmatprep.subr.bf16.mxu0 %v9471_v29  ;;  %v295_v29 = vld [vmem:[#allocation2 + $0x538] sm:$0xff]  ;;  %2079 = vmatpush1.bf16.msra.mxu1 %v8390_v25 }
 0x29f   :  { %v8407_v31 = vcombine.high %v295_v29, %v303_v30  ;;  %v8406_v32 = vcombine.low %v295_v29, %v303_v30  ;;  %v9522_v25 = vld [vmem:[#allocation4 + $0x2d4] ss:$8 sps:$4 sm:$0xff]   ;;  %v9525_v29 = vld [vmem:[#allocation4 + $0x2e4] ss:$8 sps:$4 sm:$0xff]  }
 0x2a1   :  { %3747 = vmatpush1.bf16.msra.mxu0 %v9469_v34  ;;  %2080 = vmatprep.subr.bf16.mxu1 %v8407_v31  ;;  %v9495_v34 = vld [vmem:[#allocation4 + $0x244] ss:$8 sps:$4 sm:$0xff]   ;;  %v9523_v31 = vld [vmem:[#allocation4 + $0x2e0] ss:$8 sps:$4 sm:$0xff]  }
 0x2a2   :  { %3748 = vmatprep.subr.bf16.mxu0 %v9474_v36  ;;  %v311_v36 = vld [vmem:[#allocation2 + $0x5b8] sm:$0xff]  ;;  %2081 = vmatpush1.bf16.msra.mxu1 %v8406_v32 }
 0x2a3   :  { %v8423_v39 = vcombine.high %v311_v36, %v319_v37  ;;  %v8422_v42 = vcombine.low %v311_v36, %v319_v37  ;;  %v9526_v36 = vld [vmem:[#allocation4 + $0x2f0] ss:$8 sps:$4 sm:$0xff]  }
 0x2a5   :  { %3749 = vmatpush1.bf16.msra.mxu0 %v9472_v44  ;;  %2082 = vmatprep.subr.bf16.mxu1 %v8423_v39  ;;  %v9498_v44 = vld [vmem:[#allocation4 + $0x254] ss:$8 sps:$4 sm:$0xff]   ;;  %v9531_v39 = vld [vmem:[#allocation4 + $0x304] ss:$8 sps:$4 sm:$0xff]  }
 0x2a6   :  { %3750 = vmatprep.subr.bf16.mxu0 %v9477_v46  ;;  %v335_v46 = vld [vmem:[#allocation2 + $0x678] sm:$0xff]  ;;  %2083 = vmatpush1.bf16.msra.mxu1 %v8422_v42 }
 0x2a7   :  { %v8439_v48 = vcombine.high %v327_v45, %v335_v46  ;;  %v8438_v47 = vcombine.low %v327_v45, %v335_v46  ;;  %v9534_v45 = vld [vmem:[#allocation4 + $0x314] ss:$8 sps:$4 sm:$0xff]  }
 0x2a9   :  { %3751 = vmatpush1.bf16.msra.mxu0 %v9475_v52  ;;  %2084 = vmatprep.subr.bf16.mxu1 %v8439_v48  ;;  %v351_v52 = vld [vmem:[#allocation2 + $0x6f8] sm:$0xff]  ;;  %v9537_v48 = vld [vmem:[#allocation4 + $0x324] ss:$8 sps:$4 sm:$0xff]  }
 0x2aa   :  { %3752 = vmatprep.subr.bf16.mxu0 %v9480_v54  ;;  %2085 = vmatpush1.bf16.msra.mxu1 %v8438_v47  ;;  %v8455_v54 = vcombine.high %v343_v50, %v351_v52  ;;  %v8454_v56 = vcombine.low %v343_v50, %v351_v52  ;;  %v9540_v47 = vld [vmem:[#allocation4 + $0x334] ss:$8 sps:$4 sm:$0xff]   ;;  %v9541_v50 = vld [vmem:[#allocation4 + $0x340] ss:$8 sps:$4 sm:$0xff]  }
 0x2ab   :  { %v9546_v52 = vld [vmem:[#allocation4 + $0x354] ss:$8 sps:$4 sm:$0xff]  }
 0x2ac   :  { %2086 = vmatprep.subr.bf16.mxu1 %v8455_v54  ;;  %v9544_v54 = vld [vmem:[#allocation4 + $0x350] ss:$8 sps:$4 sm:$0xff]  }
 0x2ad   :  { %3753 = vmatpush1.bf16.msra.mxu0 %v9478_v27  ;;  %v9504_v27 = vld [vmem:[#allocation4 + $0x274] ss:$8 sps:$4 sm:$0xff]  }
 0x2ae   :  { %3763 = vmatprep.subr.bf16.mxu0 %v9483_v0  ;;  %v367_v0 = vld [vmem:[#allocation2 + $0x778] sm:$0xff]  ;;  %2087 = vmatpush1.bf16.msra.mxu1 %v8454_v56  ;;  %v9549_v56 = vld [vmem:[#allocation4 + $0x364] ss:$8 sps:$4 sm:$0xff]  }
 0x2af   :  { %v8471_v1 = vcombine.high %v359_v63, %v367_v0  ;;  %v8470_v2 = vcombine.low %v359_v63, %v367_v0  ;;  %v9552_v0 = vld [vmem:[#allocation4 + $0x374] ss:$8 sps:$4 sm:$0xff]  }
 0x2b0   :  { %3755 = vmatmul.mubr.bf16.vlgmr.msra.gmra.mrb[28].mxu0 %v2119_v10 }
 0x2b1   :  { %3764 = vmatpush1.bf16.msra.mxu0 %v9481_v9  ;;  %3795 = vmatprep.mubr.bf16.mxu0 %v2122_v13  ;;  %v383_v9 = vld [vmem:[#allocation2 + $0x7f8] sm:$0xff] }
 0x2b2   :  { %3765 = vmatprep.subr.bf16.mxu0 %v9486_v6  ;;  %2088 = vmatprep.subr.bf16.mxu1 %v8471_v1  ;;  %v8487_v10 = vcombine.high %v375_v8, %v383_v9  ;;  %v8486_v6 = vcombine.low %v375_v8, %v383_v9  ;;  %v9508_v13 = vld [vmem:[#allocation4 + $0x290] ss:$8 sps:$4 sm:$0xff]   ;;  %v9561_v9 = vld [vmem:[#allocation4 + $0x3a4] ss:$8 sps:$4 sm:$0xff]  }
 0x2b3   :  { %2089 = vmatpush1.bf16.msra.mxu1 %v8470_v2  ;;  %v9550_v1 = vld [vmem:[#allocation4 + $0x370] ss:$8 sps:$4 sm:$0xff]   ;;  %v9555_v2 = vld [vmem:[#allocation4 + $0x384] ss:$8 sps:$4 sm:$0xff]  }
 0x2b4   :  { %2090 = vmatprep.subr.bf16.mxu1 %v8487_v10  ;;  %v9556_v8 = vld [vmem:[#allocation4 + $0x390] ss:$8 sps:$4 sm:$0xff]   ;;  %v9559_v10 = vld [vmem:[#allocation4 + $0x3a0] ss:$8 sps:$4 sm:$0xff]  }
 0x2b5   :  { %3766 = vmatpush1.bf16.msra.mxu0 %v9484_v18  ;;  %v9516_v18 = vld [vmem:[#allocation4 + $0x2b4] ss:$8 sps:$4 sm:$0xff]  }
 0x2b6   :  { %3767 = vmatprep.subr.bf16.mxu0 %v9489_v19  ;;  %v9514_v19 = vld [vmem:[#allocation4 + $0x2b0] ss:$8 sps:$4 sm:$0xff]  }
 0x2b7   :  { %2091 = vmatpush1.bf16.msra.mxu1 %v8486_v6  ;;  %v9564_v6 = vld [vmem:[#allocation4 + $0x3b4] ss:$8 sps:$4 sm:$0xff]  }
 0x2b9   :  { %3768 = vmatpush1.bf16.msra.mxu0 %v9487_v26  ;;  %v10611_v26 = vsub.s32 7, %v10513_v14 }
 0x2ba   :  { %3769 = vmatprep.subr.bf16.mxu0 %v9492_v23  ;;  %2093 = vmatmul.mubr.bf16.vlgmr.msra.gmra.mrb[0].mxu1 %v10532_v15  ;;  %v9520_v15 = vld [vmem:[#allocation4 + $0x2d0] ss:$8 sps:$4 sm:$0xff]   ;;  %v407_v23 = vrot.slane %v10564_v41, %v10608_v24 }
 0x2bb   :  { %v419_v30 = vrot.slane %v10564_v41, %v10611_v26 }
 0x2bc   :  { %v1890_v32 = vadd.f32 %v10554_v3, %v407_v23  ;;  %v9532_v3 = vld [vmem:[#allocation4 + $0x310] ss:$8 sps:$4 sm:$0xff]   ;;  %v9576_v23 = vld [vmem:[#allocation4 + $0x3f4] ss:$8 sps:$4 sm:$0xff]  }
 0x2bd   :  { %3770 = vmatpush1.bf16.msra.mxu0 %v9490_v33  ;;  %v9528_v33 = vld [vmem:[#allocation4 + $0x2f4] ss:$8 sps:$4 sm:$0xff]  }
 0x2be   :  { %3771 = vmatprep.subr.bf16.mxu0 %v9495_v34  ;;  %v1933_v34 = vadd.f32 %v10572_v7, %v419_v30  ;;  %v2105_v37 = vmax.f32 %v1890_v32, 0.0  ;;  %v9535_v7 = vld [vmem:[#allocation4 + $0x320] ss:$8 sps:$4 sm:$0xff]   ;;  %v9574_v30 = vld [vmem:[#allocation4 + $0x3f0] ss:$8 sps:$4 sm:$0xff]  }
 0x2bf   :  { %v9579_v32 = vld [vmem:[#allocation4 + $0x404] ss:$8 sps:$4 sm:$0xff]  }
 0x2c0   :  { %v2108_v42 = vmax.f32 %v1933_v34, 0.0 }
 0x2c1   :  { %3772 = vmatpush1.bf16.msra.mxu0 %v9493_v43  ;;  %v9529_v43 = vld [vmem:[#allocation4 + $0x300] ss:$8 sps:$4 sm:$0xff]  }
 0x2c2   :  { %3773 = vmatprep.subr.bf16.mxu0 %v9498_v44  ;;  %v2121_v44 = vpack.c.bf16 %v2105_v37, %v2105_v37  ;;  %v2124_v46 = vpack.c.bf16 %v2108_v42, %v2108_v42  ;;  %v9588_v42 = vld [vmem:[#allocation4 + $0x434] ss:$8 sps:$4 sm:$0xff]  }
 0x2c3   :  { %v10602_v53 = vpop.f32.mrb[20].mxu0 }
 0x2c4   :  { %v10604_v55 = vpop.f32.mrb[21].mxu0 }
 0x2c5   :  { %v2016_v61 = vpop.f32.mrb[22].mxu0  ;;  %3774 = vmatpush1.bf16.msra.mxu0 %v9496_v60  ;;  %v9538_v60 = vld [vmem:[#allocation4 + $0x330] ss:$8 sps:$4 sm:$0xff]  }
 0x2c6   :  { %v2017_v51 = vpop.f32.mrb[23].mxu0  ;;  %3775 = vmatprep.subr.bf16.mxu0 %v9501_v49  ;;  %v9543_v49 = vld [vmem:[#allocation4 + $0x344] ss:$8 sps:$4 sm:$0xff]  }
 0x2c9   :  { %3776 = vmatpush1.bf16.msra.mxu0 %v9499_v62 }
 0x2ca   :  { %3777 = vmatprep.subr.bf16.mxu0 %v9504_v27  ;;  %v9547_v27 = vld [vmem:[#allocation4 + $0x360] ss:$8 sps:$4 sm:$0xff]  }
 0x2cd   :  { %3778 = vmatpush1.bf16.msra.mxu0 %v9502_v4  ;;  %v9553_v4 = vld [vmem:[#allocation4 + $0x380] ss:$8 sps:$4 sm:$0xff]  }
 0x2ce   :  { %3779 = vmatprep.subr.bf16.mxu0 %v9507_v57  ;;  %v9558_v57 = vld [vmem:[#allocation4 + $0x394] ss:$8 sps:$4 sm:$0xff]  }
 0x2d1   :  { %3780 = vmatpush1.bf16.msra.mxu0 %v9505_v11  ;;  %v9562_v11 = vld [vmem:[#allocation4 + $0x3b0] ss:$8 sps:$4 sm:$0xff]  }
 0x2d2   :  { %3781 = vmatprep.subr.bf16.mxu0 %v9510_v12  ;;  %v9567_v12 = vld [vmem:[#allocation4 + $0x3c4] ss:$8 sps:$4 sm:$0xff]  }
 0x2d5   :  { %3782 = vmatpush1.bf16.msra.mxu0 %v9508_v13  ;;  %v9565_v13 = vld [vmem:[#allocation4 + $0x3c0] ss:$8 sps:$4 sm:$0xff]  }
 0x2d6   :  { %3783 = vmatprep.subr.bf16.mxu0 %v9513_v16  ;;  %v10624_v16 = vsub.s32 6, %v10513_v14  ;;  %v9571_v14 = vld [vmem:[#allocation4 + $0x3e0] ss:$8 sps:$4 sm:$0xff]  }
 0x2d9   :  { %3784 = vmatpush1.bf16.msra.mxu0 %v9511_v17  ;;  %v9570_v17 = vld [vmem:[#allocation4 + $0x3d4] ss:$8 sps:$4 sm:$0xff]  }
 0x2da   :  { %3785 = vmatprep.subr.bf16.mxu0 %v9516_v18  ;;  %v10629_v18 = vld [vmem:[%s10811_s7 + $0x8] sm:$0xff] }
 0x2dd   :  { %3786 = vmatpush1.bf16.msra.mxu0 %v9514_v19  ;;  %v9568_v19 = vld [vmem:[#allocation4 + $0x3d0] ss:$8 sps:$4 sm:$0xff]  }
 0x2de   :  { %3787 = vmatprep.subr.bf16.mxu0 %v9519_v21  ;;  %v415_v21 = vrot.slane %v10564_v41, %v10624_v16  ;;  %v9577_v41 = vld [vmem:[#allocation4 + $0x400] ss:$8 sps:$4 sm:$0xff]  }
 0x2e1   :  { %3788 = vmatpush1.bf16.msra.mxu0 %v9517_v22  ;;  %v9573_v22 = vld [vmem:[#allocation4 + $0x3e4] ss:$8 sps:$4 sm:$0xff]  }
 0x2e2   :  { %3789 = vmatprep.subr.bf16.mxu0 %v9522_v25  ;;  %v427_v25 = vrot.slane %v10629_v18, %v10559_v38 }
 0x2e5   :  { %3790 = vmatpush1.bf16.msra.mxu0 %v9520_v15  ;;  %v1931_v15 = vadd.f32 %v10570_v5, %v415_v21  ;;  %v9580_v5 = vld [vmem:[#allocation4 + $0x410] ss:$8 sps:$4 sm:$0xff]  }
 0x2e6   :  { %3791 = vmatprep.subr.bf16.mxu0 %v9525_v29  ;;  %v1974_v29 = vadd.f32 %v10588_v59, %v427_v25  ;;  %v9583_v59 = vld [vmem:[#allocation4 + $0x420] ss:$8 sps:$4 sm:$0xff]  }
 0x2e9   :  { %3792 = vmatpush1.bf16.msra.mxu0 %v9523_v31  ;;  %v2107_v31 = vmax.f32 %v1931_v15, 0.0 }
 0x2ea   :  { %3793 = vmatprep.subr.bf16.mxu0 %v9528_v33  ;;  %v2110_v33 = vmax.f32 %v1974_v29, 0.0  ;;  %v9636_v29 = vld [vmem:[#allocation4 + $0x534] ss:$8 sps:$4 sm:$0xff]  }
 0x2eb   :  { %v2123_v34 = vpack.c.bf16 %v2107_v31, %v2107_v31  ;;  %v9639_v31 = vld [vmem:[#allocation4 + $0x544] ss:$8 sps:$4 sm:$0xff]  }
 0x2ec   :  { %v2126_v37 = vpack.c.bf16 %v2110_v33, %v2110_v33  ;;  %v9642_v33 = vld [vmem:[#allocation4 + $0x554] ss:$8 sps:$4 sm:$0xff]  }
 0x2ed   :  { %3794 = vmatpush1.bf16.msra.mxu0 %v9526_v36  ;;  %v9582_v36 = vld [vmem:[#allocation4 + $0x414] ss:$8 sps:$4 sm:$0xff]  }
 0x2ee   :  { %3804 = vmatprep.subr.bf16.mxu0 %v9531_v39  ;;  %v9585_v39 = vld [vmem:[#allocation4 + $0x424] ss:$8 sps:$4 sm:$0xff]  }
 0x2f0   :  { %3796 = vmatmul.mubr.bf16.vlgmr.msra.gmra.mrb[28].mxu0 %v2121_v44  ;;  %v9591_v44 = vld [vmem:[#allocation4 + $0x444] ss:$8 sps:$4 sm:$0xff]  }
 0x2f1   :  { %3805 = vmatpush1.bf16.msra.mxu0 %v9529_v43  ;;  %3836 = vmatprep.mubr.bf16.mxu0 %v2124_v46  ;;  %v9586_v43 = vld [vmem:[#allocation4 + $0x430] ss:$8 sps:$4 sm:$0xff]   ;;  %v9594_v46 = vld [vmem:[#allocation4 + $0x454] ss:$8 sps:$4 sm:$0xff]  }
 0x2f2   :  { %3806 = vmatprep.subr.bf16.mxu0 %v9534_v45  ;;  %v9589_v45 = vld [vmem:[#allocation4 + $0x440] ss:$8 sps:$4 sm:$0xff]  }
 0x2f5   :  { %3807 = vmatpush1.bf16.msra.mxu0 %v9532_v3  ;;  %v9592_v3 = vld [vmem:[#allocation4 + $0x450] ss:$8 sps:$4 sm:$0xff]  }
 0x2f6   :  { %3808 = vmatprep.subr.bf16.mxu0 %v9537_v48  ;;  %v9597_v48 = vld [vmem:[#allocation4 + $0x464] ss:$8 sps:$4 sm:$0xff]  }
 0x2f9   :  { %3809 = vmatpush1.bf16.msra.mxu0 %v9535_v7  ;;  %v9595_v7 = vld [vmem:[#allocation4 + $0x460] ss:$8 sps:$4 sm:$0xff]  }
 0x2fa   :  { %3810 = vmatprep.subr.bf16.mxu0 %v9540_v47  ;;  %v9600_v47 = vld [vmem:[#allocation4 + $0x474] ss:$8 sps:$4 sm:$0xff]  }
 0x2fd   :  { %3811 = vmatpush1.bf16.msra.mxu0 %v9538_v60  ;;  %v9598_v60 = vld [vmem:[#allocation4 + $0x470] ss:$8 sps:$4 sm:$0xff]  }
 0x2fe   :  { %3812 = vmatprep.subr.bf16.mxu0 %v9543_v49  ;;  %v9603_v49 = vld [vmem:[#allocation4 + $0x484] ss:$8 sps:$4 sm:$0xff]  }
 0x301   :  { %3813 = vmatpush1.bf16.msra.mxu0 %v9541_v50  ;;  %v9601_v50 = vld [vmem:[#allocation4 + $0x480] ss:$8 sps:$4 sm:$0xff]  }
 0x302   :  { %3814 = vmatprep.subr.bf16.mxu0 %v9546_v52  ;;  %v9606_v52 = vld [vmem:[#allocation4 + $0x494] ss:$8 sps:$4 sm:$0xff]  }
 0x303   :  { %v10619_v61 = vpop.f32.mrb[24].mxu0 }
 0x304   :  { %v10621_v62 = vpop.f32.mrb[25].mxu0 }
 0x305   :  { %v2057_v51 = vpop.f32.mrb[26].mxu0  ;;  %3815 = vmatpush1.bf16.msra.mxu0 %v9544_v54  ;;  %v9604_v54 = vld [vmem:[#allocation4 + $0x490] ss:$8 sps:$4 sm:$0xff]  }
 0x306   :  { %v2058_v63 = vpop.f32.mrb[27].mxu0  ;;  %3816 = vmatprep.subr.bf16.mxu0 %v9549_v56  ;;  %v9609_v56 = vld [vmem:[#allocation4 + $0x4a4] ss:$8 sps:$4 sm:$0xff]   ;;  %v9607_v51 = vld [vmem:[#allocation4 + $0x4a0] ss:$8 sps:$4 sm:$0xff]  }
 0x307   :  { %v9610_v63 = vld [vmem:[#allocation4 + $0x4b0] ss:$8 sps:$4 sm:$0xff]  }
 0x309   :  { %3817 = vmatpush1.bf16.msra.mxu0 %v9547_v27  ;;  %v9612_v27 = vld [vmem:[#allocation4 + $0x4b4] ss:$8 sps:$4 sm:$0xff]  }
 0x30a   :  { %3818 = vmatprep.subr.bf16.mxu0 %v9552_v0  ;;  %v9615_v0 = vld [vmem:[#allocation4 + $0x4c4] ss:$8 sps:$4 sm:$0xff]  }
 0x30d   :  { %3819 = vmatpush1.bf16.msra.mxu0 %v9550_v1  ;;  %v9613_v1 = vld [vmem:[#allocation4 + $0x4c0] ss:$8 sps:$4 sm:$0xff]  }
 0x30e   :  { %3820 = vmatprep.subr.bf16.mxu0 %v9555_v2  ;;  %v9618_v2 = vld [vmem:[#allocation4 + $0x4d4] ss:$8 sps:$4 sm:$0xff]  }
 0x311   :  { %3821 = vmatpush1.bf16.msra.mxu0 %v9553_v4  ;;  %v9616_v4 = vld [vmem:[#allocation4 + $0x4d0] ss:$8 sps:$4 sm:$0xff]  }
 0x312   :  { %3822 = vmatprep.subr.bf16.mxu0 %v9558_v57  ;;  %v423_v57 = vrot.slane %v10629_v18, %v10575_v20 }
 0x315   :  { %3823 = vmatpush1.bf16.msra.mxu0 %v9556_v8  ;;  %v9621_v8 = vld [vmem:[#allocation4 + $0x4e4] ss:$8 sps:$4 sm:$0xff]  }
 0x316   :  { %3824 = vmatprep.subr.bf16.mxu0 %v9561_v9  ;;  %v435_v9 = vrot.slane %v10629_v18, %v10578_v28 }
 0x319   :  { %3825 = vmatpush1.bf16.msra.mxu0 %v9559_v10  ;;  %v9619_v10 = vld [vmem:[#allocation4 + $0x4e0] ss:$8 sps:$4 sm:$0xff]  }
 0x31a   :  { %3826 = vmatprep.subr.bf16.mxu0 %v9564_v6  ;;  %v1972_v6 = vadd.f32 %v10586_v58, %v423_v57  ;;  %v9628_v58 = vld [vmem:[#allocation4 + $0x510] ss:$8 sps:$4 sm:$0xff]  }
 0x31d   :  { %3827 = vmatpush1.bf16.msra.mxu0 %v9562_v11  ;;  %v9624_v11 = vld [vmem:[#allocation4 + $0x4f4] ss:$8 sps:$4 sm:$0xff]  }
 0x31e   :  { %3828 = vmatprep.subr.bf16.mxu0 %v9567_v12  ;;  %v2015_v12 = vadd.f32 %v10604_v55, %v435_v9  ;;  %v9631_v55 = vld [vmem:[#allocation4 + $0x520] ss:$8 sps:$4 sm:$0xff]  }
 0x320   :  { %v2112_v21 = vmax.f32 %v2015_v12, 0.0  ;;  %v9676_v12 = vld [vmem:[#allocation4 + $0x610] ss:$8 sps:$4 sm:$0xff]  }
 0x321   :  { %3829 = vmatpush1.bf16.msra.mxu0 %v9565_v13  ;;  %v9622_v13 = vld [vmem:[#allocation4 + $0x4f0] ss:$8 sps:$4 sm:$0xff]  }
 0x322   :  { %3830 = vmatprep.subr.bf16.mxu0 %v9570_v17  ;;  %v2109_v17 = vmax.f32 %v1972_v6, 0.0  ;;  %v2128_v15 = vpack.c.bf16 %v2112_v21, %v2112_v21  ;;  %v9687_v21 = vld [vmem:[#allocation4 + $0x644] ss:$8 sps:$4 sm:$0xff]  }
 0x324   :  { %v2125_v25 = vpack.c.bf16 %v2109_v17, %v2109_v17  ;;  %v9684_v17 = vld [vmem:[#allocation4 + $0x634] ss:$8 sps:$4 sm:$0xff]  }
 0x325   :  { %3831 = vmatpush1.bf16.msra.mxu0 %v9568_v19  ;;  %v9627_v19 = vld [vmem:[#allocation4 + $0x504] ss:$8 sps:$4 sm:$0xff]  }
 0x326   :  { %3832 = vmatprep.subr.bf16.mxu0 %v9573_v22  ;;  %v9625_v22 = vld [vmem:[#allocation4 + $0x500] ss:$8 sps:$4 sm:$0xff]  }
 0x329   :  { %3833 = vmatpush1.bf16.msra.mxu0 %v9571_v14  ;;  %v9630_v14 = vld [vmem:[#allocation4 + $0x514] ss:$8 sps:$4 sm:$0xff]  }
 0x32a   :  { %3834 = vmatprep.subr.bf16.mxu0 %v9576_v23  ;;  %v9633_v23 = vld [vmem:[#allocation4 + $0x524] ss:$8 sps:$4 sm:$0xff]  }
 0x32d   :  { %3835 = vmatpush1.bf16.msra.mxu0 %v9574_v30  ;;  %v9634_v30 = vld [vmem:[#allocation4 + $0x530] ss:$8 sps:$4 sm:$0xff]  }
 0x32e   :  { %3845 = vmatprep.subr.bf16.mxu0 %v9579_v32  ;;  %v9637_v32 = vld [vmem:[#allocation4 + $0x540] ss:$8 sps:$4 sm:$0xff]  }
 0x330   :  { %3837 = vmatmul.mubr.bf16.vlgmr.msra.gmra.mrb[28].mxu0 %v2123_v34  ;;  %v9645_v34 = vld [vmem:[#allocation4 + $0x564] ss:$8 sps:$4 sm:$0xff]  }
 0x331   :  { %3846 = vmatpush1.bf16.msra.mxu0 %v9577_v41  ;;  %3877 = vmatprep.mubr.bf16.mxu0 %v2126_v37  ;;  %v9640_v41 = vld [vmem:[#allocation4 + $0x550] ss:$8 sps:$4 sm:$0xff]   ;;  %v9648_v37 = vld [vmem:[#allocation4 + $0x574] ss:$8 sps:$4 sm:$0xff]  }
 0x332   :  { %3847 = vmatprep.subr.bf16.mxu0 %v9582_v36  ;;  %v9643_v36 = vld [vmem:[#allocation4 + $0x560] ss:$8 sps:$4 sm:$0xff]  }
 0x335   :  { %3848 = vmatpush1.bf16.msra.mxu0 %v9580_v5  ;;  %v9646_v5 = vld [vmem:[#allocation4 + $0x570] ss:$8 sps:$4 sm:$0xff]  }
 0x336   :  { %3849 = vmatprep.subr.bf16.mxu0 %v9585_v39  ;;  %v9651_v39 = vld [vmem:[#allocation4 + $0x584] ss:$8 sps:$4 sm:$0xff]  }
 0x339   :  { %3850 = vmatpush1.bf16.msra.mxu0 %v9583_v59  ;;  %v9649_v59 = vld [vmem:[#allocation4 + $0x580] ss:$8 sps:$4 sm:$0xff]  }
 0x33a   :  { %3851 = vmatprep.subr.bf16.mxu0 %v9588_v42  ;;  %v9654_v42 = vld [vmem:[#allocation4 + $0x594] ss:$8 sps:$4 sm:$0xff]  }
 0x33d   :  { %3852 = vmatpush1.bf16.msra.mxu0 %v9586_v43  ;;  %v9652_v43 = vld [vmem:[#allocation4 + $0x590] ss:$8 sps:$4 sm:$0xff]  }
 0x33e   :  { %3853 = vmatprep.subr.bf16.mxu0 %v9591_v44  ;;  %v9657_v44 = vld [vmem:[#allocation4 + $0x5a4] ss:$8 sps:$4 sm:$0xff]  }
 0x341   :  { %3854 = vmatpush1.bf16.msra.mxu0 %v9589_v45  ;;  %v9655_v45 = vld [vmem:[#allocation4 + $0x5a0] ss:$8 sps:$4 sm:$0xff]  }
 0x342   :  { %3855 = vmatprep.subr.bf16.mxu0 %v9594_v46  ;;  %v9660_v46 = vld [vmem:[#allocation4 + $0x5b4] ss:$8 sps:$4 sm:$0xff]  }
 0x345   :  { %3856 = vmatpush1.bf16.msra.mxu0 %v9592_v3  ;;  %v9658_v3 = vld [vmem:[#allocation4 + $0x5b0] ss:$8 sps:$4 sm:$0xff]  }
 0x346   :  { %3857 = vmatprep.subr.bf16.mxu0 %v9597_v48  ;;  %v9663_v48 = vld [vmem:[#allocation4 + $0x5c4] ss:$8 sps:$4 sm:$0xff]  }
 0x349   :  { %3858 = vmatpush1.bf16.msra.mxu0 %v9595_v7  ;;  %v9661_v7 = vld [vmem:[#allocation4 + $0x5c0] ss:$8 sps:$4 sm:$0xff]  }
 0x34a   :  { %3859 = vmatprep.subr.bf16.mxu0 %v9600_v47  ;;  %v9666_v47 = vld [vmem:[#allocation4 + $0x5d4] ss:$8 sps:$4 sm:$0xff]  }
 0x34d   :  { %3860 = vmatpush1.bf16.msra.mxu0 %v9598_v60  ;;  %v9664_v60 = vld [vmem:[#allocation4 + $0x5d0] ss:$8 sps:$4 sm:$0xff]  }
 0x34e   :  { %3861 = vmatprep.subr.bf16.mxu0 %v9603_v49  ;;  %v431_v49 = vrot.slane %v10629_v18, %v10591_v35 }
 0x351   :  { %3862 = vmatpush1.bf16.msra.mxu0 %v9601_v50  ;;  %v9669_v50 = vld [vmem:[#allocation4 + $0x5e4] ss:$8 sps:$4 sm:$0xff]  }
 0x352   :  { %3863 = vmatprep.subr.bf16.mxu0 %v9606_v52  ;;  %v443_v52 = vrot.slane %v10629_v18, %v10594_v40 }
 0x355   :  { %3864 = vmatpush1.bf16.msra.mxu0 %v9604_v54  ;;  %v9667_v54 = vld [vmem:[#allocation4 + $0x5e0] ss:$8 sps:$4 sm:$0xff]  }
 0x356   :  { %3865 = vmatprep.subr.bf16.mxu0 %v9609_v56 }
 0x359   :  { %3866 = vmatpush1.bf16.msra.mxu0 %v9607_v51  ;;  %v2013_v51 = vadd.f32 %v10602_v53, %v431_v49  ;;  %v9723_v49 = vld [vmem:[#allocation4 + $0x704] ss:$8 sps:$4 sm:$0xff]  }
 0x35a   :  { %3867 = vmatprep.subr.bf16.mxu0 %v9612_v27  ;;  %v9672_v27 = vld [vmem:[#allocation4 + $0x5f4] ss:$8 sps:$4 sm:$0xff]  }
 0x35b   :  { %v2111_v57 = vmax.f32 %v2013_v51, 0.0  ;;  %v9726_v51 = vld [vmem:[#allocation4 + $0x714] ss:$8 sps:$4 sm:$0xff]  }
 0x35d   :  { %3868 = vmatpush1.bf16.msra.mxu0 %v9610_v63  ;;  %v2127_v6 = vpack.c.bf16 %v2111_v57, %v2111_v57  ;;  %v9738_v57 = vld [vmem:[#allocation4 + $0x754] ss:$8 sps:$4 sm:$0xff]  }
 0x35e   :  { %3869 = vmatprep.subr.bf16.mxu0 %v9615_v0  ;;  %v2056_v0 = vadd.f32 %v10621_v62, %v443_v52  ;;  %v9681_v62 = vld [vmem:[#allocation4 + $0x624] ss:$8 sps:$4 sm:$0xff]  }
 0x360   :  { %v2114_v9 = vmax.f32 %v2056_v0, 0.0  ;;  %v9732_v0 = vld [vmem:[#allocation4 + $0x734] ss:$8 sps:$4 sm:$0xff]  }
 0x361   :  { %3870 = vmatpush1.bf16.msra.mxu0 %v9613_v1 }
 0x362   :  { %3871 = vmatprep.subr.bf16.mxu0 %v9618_v2  ;;  %v2130_v53 = vpack.c.bf16 %v2114_v9, %v2114_v9  ;;  %v9741_v9 = vld [vmem:[#allocation4 + $0x764] ss:$8 sps:$4 sm:$0xff]  }
 0x365   :  { %3872 = vmatpush1.bf16.msra.mxu0 %v9616_v4  ;;  %v9670_v4 = vld [vmem:[#allocation4 + $0x5f0] ss:$8 sps:$4 sm:$0xff]  }
 0x366   :  { %3873 = vmatprep.subr.bf16.mxu0 %v9621_v8  ;;  %v9675_v8 = vld [vmem:[#allocation4 + $0x604] ss:$8 sps:$4 sm:$0xff]  }
 0x369   :  { %3874 = vmatpush1.bf16.msra.mxu0 %v9619_v10  ;;  %v9673_v10 = vld [vmem:[#allocation4 + $0x600] ss:$8 sps:$4 sm:$0xff]  }
 0x36a   :  { %3875 = vmatprep.subr.bf16.mxu0 %v9624_v11  ;;  %v9678_v11 = vld [vmem:[#allocation4 + $0x614] ss:$8 sps:$4 sm:$0xff]  }
 0x36d   :  { %3876 = vmatpush1.bf16.msra.mxu0 %v9622_v13  ;;  %v9679_v13 = vld [vmem:[#allocation4 + $0x620] ss:$8 sps:$4 sm:$0xff]  }
 0x36e   :  { %3886 = vmatprep.subr.bf16.mxu0 %v9627_v19  ;;  %v9682_v19 = vld [vmem:[#allocation4 + $0x630] ss:$8 sps:$4 sm:$0xff]  }
 0x370   :  { %3878 = vmatmul.mubr.bf16.vlgmr.msra.gmra.mrb[28].mxu0 %v2125_v25  ;;  %v9690_v25 = vld [vmem:[#allocation4 + $0x654] ss:$8 sps:$4 sm:$0xff]  }
 0x371   :  { %3887 = vmatpush1.bf16.msra.mxu0 %v9625_v22  ;;  %3918 = vmatprep.mubr.bf16.mxu0 %v2128_v15  ;;  %v9685_v22 = vld [vmem:[#allocation4 + $0x640] ss:$8 sps:$4 sm:$0xff]   ;;  %v9693_v15 = vld [vmem:[#allocation4 + $0x664] ss:$8 sps:$4 sm:$0xff]  }
 0x372   :  { %3888 = vmatprep.subr.bf16.mxu0 %v9630_v14  ;;  %v9688_v14 = vld [vmem:[#allocation4 + $0x650] ss:$8 sps:$4 sm:$0xff]  }
 0x375   :  { %3889 = vmatpush1.bf16.msra.mxu0 %v9628_v58  ;;  %v9691_v58 = vld [vmem:[#allocation4 + $0x660] ss:$8 sps:$4 sm:$0xff]  }
 0x376   :  { %3890 = vmatprep.subr.bf16.mxu0 %v9633_v23  ;;  %v9696_v23 = vld [vmem:[#allocation4 + $0x674] ss:$8 sps:$4 sm:$0xff]  }
 0x379   :  { %3891 = vmatpush1.bf16.msra.mxu0 %v9631_v55  ;;  %v9694_v55 = vld [vmem:[#allocation4 + $0x670] ss:$8 sps:$4 sm:$0xff]  }
 0x37a   :  { %3892 = vmatprep.subr.bf16.mxu0 %v9636_v29  ;;  %v9699_v29 = vld [vmem:[#allocation4 + $0x684] ss:$8 sps:$4 sm:$0xff]  }
 0x37d   :  { %3893 = vmatpush1.bf16.msra.mxu0 %v9634_v30  ;;  %v9697_v30 = vld [vmem:[#allocation4 + $0x680] ss:$8 sps:$4 sm:$0xff]  }
 0x37e   :  { %3894 = vmatprep.subr.bf16.mxu0 %v9639_v31  ;;  %v9702_v31 = vld [vmem:[#allocation4 + $0x694] ss:$8 sps:$4 sm:$0xff]  }
 0x381   :  { %3895 = vmatpush1.bf16.msra.mxu0 %v9637_v32  ;;  %v9700_v32 = vld [vmem:[#allocation4 + $0x690] ss:$8 sps:$4 sm:$0xff]  }
 0x382   :  { %3896 = vmatprep.subr.bf16.mxu0 %v9642_v33  ;;  %v9705_v33 = vld [vmem:[#allocation4 + $0x6a4] ss:$8 sps:$4 sm:$0xff]  }
 0x385   :  { %3897 = vmatpush1.bf16.msra.mxu0 %v9640_v41  ;;  %v9703_v41 = vld [vmem:[#allocation4 + $0x6a0] ss:$8 sps:$4 sm:$0xff]  }
 0x386   :  { %3898 = vmatprep.subr.bf16.mxu0 %v9645_v34  ;;  %v9708_v34 = vld [vmem:[#allocation4 + $0x6b4] ss:$8 sps:$4 sm:$0xff]  }
 0x389   :  { %3899 = vmatpush1.bf16.msra.mxu0 %v9643_v36  ;;  %v9706_v36 = vld [vmem:[#allocation4 + $0x6b0] ss:$8 sps:$4 sm:$0xff]  }
 0x38a   :  { %3900 = vmatprep.subr.bf16.mxu0 %v9648_v37  ;;  %v9711_v37 = vld [vmem:[#allocation4 + $0x6c4] ss:$8 sps:$4 sm:$0xff]  }
 0x38d   :  { %3901 = vmatpush1.bf16.msra.mxu0 %v9646_v5  ;;  %v10647_v56 = vpop.f32.mrb[0].mxu1  ;;  %v9709_v5 = vld [vmem:[#allocation4 + $0x6c0] ss:$8 sps:$4 sm:$0xff]  }
 0x38e   :  { %3902 = vmatprep.subr.bf16.mxu0 %v9651_v39  ;;  %v10650_v63 = vpop.f32.mrb[1].mxu1  ;;  %v9714_v39 = vld [vmem:[#allocation4 + $0x6d4] ss:$8 sps:$4 sm:$0xff]  }
 0x38f   :  { %v2098_v1 = vpop.f32.mrb[2].mxu1 }
 0x390   :  { %v2099_v2 = vpop.f32.mrb[3].mxu1  ;;  %v9730_v1 = vld [vmem:[#allocation4 + $0x730] ss:$8 sps:$4 sm:$0xff]  }
 0x391   :  { %3903 = vmatpush1.bf16.msra.mxu0 %v9649_v59  ;;  %v9712_v59 = vld [vmem:[#allocation4 + $0x6d0] ss:$8 sps:$4 sm:$0xff]   ;;  %v9735_v2 = vld [vmem:[#allocation4 + $0x744] ss:$8 sps:$4 sm:$0xff]  }
 0x392   :  { %3904 = vmatprep.subr.bf16.mxu0 %v9654_v42  ;;  %v451_v42 = vrot.slane %v10629_v18, %v10611_v26 }
 0x395   :  { %3905 = vmatpush1.bf16.msra.mxu0 %v9652_v43  ;;  %v439_v43 = vrot.slane %v10629_v18, %v10608_v24 }
 0x396   :  { %3906 = vmatprep.subr.bf16.mxu0 %v9657_v44  ;;  %v9717_v44 = vld [vmem:[#allocation4 + $0x6e4] ss:$8 sps:$4 sm:$0xff]  }
 0x399   :  { %3907 = vmatpush1.bf16.msra.mxu0 %v9655_v45  ;;  %v9715_v45 = vld [vmem:[#allocation4 + $0x6e0] ss:$8 sps:$4 sm:$0xff]  }
 0x39a   :  { %3908 = vmatprep.subr.bf16.mxu0 %v9660_v46  ;;  %v2097_v46 = vadd.f32 %v10650_v63, %v451_v42  ;;  %v9727_v63 = vld [vmem:[#allocation4 + $0x720] ss:$8 sps:$4 sm:$0xff]  }
 0x39b   :  { %v9777_v42 = vld [vmem:[#allocation6 + $0x60] sm:$0xff]  }
 0x39d   :  { %3909 = vmatpush1.bf16.msra.mxu0 %v9658_v3  ;;  %v2054_v3 = vadd.f32 %v10619_v61, %v439_v43  ;;  %v9729_v61 = vld [vmem:[#allocation4 + $0x724] ss:$8 sps:$4 sm:$0xff]  }
 0x39e   :  { %3910 = vmatprep.subr.bf16.mxu0 %v9663_v48  ;;  %v9720_v48 = vld [vmem:[#allocation4 + $0x6f4] ss:$8 sps:$4 sm:$0xff]   ;;  %v9778_v43 = vld [vmem:[#allocation6 + $0x20] sm:$0xff]  }
 0x3a1   :  { %3911 = vmatpush1.bf16.msra.mxu0 %v9661_v7  ;;  %v9718_v7 = vld [vmem:[#allocation4 + $0x6f0] ss:$8 sps:$4 sm:$0xff]  }
 0x3a2   :  { %3912 = vmatprep.subr.bf16.mxu0 %v9666_v47  ;;  %v2116_v47 = vmax.f32 %v2097_v46, 0.0  ;;  %v9781_v46 = vld [vmem:[#allocation6 + $0x70] sm:$0xff]  }
 0x3a4   :  { %v2132_v52 = vpack.c.bf16 %v2116_v47, %v2116_v47  ;;  %v9785_v47 = vld [vmem:[#allocation7] ss:$8 sps:$4 sm:$0xff]  }
 0x3a5   :  { %3913 = vmatpush1.bf16.msra.mxu0 %v9664_v60  ;;  %v2113_v60 = vmax.f32 %v2054_v3, 0.0  ;;  %v9782_v3 = vld [vmem:[#allocation6 + $0x30] sm:$0xff]  }
 0x3a6   :  { %3914 = vmatprep.subr.bf16.mxu0 %v9669_v50  ;;  %v9721_v50 = vld [vmem:[#allocation4 + $0x700] ss:$8 sps:$4 sm:$0xff]  }
 0x3a9   :  { %3915 = vmatpush1.bf16.msra.mxu0 %v9667_v54  ;;  %v2129_v54 = vpack.c.bf16 %v2113_v60, %v2113_v60  ;;  %v9787_v60 = vld [vmem:[#allocation7 + $0x4] ss:$8 sps:$4 sm:$0xff]  }
 0x3aa   :  { %3916 = vmatprep.subr.bf16.mxu0 %v9672_v27  ;;  %v9724_v27 = vld [vmem:[#allocation4 + $0x710] ss:$8 sps:$4 sm:$0xff]   ;;  %4298 = vmatprep.subr.bf16.mxu1 %v9787_v60 }
 0x3ab   :  { %4299 = vmatpush1.bf16.msra.mxu1 %v9785_v47 }
 0x3ad   :  { %3917 = vmatpush1.bf16.msra.mxu0 %v9670_v4  ;;  %v9733_v4 = vld [vmem:[#allocation4 + $0x740] ss:$8 sps:$4 sm:$0xff]  }
 0x3ae   :  { %3927 = vmatprep.subr.bf16.mxu0 %v9675_v8  ;;  %v9736_v8 = vld [vmem:[#allocation4 + $0x750] ss:$8 sps:$4 sm:$0xff]  }
 0x3b0   :  { %3919 = vmatmul.mubr.bf16.vlgmr.msra.gmra.mrb[28].mxu0 %v2127_v6  ;;  %v9744_v6 = vld [vmem:[#allocation4 + $0x774] ss:$8 sps:$4 sm:$0xff]  }
 0x3b1   :  { %3928 = vmatpush1.bf16.msra.mxu0 %v9673_v10  ;;  %3959 = vmatprep.mubr.bf16.mxu0 %v2130_v53  ;;  %v9739_v10 = vld [vmem:[#allocation4 + $0x760] ss:$8 sps:$4 sm:$0xff]   ;;  %v9747_v53 = vld [vmem:[#allocation4 + $0x784] ss:$8 sps:$4 sm:$0xff]  }
 0x3b2   :  { %3929 = vmatprep.subr.bf16.mxu0 %v9678_v11  ;;  %v9742_v11 = vld [vmem:[#allocation4 + $0x770] ss:$8 sps:$4 sm:$0xff]  }
 0x3b5   :  { %3930 = vmatpush1.bf16.msra.mxu0 %v9676_v12  ;;  %v9745_v12 = vld [vmem:[#allocation4 + $0x780] ss:$8 sps:$4 sm:$0xff]  }
 0x3b6   :  { %3931 = vmatprep.subr.bf16.mxu0 %v9681_v62  ;;  %v9750_v62 = vld [vmem:[#allocation4 + $0x794] ss:$8 sps:$4 sm:$0xff]  }
 0x3b9   :  { %3932 = vmatpush1.bf16.msra.mxu0 %v9679_v13  ;;  %v9748_v13 = vld [vmem:[#allocation4 + $0x790] ss:$8 sps:$4 sm:$0xff]  }
 0x3ba   :  { %3933 = vmatprep.subr.bf16.mxu0 %v9684_v17  ;;  %v9753_v17 = vld [vmem:[#allocation4 + $0x7a4] ss:$8 sps:$4 sm:$0xff]  }
 0x3bd   :  { %3934 = vmatpush1.bf16.msra.mxu0 %v9682_v19  ;;  %v9751_v19 = vld [vmem:[#allocation4 + $0x7a0] ss:$8 sps:$4 sm:$0xff]  }
 0x3be   :  { %3935 = vmatprep.subr.bf16.mxu0 %v9687_v21  ;;  %v9756_v21 = vld [vmem:[#allocation4 + $0x7b4] ss:$8 sps:$4 sm:$0xff]  }
 0x3c1   :  { %3936 = vmatpush1.bf16.msra.mxu0 %v9685_v22  ;;  %v9754_v22 = vld [vmem:[#allocation4 + $0x7b0] ss:$8 sps:$4 sm:$0xff]  }
 0x3c2   :  { %3937 = vmatprep.subr.bf16.mxu0 %v9690_v25  ;;  %v9759_v25 = vld [vmem:[#allocation4 + $0x7c4] ss:$8 sps:$4 sm:$0xff]  }
 0x3c5   :  { %3938 = vmatpush1.bf16.msra.mxu0 %v9688_v14  ;;  %v9757_v14 = vld [vmem:[#allocation4 + $0x7c0] ss:$8 sps:$4 sm:$0xff]  }
 0x3c6   :  { %3939 = vmatprep.subr.bf16.mxu0 %v9693_v15  ;;  %v9762_v15 = vld [vmem:[#allocation4 + $0x7d4] ss:$8 sps:$4 sm:$0xff]  }
 0x3c9   :  { %3940 = vmatpush1.bf16.msra.mxu0 %v9691_v58  ;;  %v9760_v58 = vld [vmem:[#allocation4 + $0x7d0] ss:$8 sps:$4 sm:$0xff]  }
 0x3ca   :  { %3941 = vmatprep.subr.bf16.mxu0 %v9696_v23  ;;  %v447_v23 = vrot.slane %v10629_v18, %v10624_v16  ;;  %v9772_v18 = vld [vmem:[#allocation6 + $0x8] sm:$0xff]  }
 0x3cd   :  { %3942 = vmatpush1.bf16.msra.mxu0 %v9694_v55  ;;  %v9765_v55 = vld [vmem:[#allocation4 + $0x7e4] ss:$8 sps:$4 sm:$0xff]  }
 0x3ce   :  { %3943 = vmatprep.subr.bf16.mxu0 %v9699_v29  ;;  %v9763_v29 = vld [vmem:[#allocation4 + $0x7e0] ss:$8 sps:$4 sm:$0xff]  }
 0x3d1   :  { %3944 = vmatpush1.bf16.msra.mxu0 %v9697_v30  ;;  %v2095_v30 = vadd.f32 %v10647_v56, %v447_v23  ;;  %v9775_v56 = vld [vmem:[#allocation6 + $0x58] sm:$0xff]  }
 0x3d2   :  { %3945 = vmatprep.subr.bf16.mxu0 %v9702_v31  ;;  %v9768_v31 = vld [vmem:[#allocation4 + $0x7f4] ss:$8 sps:$4 sm:$0xff]  }
 0x3d5   :  { %3946 = vmatpush1.bf16.msra.mxu0 %v9700_v32  ;;  %v9766_v32 = vld [vmem:[#allocation4 + $0x7f0] ss:$8 sps:$4 sm:$0xff]  }
 0x3d6   :  { %3947 = vmatprep.subr.bf16.mxu0 %v9705_v33  ;;  %v2115_v33 = vmax.f32 %v2095_v30, 0.0  ;;  %v4358_v30 = vld [vmem:[#allocation9 + $0x78] sm:$0xff] }
 0x3d9   :  { %3948 = vmatpush1.bf16.msra.mxu0 %v9703_v41  ;;  %v9769_v41 = vld [vmem:[#allocation6 + $0x40] sm:$0xff]  }
 0x3da   :  { %3949 = vmatprep.subr.bf16.mxu0 %v9708_v34  ;;  %v9770_v34 = vld [vmem:[#allocation6] sm:$0xff]  }
 0x3dd   :  { %3950 = vmatpush1.bf16.msra.mxu0 %v9706_v36  ;;  %v2131_v36 = vpack.c.bf16 %v2115_v33, %v2115_v33  ;;  %v4366_v33 = vld [vmem:[#allocation9 + $0xb8] sm:$0xff] }
 0x3de   :  { %3951 = vmatprep.subr.bf16.mxu0 %v9711_v37  ;;  %v9771_v37 = vld [vmem:[#allocation6 + $0x48] sm:$0xff]  }
 0x3e1   :  { %3952 = vmatpush1.bf16.msra.mxu0 %v9709_v5  ;;  %v9773_v5 = vld [vmem:[#allocation6 + $0x50] sm:$0xff]  }
 0x3e2   :  { %3953 = vmatprep.subr.bf16.mxu0 %v9714_v39  ;;  %v9774_v39 = vld [vmem:[#allocation6 + $0x10] sm:$0xff]  }
 0x3e5   :  { %3954 = vmatpush1.bf16.msra.mxu0 %v9712_v59  ;;  %v9776_v59 = vld [vmem:[#allocation6 + $0x18] sm:$0xff]  }
 0x3e6   :  { %3955 = vmatprep.subr.bf16.mxu0 %v9717_v44  ;;  %v9779_v44 = vld [vmem:[#allocation6 + $0x68] sm:$0xff]  }
 0x3e9   :  { %3956 = vmatpush1.bf16.msra.mxu0 %v9715_v45  ;;  %v9780_v45 = vld [vmem:[#allocation6 + $0x28] sm:$0xff]  }
 0x3ea   :  { %3957 = vmatprep.subr.bf16.mxu0 %v9720_v48  ;;  %v9783_v48 = vld [vmem:[#allocation6 + $0x78] sm:$0xff]  }
 0x3ed   :  { %3958 = vmatpush1.bf16.msra.mxu0 %v9718_v7  ;;  %v9784_v7 = vld [vmem:[#allocation6 + $0x38] sm:$0xff]  }
 0x3ee   :  { %3968 = vmatprep.subr.bf16.mxu0 %v9723_v49  ;;  %v9790_v49 = vld [vmem:[#allocation7 + $0x14] ss:$8 sps:$4 sm:$0xff]  }
 0x3ef   :  { %4300 = vmatprep.subr.bf16.mxu1 %v9790_v49  ;;  %v4446_v49 = vld [vmem:[#allocation9 + $0x338] sm:$0xff] }
 0x3f0   :  { %3960 = vmatmul.mubr.bf16.vlgmr.msra.gmra.mrb[28].mxu0 %v2129_v54  ;;  %v9791_v54 = vld [vmem:[#allocation7 + $0x20] ss:$8 sps:$4 sm:$0xff]  }
 0x3f1   :  { %3969 = vmatpush1.bf16.msra.mxu0 %v9721_v50  ;;  %4000 = vmatprep.mubr.bf16.mxu0 %v2132_v52  ;;  %v9788_v50 = vld [vmem:[#allocation7 + $0x10] ss:$8 sps:$4 sm:$0xff]   ;;  %v9793_v52 = vld [vmem:[#allocation7 + $0x24] ss:$8 sps:$4 sm:$0xff]  }
 0x3f2   :  { %3970 = vmatprep.subr.bf16.mxu0 %v9726_v51  ;;  %4301 = vmatpush1.bf16.msra.mxu1 %v9788_v50  ;;  %v9796_v51 = vld [vmem:[#allocation7 + $0x34] ss:$8 sps:$4 sm:$0xff]  }
 0x3f3   :  { %4302 = vmatprep.subr.bf16.mxu1 %v9793_v52  ;;  %v4454_v50 = vld [vmem:[#allocation9 + $0x378] sm:$0xff] }
 0x3f4   :  { %v8887_v52 = vcombine.low %v4446_v49, %v4454_v50 }
 0x3f5   :  { %3971 = vmatpush1.bf16.msra.mxu0 %v9724_v27  ;;  %v9794_v27 = vld [vmem:[#allocation7 + $0x30] ss:$8 sps:$4 sm:$0xff]  }
 0x3f6   :  { %3972 = vmatprep.subr.bf16.mxu0 %v9729_v61  ;;  %4303 = vmatpush1.bf16.msra.mxu1 %v9791_v54  ;;  %v9799_v61 = vld [vmem:[#allocation7 + $0x44] ss:$8 sps:$4 sm:$0xff]   ;;  %v8888_v54 = vcombine.high %v4446_v49, %v4454_v50 }
 0x3f7   :  { %4304 = vmatprep.subr.bf16.mxu1 %v9796_v51  ;;  %v4462_v51 = vld [vmem:[#allocation9 + $0x3b8] sm:$0xff]  ;;  %v4415_v49 = vld [vmem:[#allocation9 + $0x240] sm:$0xff] }
 0x3f9   :  { %3973 = vmatpush1.bf16.msra.mxu0 %v9727_v63  ;;  %v9797_v63 = vld [vmem:[#allocation7 + $0x40] ss:$8 sps:$4 sm:$0xff]  }
 0x3fa   :  { %3974 = vmatprep.subr.bf16.mxu0 %v9732_v0  ;;  %4305 = vmatpush1.bf16.msra.mxu1 %v9794_v27  ;;  %v9802_v0 = vld [vmem:[#allocation7 + $0x54] ss:$8 sps:$4 sm:$0xff]  }
 0x3fb   :  { %4306 = vmatprep.subr.bf16.mxu1 %v9799_v61  ;;  %v4470_v27 = vld [vmem:[#allocation9 + $0x3f8] sm:$0xff] }
 0x3fc   :  { %v8903_v61 = vcombine.low %v4462_v51, %v4470_v27 }
 0x3fd   :  { %3975 = vmatpush1.bf16.msra.mxu0 %v9730_v1  ;;  %v9800_v1 = vld [vmem:[#allocation7 + $0x50] ss:$8 sps:$4 sm:$0xff]  }
 0x3fe   :  { %3976 = vmatprep.subr.bf16.mxu0 %v9735_v2  ;;  %4307 = vmatpush1.bf16.msra.mxu1 %v9797_v63  ;;  %v2389_v2 = vld [vmem:[%s10812_s8] sm:$0x3]  ;;  %v8904_v63 = vcombine.high %v4462_v51, %v4470_v27 }
 0x3ff   :  { %4308 = vmatprep.subr.bf16.mxu1 %v9802_v0  ;;  %v4478_v0 = vld [vmem:[#allocation9 + $0x438] sm:$0xff]  ;;  %v4431_v51 = vld [vmem:[#allocation9 + $0x2c0] sm:$0xff] }
 0x400   :  { %v4447_v27 = vld [vmem:[#allocation9 + $0x340] sm:$0xff] }
 0x401   :  { %3977 = vmatpush1.bf16.msra.mxu0 %v9733_v4  ;;  %v2394_v4 = vrot.slane %v2389_v2, %v10575_v20 }
 0x402   :  { %3978 = vmatprep.subr.bf16.mxu0 %v9738_v57  ;;  %4309 = vmatpush1.bf16.msra.mxu1 %v9800_v1  ;;  %v2398_v57 = vrot.slane %v2389_v2, %v10559_v38  ;;  %v4486_v1 = vld [vmem:[#allocation9 + $0x478] sm:$0xff] }
 0x403   :  { %v8919_v2 = vcombine.low %v4478_v0, %v4486_v1 }
 0x405   :  { %3979 = vmatpush1.bf16.msra.mxu0 %v9736_v8 }
 0x406   :  { %3980 = vmatprep.subr.bf16.mxu0 %v9741_v9 }
 0x409   :  { %3981 = vmatpush1.bf16.msra.mxu0 %v9739_v10 }
 0x40a   :  { %3982 = vmatprep.subr.bf16.mxu0 %v9744_v6 }
 0x40d   :  { %3983 = vmatpush1.bf16.msra.mxu0 %v9742_v11 }
 0x40e   :  { %3984 = vmatprep.subr.bf16.mxu0 %v9747_v53 }
 0x411   :  { %3985 = vmatpush1.bf16.msra.mxu0 %v9745_v12 }
 0x412   :  { %3986 = vmatprep.subr.bf16.mxu0 %v9750_v62 }
 0x415   :  { %3987 = vmatpush1.bf16.msra.mxu0 %v9748_v13 }
 0x416   :  { %3988 = vmatprep.subr.bf16.mxu0 %v9753_v17 }
 0x419   :  { %3989 = vmatpush1.bf16.msra.mxu0 %v9751_v19  ;;  %v9805_v19 = vld [vmem:[#allocation7 + $0x64] ss:$8 sps:$4 sm:$0xff]  }
 0x41a   :  { %3990 = vmatprep.subr.bf16.mxu0 %v9756_v21  ;;  %v9803_v21 = vld [vmem:[#allocation7 + $0x60] ss:$8 sps:$4 sm:$0xff]   ;;  %4310 = vmatprep.subr.bf16.mxu1 %v9805_v19 }
 0x41b   :  { %4311 = vmatpush1.bf16.msra.mxu1 %v9803_v21  ;;  %v4542_v21 = vld [vmem:[#allocation9 + $0x638] sm:$0xff] }
 0x41d   :  { %3991 = vmatpush1.bf16.msra.mxu0 %v9754_v22  ;;  %v9808_v22 = vld [vmem:[#allocation7 + $0x74] ss:$8 sps:$4 sm:$0xff]  }
 0x41e   :  { %3992 = vmatprep.subr.bf16.mxu0 %v9759_v25  ;;  %v9806_v25 = vld [vmem:[#allocation7 + $0x70] ss:$8 sps:$4 sm:$0xff]   ;;  %4312 = vmatprep.subr.bf16.mxu1 %v9808_v22 }
 0x41f   :  { %4313 = vmatpush1.bf16.msra.mxu1 %v9806_v25  ;;  %v4550_v22 = vld [vmem:[#allocation9 + $0x678] sm:$0xff] }
 0x420   :  { %v8983_v25 = vcombine.low %v4542_v21, %v4550_v22 }
 0x421   :  { %3993 = vmatpush1.bf16.msra.mxu0 %v9757_v14  ;;  %v10353_v14 = vmov 0  }
 0x422   :  { %3994 = vmatprep.subr.bf16.mxu0 %v9762_v15  ;;  %4330 = vmatprep.mubr.bf16.mxu1 %v10353_v14  ;;  %v10667_v15 = vld [vmem:[#allocation9] sm:$0xff]  ;;  %v8984_v14 = vcombine.high %v4542_v21, %v4550_v22 }
 0x423   :  { %v4519_v21 = vld [vmem:[#allocation9 + $0x580] sm:$0xff] }
 0x424   :  { %v4527_v22 = vld [vmem:[#allocation9 + $0x5c0] sm:$0xff] }
 0x425   :  { %3995 = vmatpush1.bf16.msra.mxu0 %v9760_v58  ;;  %v10669_v58 = vld [vmem:[#allocation9 + $0x40] sm:$0xff] }
 0x426   :  { %3996 = vmatprep.subr.bf16.mxu0 %v9765_v55  ;;  %v8777_v23 = vcombine.low %v10667_v15, %v10669_v58  ;;  %v8778_v55 = vcombine.high %v10667_v15, %v10669_v58 }
 0x428   :  { %5963 = vmatprep.subr.bf16.mxu1 %v8778_v55  ;;  %v4558_v55 = vld [vmem:[#allocation9 + $0x6b8] sm:$0xff] }
 0x429   :  { %3997 = vmatpush1.bf16.msra.mxu0 %v9763_v29  ;;  %v4350_v29 = vld [vmem:[#allocation9 + $0x38] sm:$0xff] }
 0x42a   :  { %3998 = vmatprep.subr.bf16.mxu0 %v9768_v31  ;;  %v8791_v31 = vcombine.low %v4350_v29, %v4358_v30 }
 0x42d   :  { %3999 = vmatpush1.bf16.msra.mxu0 %v9766_v32  ;;  %v8792_v32 = vcombine.high %v4350_v29, %v4358_v30  ;;  %v4566_v29 = vld [vmem:[#allocation9 + $0x6f8] sm:$0xff] }
 0x42e   :  { %9290 = vmatprep.subr.bf16.mxu0 %v9769_v41  ;;  %v4374_v41 = vld [vmem:[#allocation9 + $0xf8] sm:$0xff]  ;;  %v8999_v30 = vcombine.low %v4558_v55, %v4566_v29 }
 0x430   :  { %4001 = vmatmul.mubr.bf16.vlgmr.msra.gmra.mrb[28].mxu0 %v2131_v36  ;;  %v8808_v36 = vcombine.high %v4366_v33, %v4374_v41 }
 0x431   :  { %9291 = vmatpush3.bf16.msra.mxu0 %v9770_v34  ;;  %v8807_v34 = vcombine.low %v4366_v33, %v4374_v41  ;;  %v8744_v33 = vld [vmem:[%s10813_s9] ss:$0 sm:$0xff] }
 0x432   :  { %9292 = vmatprep.subr.bf16.mxu0 %v9771_v37  ;;  %v4382_v37 = vld [vmem:[#allocation9 + $0x138] sm:$0xff] }
 0x435   :  { %9293 = vmatpush3.bf16.msra.mxu0 %v9772_v18  ;;  %v4390_v18 = vld [vmem:[#allocation9 + $0x178] sm:$0xff] }
 0x436   :  { %9294 = vmatprep.subr.bf16.mxu0 %v9773_v5  ;;  %v8823_v5 = vcombine.low %v4382_v37, %v4390_v18 }
 0x439   :  { %9295 = vmatpush3.bf16.msra.mxu0 %v9774_v39  ;;  %v8824_v39 = vcombine.high %v4382_v37, %v4390_v18 }
 0x43a   :  { %9296 = vmatprep.subr.bf16.mxu0 %v9775_v56  ;;  %v4398_v56 = vld [vmem:[#allocation9 + $0x1b8] sm:$0xff] }
 0x43d   :  { %9297 = vmatpush3.bf16.msra.mxu0 %v9776_v59  ;;  %v4406_v59 = vld [vmem:[#allocation9 + $0x1f8] sm:$0xff] }
 0x43e   :  { %9298 = vmatprep.subr.bf16.mxu0 %v9777_v42  ;;  %v8839_v42 = vcombine.low %v4398_v56, %v4406_v59 }
 0x441   :  { %9299 = vmatpush3.bf16.msra.mxu0 %v9778_v43  ;;  %v8840_v43 = vcombine.high %v4398_v56, %v4406_v59 }
 0x442   :  { %9300 = vmatprep.subr.bf16.mxu0 %v9779_v44  ;;  %v4414_v44 = vld [vmem:[#allocation9 + $0x238] sm:$0xff] }
 0x445   :  { %9301 = vmatpush3.bf16.msra.mxu0 %v9780_v45  ;;  %v4422_v45 = vld [vmem:[#allocation9 + $0x278] sm:$0xff] }
 0x446   :  { %9302 = vmatprep.subr.bf16.mxu0 %v9781_v46  ;;  %v8855_v46 = vcombine.low %v4414_v44, %v4422_v45 }
 0x449   :  { %9303 = vmatpush3.bf16.msra.mxu0 %v9782_v3  ;;  %v8856_v3 = vcombine.high %v4414_v44, %v4422_v45  ;;  %v4383_v44 = vld [vmem:[#allocation9 + $0x140] sm:$0xff] }
 0x44a   :  { %9304 = vmatprep.subr.bf16.mxu0 %v9783_v48  ;;  %v4430_v48 = vld [vmem:[#allocation9 + $0x2b8] sm:$0xff] }
 0x44d   :  { %9305 = vmatpush3.bf16.msra.mxu0 %v9784_v7  ;;  %v4438_v7 = vld [vmem:[#allocation9 + $0x2f8] sm:$0xff] }
 0x44e   :  { %6250 = vmatprep.subr.bf16.mxu0 %v8792_v32  ;;  %v8871_v47 = vcombine.low %v4430_v48, %v4438_v7  ;;  %v8872_v60 = vcombine.high %v4430_v48, %v4438_v7  ;;  %v4399_v48 = vld [vmem:[#allocation9 + $0x1c0] sm:$0xff] }
 0x503   :  { %v4002_v8 = vpop.f32.mrb[28].mxu0 }
 0x504   :  { %v9312_v9 = vadd.f32 %v4002_v8, %v2394_v4  ;;  %v4004_v10 = vpop.f32.mrb[29].mxu0  ;;  %v8920_v4 = vcombine.high %v4478_v0, %v4486_v1  ;;  %v4502_v8 = vld [vmem:[#allocation9 + $0x4f8] sm:$0xff]  ;;  %v4455_v0 = vld [vmem:[#allocation9 + $0x380] sm:$0xff] }
 0x505   :  { %v9313_v6 = vadd.f32 %v4004_v10, %v2398_v57  ;;  %v4006_v11 = vpop.f32.mrb[30].mxu0  ;;  %v4494_v57 = vld [vmem:[#allocation9 + $0x4b8] sm:$0xff]  ;;  %v4463_v1 = vld [vmem:[#allocation9 + $0x3c0] sm:$0xff] }
 0x506   :  { %v4009_v53 = vmax.f32 %v9312_v9, 0.0  ;;  %v4007_v12 = vpop.f32.mrb[31].mxu0  ;;  %v8935_v9 = vcombine.low %v4494_v57, %v4502_v8  ;;  %v8936_v10 = vcombine.high %v4494_v57, %v4502_v8  ;;  %v4518_v11 = vld [vmem:[#allocation9 + $0x578] sm:$0xff]  ;;  %v4471_v57 = vld [vmem:[#allocation9 + $0x400] sm:$0xff] }
 0x507   :  { %v4010_v62 = vmax.f32 %v9313_v6, 0.0  ;;  %v4510_v6 = vld [vmem:[#allocation9 + $0x538] sm:$0xff]  ;;  %v4479_v8 = vld [vmem:[#allocation9 + $0x440] sm:$0xff] }
 0x508   :  { %v4011_v17 = vpack.c.bf16 %v4009_v53, %v4009_v53  ;;  %v8951_v53 = vcombine.low %v4510_v6, %v4518_v11  ;;  %v8952_v12 = vcombine.high %v4510_v6, %v4518_v11  ;;  %v4487_v6 = vld [vmem:[#allocation9 + $0x480] sm:$0xff] }
 0x509   :  { %v4012_v13 = vpack.c.bf16 %v4010_v62, %v4010_v62  ;;  %v4526_v62 = vld [vmem:[#allocation9 + $0x5b8] sm:$0xff]  ;;  %v4495_v11 = vld [vmem:[#allocation9 + $0x4c0] sm:$0xff] }
 0x50b   :  { %4180 = vmatprep.mubr.bf16.mxu0 %v4012_v13  ;;  %v4534_v13 = vld [vmem:[#allocation9 + $0x5f8] sm:$0xff] }
 0x50c   :  { %4181 = vmatmul.mubr.bf16.vlgmr.msra.gmra.mrb[32].mxu0 %v4011_v17  ;;  %v8967_v17 = vcombine.low %v4526_v62, %v4534_v13  ;;  %v8968_v19 = vcombine.high %v4526_v62, %v4534_v13  ;;  %v4503_v62 = vld [vmem:[#allocation9 + $0x500] sm:$0xff] }
 0x50d   :  { %6251 = vmatpush1.bf16.msra.mxu0 %v8791_v31  ;;  %v9000_v31 = vcombine.high %v4558_v55, %v4566_v29  ;;  %v4511_v13 = vld [vmem:[#allocation9 + $0x540] sm:$0xff] }
 0x50e   :  { %6252 = vmatprep.subr.bf16.mxu0 %v8808_v36  ;;  %v4535_v55 = vld [vmem:[#allocation9 + $0x600] sm:$0xff] }
 0x50f   :  { %v4543_v29 = vld [vmem:[#allocation9 + $0x640] sm:$0xff] }
 0x511   :  { %6253 = vmatpush1.bf16.msra.mxu0 %v8807_v34 }
 0x512   :  { %6254 = vmatprep.subr.bf16.mxu0 %v8824_v39  ;;  %v4367_v39 = vld [vmem:[#allocation9 + $0xc0] sm:$0xff] }
 0x515   :  { %6255 = vmatpush1.bf16.msra.mxu0 %v8823_v5  ;;  %v4359_v5 = vld [vmem:[#allocation9 + $0x80] sm:$0xff] }
 0x516   :  { %6256 = vmatprep.subr.bf16.mxu0 %v8840_v43  ;;  %v4375_v43 = vld [vmem:[#allocation9 + $0x100] sm:$0xff]  ;;  %v8793_v45 = vcombine.low %v4359_v5, %v4367_v39 }
 0x517   :  { %v8809_v7 = vcombine.low %v4375_v43, %v4383_v44 }
 0x519   :  { %6257 = vmatpush1.bf16.msra.mxu0 %v8839_v42  ;;  %v8794_v42 = vcombine.high %v4359_v5, %v4367_v39  ;;  %v4574_v39 = vld [vmem:[#allocation9 + $0x738] sm:$0xff] }
 0x51a   :  { %6258 = vmatprep.subr.bf16.mxu0 %v8856_v3  ;;  %v4391_v3 = vld [vmem:[#allocation9 + $0x180] sm:$0xff] }
 0x51b   :  { %v8825_v50 = vcombine.low %v4391_v3, %v4399_v48 }
 0x51d   :  { %6259 = vmatpush1.bf16.msra.mxu0 %v8855_v46  ;;  %v8810_v46 = vcombine.high %v4375_v43, %v4383_v44  ;;  %v4583_v44 = vld [vmem:[#allocation9 + $0x780] sm:$0xff] }
 0x51e   :  { %6260 = vmatprep.subr.bf16.mxu0 %v8872_v60  ;;  %v4407_v60 = vld [vmem:[#allocation9 + $0x200] sm:$0xff] }
 0x51f   :  { %v8841_v15 = vcombine.low %v4407_v60, %v4415_v49 }
 0x521   :  { %6261 = vmatpush1.bf16.msra.mxu0 %v8871_v47  ;;  %v8826_v47 = vcombine.high %v4391_v3, %v4399_v48  ;;  %v4590_v3 = vld [vmem:[#allocation9 + $0x7b8] sm:$0xff] }
 0x522   :  { %6262 = vmatprep.subr.bf16.mxu0 %v8888_v54  ;;  %v4423_v54 = vld [vmem:[#allocation9 + $0x280] sm:$0xff]  ;;  %v4598_v48 = vld [vmem:[#allocation9 + $0x7f8] sm:$0xff] }
 0x523   :  { %v8858_v58 = vcombine.high %v4423_v54, %v4431_v51 }
 0x525   :  { %6263 = vmatpush1.bf16.msra.mxu0 %v8887_v52  ;;  %v8842_v52 = vcombine.high %v4407_v60, %v4415_v49  ;;  %v9031_v60 = vcombine.low %v4590_v3, %v4598_v48  ;;  %v4344_v49 = vld [vmem:[#allocation9 + $0x8] sm:$0xff] }
 0x526   :  { %6264 = vmatprep.subr.bf16.mxu0 %v8904_v63 }
 0x529   :  { %6265 = vmatpush1.bf16.msra.mxu0 %v8903_v61  ;;  %v8857_v61 = vcombine.low %v4423_v54, %v4431_v51  ;;  %v4206_v51 = vld [vmem:[%s10814_s10] sm:$0x3] }
 0x52a   :  { %6266 = vmatprep.subr.bf16.mxu0 %v8920_v4  ;;  %v8890_v4 = vcombine.high %v4455_v0, %v4463_v1 }
 0x52d   :  { %6267 = vmatpush1.bf16.msra.mxu0 %v8919_v2 }
 0x52e   :  { %6268 = vmatprep.subr.bf16.mxu0 %v8936_v10  ;;  %v8906_v10 = vcombine.high %v4471_v57, %v4479_v8 }
 0x531   :  { %6269 = vmatpush1.bf16.msra.mxu0 %v8935_v9  ;;  %v8889_v9 = vcombine.low %v4455_v0, %v4463_v1 }
 0x532   :  { %6270 = vmatprep.subr.bf16.mxu0 %v8952_v12  ;;  %v8922_v12 = vcombine.high %v4487_v6, %v4495_v11 }
 0x535   :  { %6271 = vmatpush1.bf16.msra.mxu0 %v8951_v53  ;;  %v8905_v53 = vcombine.low %v4471_v57, %v4479_v8  ;;  %v4360_v57 = vld [vmem:[#allocation9 + $0x88] sm:$0xff] }
 0x536   :  { %6272 = vmatprep.subr.bf16.mxu0 %v8968_v19  ;;  %v8938_v19 = vcombine.high %v4503_v62, %v4511_v13  ;;  %v4368_v8 = vld [vmem:[#allocation9 + $0xc8] sm:$0xff] }
 0x539   :  { %6273 = vmatpush1.bf16.msra.mxu0 %v8967_v17  ;;  %v8921_v17 = vcombine.low %v4487_v6, %v4495_v11  ;;  %v8796_v6 = vcombine.high %v4360_v57, %v4368_v8  ;;  %v4376_v11 = vld [vmem:[#allocation9 + $0x108] sm:$0xff] }
 0x53a   :  { %6274 = vmatprep.subr.bf16.mxu0 %v8984_v14  ;;  %v8954_v14 = vcombine.high %v4519_v21, %v4527_v22 }
 0x53d   :  { %6275 = vmatpush1.bf16.msra.mxu0 %v8983_v25  ;;  %v8937_v25 = vcombine.low %v4503_v62, %v4511_v13  ;;  %v4392_v13 = vld [vmem:[#allocation9 + $0x188] sm:$0xff] }
 0x53e   :  { %6276 = vmatprep.subr.bf16.mxu0 %v9000_v31  ;;  %v8970_v31 = vcombine.high %v4535_v55, %v4543_v29 }
 0x541   :  { %6277 = vmatpush1.bf16.msra.mxu0 %v8999_v30  ;;  %v8953_v30 = vcombine.low %v4519_v21, %v4527_v22  ;;  %v4408_v22 = vld [vmem:[#allocation9 + $0x208] sm:$0xff] }
 0x5df   :  { %v9306_v32 = vpop.f32.mrb[32].mxu0 }
 0x5e0   :  { %v9307_v41 = vpop.f32.mrb[33].mxu0 }
 0x5e1   :  { %v9308_v34 = vadd.f32 %v9307_v41, %v9306_v32  ;;  %v9309_v36 = vpop.f32.mrb[34].mxu0  ;;  %v4551_v32 = vld [vmem:[#allocation9 + $0x680] sm:$0xff]  ;;  %v8969_v41 = vcombine.low %v4535_v55, %v4543_v29  ;;  %v4424_v29 = vld [vmem:[#allocation9 + $0x288] sm:$0xff] }
 0x5e2   :  { %v9310_v37 = vpop.f32.mrb[35].mxu0 }
 0x5e3   :  { %v4183_v18 = vadd.f32 %v9308_v34, %v8744_v33  ;;  %v4559_v33 = vld [vmem:[#allocation9 + $0x6c0] sm:$0xff] }
 0x5e4   :  { %v8986_v34 = vcombine.high %v4551_v32, %v4559_v33  ;;  %v8985_v36 = vcombine.low %v4551_v32, %v4559_v33  ;;  %v4567_v37 = vld [vmem:[#allocation9 + $0x700] sm:$0xff]  ;;  %v4440_v33 = vld [vmem:[#allocation9 + $0x308] sm:$0xff] }
 0x5e5   :  { %v4188_v56 = vmax.f32 %v4183_v18, 0.0  ;;  %v4575_v18 = vld [vmem:[#allocation9 + $0x740] sm:$0xff] }
 0x5e6   :  { %v9002_v5 = vcombine.high %v4567_v37, %v4575_v18 }
 0x5e7   :  { %v4189_v59 = vpack.c.bf16 %v4188_v56, %v4188_v56  ;;  %v4582_v56 = vld [vmem:[#allocation9 + $0x778] sm:$0xff] }
 0x5e8   :  { %v9015_v43 = vcombine.low %v4574_v39, %v4582_v56 }
 0x5e9   :  { %4331 = vmatmul.mubr.bf16.vlgmr.msra.gmra.mrb[4].mxu1 %v4189_v59  ;;  %v9001_v59 = vcombine.low %v4567_v37, %v4575_v18  ;;  %v4456_v37 = vld [vmem:[#allocation9 + $0x388] sm:$0xff] }
 0x5ea   :  { %5964 = vmatpush1.bf16.msra.mxu1 %v8777_v23  ;;  %v4439_v23 = vld [vmem:[#allocation9 + $0x300] sm:$0xff]  ;;  %v4464_v18 = vld [vmem:[#allocation9 + $0x3c8] sm:$0xff] }
 0x5eb   :  { %5965 = vmatprep.subr.bf16.mxu1 %v8794_v42  ;;  %v8874_v63 = vcombine.high %v4439_v23, %v4447_v27  ;;  %v8873_v2 = vcombine.low %v4439_v23, %v4447_v27  ;;  %v9016_v42 = vcombine.high %v4574_v39, %v4582_v56  ;;  %v8892_v39 = vcombine.high %v4456_v37, %v4464_v18  ;;  %v4472_v56 = vld [vmem:[#allocation9 + $0x408] sm:$0xff] }
 0x5ed   :  { %6278 = vmatprep.subr.bf16.mxu0 %v9016_v42  ;;  %v8891_v42 = vcombine.low %v4456_v37, %v4464_v18 }
 0x5ee   :  { %5966 = vmatpush1.bf16.msra.mxu1 %v8793_v45  ;;  %v4591_v45 = vld [vmem:[#allocation9 + $0x7c0] sm:$0xff]  ;;  %6279 = vmatpush1.bf16.msra.mxu0 %v9015_v43 }
 0x5ef   :  { %5967 = vmatprep.subr.bf16.mxu1 %v8810_v46  ;;  %v9018_v46 = vcombine.high %v4583_v44, %v4591_v45 }
 0x5f2   :  { %5968 = vmatpush1.bf16.msra.mxu1 %v8809_v7  ;;  %v9017_v7 = vcombine.low %v4583_v44, %v4591_v45  ;;  %v4488_v44 = vld [vmem:[#allocation9 + $0x488] sm:$0xff] }
 0x5f3   :  { %5969 = vmatprep.subr.bf16.mxu1 %v8826_v47  ;;  %v9032_v47 = vcombine.high %v4590_v3, %v4598_v48  ;;  %v4496_v45 = vld [vmem:[#allocation9 + $0x4c8] sm:$0xff] }
 0x5f4   :  { %v8924_v3 = vcombine.high %v4488_v44, %v4496_v45  ;;  %v4504_v48 = vld [vmem:[#allocation9 + $0x508] sm:$0xff] }
 0x5f5   :  { %6280 = vmatprep.subr.bf16.mxu0 %v9032_v47  ;;  %v8923_v47 = vcombine.low %v4488_v44, %v4496_v45 }
 0x5f6   :  { %5970 = vmatpush1.bf16.msra.mxu1 %v8825_v50  ;;  %v4352_v50 = vld [vmem:[#allocation9 + $0x48] sm:$0xff]  ;;  %6281 = vmatpush1.bf16.msra.mxu0 %v9031_v60 }
 0x5f7   :  { %5971 = vmatprep.subr.bf16.mxu1 %v8842_v52  ;;  %v8780_v52 = vcombine.high %v4344_v49, %v4352_v50  ;;  %v8779_v54 = vcombine.low %v4344_v49, %v4352_v50  ;;  %v4520_v49 = vld [vmem:[#allocation9 + $0x588] sm:$0xff] }
 0x5f8   :  { %v4528_v50 = vld [vmem:[#allocation9 + $0x5c8] sm:$0xff] }
 0x5fa   :  { %5972 = vmatpush1.bf16.msra.mxu1 %v8841_v15  ;;  %v4211_v15 = vrot.slane %v4206_v51, %v10575_v20 }
 0x5fb   :  { %5973 = vmatprep.subr.bf16.mxu1 %v8858_v58  ;;  %v4215_v58 = vrot.slane %v4206_v51, %v10559_v38  ;;  %v4536_v51 = vld [vmem:[#allocation9 + $0x608] sm:$0xff] }
 0x5fe   :  { %5974 = vmatpush1.bf16.msra.mxu1 %v8857_v61 }
 0x5ff   :  { %5975 = vmatprep.subr.bf16.mxu1 %v8874_v63 }
 0x602   :  { %5976 = vmatpush1.bf16.msra.mxu1 %v8873_v2 }
 0x603   :  { %5977 = vmatprep.subr.bf16.mxu1 %v8890_v4 }
 0x606   :  { %5978 = vmatpush1.bf16.msra.mxu1 %v8889_v9 }
 0x607   :  { %5979 = vmatprep.subr.bf16.mxu1 %v8906_v10 }
 0x60a   :  { %5980 = vmatpush1.bf16.msra.mxu1 %v8905_v53  ;;  %v4384_v53 = vld [vmem:[#allocation9 + $0x148] sm:$0xff] }
 0x60b   :  { %5981 = vmatprep.subr.bf16.mxu1 %v8922_v12  ;;  %v8795_v12 = vcombine.low %v4360_v57, %v4368_v8  ;;  %v8812_v62 = vcombine.high %v4376_v11, %v4384_v53  ;;  %v4584_v8 = vld [vmem:[#allocation9 + $0x788] sm:$0xff] }
 0x60e   :  { %5982 = vmatpush1.bf16.msra.mxu1 %v8921_v17  ;;  %v4400_v17 = vld [vmem:[#allocation9 + $0x1c8] sm:$0xff] }
 0x60f   :  { %5983 = vmatprep.subr.bf16.mxu1 %v8938_v19  ;;  %v8811_v19 = vcombine.low %v4376_v11, %v4384_v53  ;;  %v8828_v21 = vcombine.high %v4392_v13, %v4400_v17 }
 0x612   :  { %5984 = vmatpush1.bf16.msra.mxu1 %v8937_v25  ;;  %v4416_v25 = vld [vmem:[#allocation9 + $0x248] sm:$0xff] }
 0x613   :  { %5985 = vmatprep.subr.bf16.mxu1 %v8954_v14  ;;  %v8827_v14 = vcombine.low %v4392_v13, %v4400_v17  ;;  %v8844_v55 = vcombine.high %v4408_v22, %v4416_v25 }
 0x616   :  { %5986 = vmatpush1.bf16.msra.mxu1 %v8953_v30  ;;  %v4432_v30 = vld [vmem:[#allocation9 + $0x2c8] sm:$0xff] }
 0x617   :  { %5987 = vmatprep.subr.bf16.mxu1 %v8970_v31  ;;  %v8843_v31 = vcombine.low %v4408_v22, %v4416_v25  ;;  %v8860_v32 = vcombine.high %v4424_v29, %v4432_v30 }
 0x61a   :  { %5988 = vmatpush1.bf16.msra.mxu1 %v8969_v41  ;;  %v4448_v41 = vld [vmem:[#allocation9 + $0x348] sm:$0xff] }
 0x61b   :  { %5989 = vmatprep.subr.bf16.mxu1 %v8986_v34  ;;  %v8859_v34 = vcombine.low %v4424_v29, %v4432_v30 }
 0x61e   :  { %5990 = vmatpush1.bf16.msra.mxu1 %v8985_v36  ;;  %v8876_v36 = vcombine.high %v4440_v33, %v4448_v41 }
 0x61f   :  { %5991 = vmatprep.subr.bf16.mxu1 %v9002_v5  ;;  %v8875_v5 = vcombine.low %v4440_v33, %v4448_v41 }
 0x622   :  { %5992 = vmatpush1.bf16.msra.mxu1 %v9001_v59  ;;  %v4480_v59 = vld [vmem:[#allocation9 + $0x448] sm:$0xff] }
 0x623   :  { %5993 = vmatprep.subr.bf16.mxu1 %v9018_v46  ;;  %v8908_v43 = vcombine.high %v4472_v56, %v4480_v59  ;;  %v8907_v46 = vcombine.low %v4472_v56, %v4480_v59 }
 0x626   :  { %5994 = vmatpush1.bf16.msra.mxu1 %v9017_v7  ;;  %v4512_v7 = vld [vmem:[#allocation9 + $0x548] sm:$0xff] }
 0x627   :  { %6004 = vmatprep.subr.bf16.mxu1 %v8780_v52  ;;  %v8940_v60 = vcombine.high %v4504_v48, %v4512_v7  ;;  %v8939_v52 = vcombine.low %v4504_v48, %v4512_v7 }
 0x6bc   :  { %v4332_v23 = vpop.f32.mrb[4].mxu1 }
 0x6bd   :  { %v4333_v27 = vadd.f32 %v4332_v23, %v4211_v15  ;;  %v4334_v61 = vpop.f32.mrb[5].mxu1  ;;  %v4544_v15 = vld [vmem:[#allocation9 + $0x648] sm:$0xff] }
 0x6be   :  { %v4335_v63 = vadd.f32 %v4334_v61, %v4215_v58  ;;  %v4336_v0 = vpop.f32.mrb[6].mxu1  ;;  %v8955_v58 = vcombine.low %v4520_v49, %v4528_v50  ;;  %v8972_v23 = vcombine.high %v4536_v51, %v4544_v15  ;;  %v4560_v61 = vld [vmem:[#allocation9 + $0x6c8] sm:$0xff] }
 0x6bf   :  { %v4339_v1 = vmax.f32 %v4333_v27, 0.0  ;;  %v4337_v2 = vpop.f32.mrb[7].mxu1  ;;  %v4552_v27 = vld [vmem:[#allocation9 + $0x688] sm:$0xff] }
 0x6c0   :  { %v4340_v4 = vmax.f32 %v4335_v63, 0.0  ;;  %v8971_v63 = vcombine.low %v4536_v51, %v4544_v15  ;;  %v8988_v0 = vcombine.high %v4552_v27, %v4560_v61  ;;  %v4576_v2 = vld [vmem:[#allocation9 + $0x748] sm:$0xff] }
 0x6c1   :  { %v10688_v10 = vpack.c.bf16 %v4339_v1, %v4339_v1  ;;  %v4568_v1 = vld [vmem:[#allocation9 + $0x708] sm:$0xff] }
 0x6c2   :  { %v10686_v9 = vpack.c.bf16 %v4340_v4, %v4340_v4  ;;  %v8987_v4 = vcombine.low %v4552_v27, %v4560_v61  ;;  %v9004_v57 = vcombine.high %v4568_v1, %v4576_v2  ;;  %v9003_v11 = vcombine.low %v4568_v1, %v4576_v2 }
 0x6c4   :  { %5995 = vmatprep.mubr.bf16.mxu1 %v10686_v9  ;;  %6282 = vmatprep.mubr.bf16.mxu0 %v10686_v9 }
 0x6c5   :  { %5996 = vmatmul.mubr.bf16.vlgmr.msra.gmra.mrb[8].mxu1 %v10688_v10  ;;  %6283 = vmatmul.mubr.bf16.vlgmr.msra.gmra.mrb[36].mxu0 %v10688_v10 }
 0x6c6   :  { %6005 = vmatpush1.bf16.msra.mxu1 %v8779_v54  ;;  %6036 = vmatprep.mubr.bf16.mxu1 %v10686_v9  ;;  %v8956_v54 = vcombine.high %v4520_v49, %v4528_v50 }
 0x6c7   :  { %6006 = vmatprep.subr.bf16.mxu1 %v8796_v6  ;;  %v4592_v6 = vld [vmem:[#allocation9 + $0x7c8] sm:$0xff] }
 0x6c8   :  { %v9020_v53 = vcombine.high %v4584_v8, %v4592_v6  ;;  %v9019_v13 = vcombine.low %v4584_v8, %v4592_v6 }
 0x6ca   :  { %6007 = vmatpush1.bf16.msra.mxu1 %v8795_v12  ;;  %v4345_v12 = vld [vmem:[#allocation9 + $0x10] sm:$0xff] }
 0x6cb   :  { %6008 = vmatprep.subr.bf16.mxu1 %v8812_v62  ;;  %v4353_v62 = vld [vmem:[#allocation9 + $0x50] sm:$0xff] }
 0x6cc   :  { %v8782_v17 = vcombine.high %v4345_v12, %v4353_v62  ;;  %v8781_v22 = vcombine.low %v4345_v12, %v4353_v62 }
 0x6ce   :  { %6009 = vmatpush1.bf16.msra.mxu1 %v8811_v19  ;;  %v4361_v19 = vld [vmem:[#allocation9 + $0x90] sm:$0xff] }
 0x6cf   :  { %6010 = vmatprep.subr.bf16.mxu1 %v8828_v21  ;;  %v4369_v21 = vld [vmem:[#allocation9 + $0xd0] sm:$0xff] }
 0x6d0   :  { %v8798_v25 = vcombine.high %v4361_v19, %v4369_v21  ;;  %v8797_v29 = vcombine.low %v4361_v19, %v4369_v21 }
 0x6d2   :  { %6011 = vmatpush1.bf16.msra.mxu1 %v8827_v14  ;;  %v4377_v14 = vld [vmem:[#allocation9 + $0x110] sm:$0xff] }
 0x6d3   :  { %6012 = vmatprep.subr.bf16.mxu1 %v8844_v55  ;;  %v4385_v55 = vld [vmem:[#allocation9 + $0x150] sm:$0xff] }
 0x6d4   :  { %v8814_v30 = vcombine.high %v4377_v14, %v4385_v55  ;;  %v8813_v33 = vcombine.low %v4377_v14, %v4385_v55 }
 0x6d6   :  { %6013 = vmatpush1.bf16.msra.mxu1 %v8843_v31  ;;  %v4393_v31 = vld [vmem:[#allocation9 + $0x190] sm:$0xff] }
 0x6d7   :  { %6014 = vmatprep.subr.bf16.mxu1 %v8860_v32  ;;  %v4401_v32 = vld [vmem:[#allocation9 + $0x1d0] sm:$0xff] }
 0x6d8   :  { %v8830_v41 = vcombine.high %v4393_v31, %v4401_v32  ;;  %v8829_v37 = vcombine.low %v4393_v31, %v4401_v32 }
 0x6da   :  { %6015 = vmatpush1.bf16.msra.mxu1 %v8859_v34  ;;  %v4409_v34 = vld [vmem:[#allocation9 + $0x210] sm:$0xff] }
 0x6db   :  { %6016 = vmatprep.subr.bf16.mxu1 %v8876_v36  ;;  %v4417_v36 = vld [vmem:[#allocation9 + $0x250] sm:$0xff] }
 0x6dc   :  { %v8846_v18 = vcombine.high %v4409_v34, %v4417_v36  ;;  %v8845_v56 = vcombine.low %v4409_v34, %v4417_v36 }
 0x6de   :  { %6017 = vmatpush1.bf16.msra.mxu1 %v8875_v5  ;;  %v4425_v5 = vld [vmem:[#allocation9 + $0x290] sm:$0xff] }
 0x6df   :  { %6018 = vmatprep.subr.bf16.mxu1 %v8892_v39  ;;  %v4433_v39 = vld [vmem:[#allocation9 + $0x2d0] sm:$0xff] }
 0x6e0   :  { %v8862_v59 = vcombine.high %v4425_v5, %v4433_v39  ;;  %v8861_v44 = vcombine.low %v4425_v5, %v4433_v39 }
 0x6e2   :  { %6019 = vmatpush1.bf16.msra.mxu1 %v8891_v42  ;;  %v4441_v42 = vld [vmem:[#allocation9 + $0x310] sm:$0xff] }
 0x6e3   :  { %6020 = vmatprep.subr.bf16.mxu1 %v8908_v43  ;;  %v4449_v43 = vld [vmem:[#allocation9 + $0x350] sm:$0xff] }
 0x6e4   :  { %v8878_v45 = vcombine.high %v4441_v42, %v4449_v43  ;;  %v8877_v48 = vcombine.low %v4441_v42, %v4449_v43 }
 0x6e6   :  { %6021 = vmatpush1.bf16.msra.mxu1 %v8907_v46  ;;  %v4457_v46 = vld [vmem:[#allocation9 + $0x390] sm:$0xff] }
 0x6e7   :  { %6022 = vmatprep.subr.bf16.mxu1 %v8924_v3  ;;  %v4465_v3 = vld [vmem:[#allocation9 + $0x3d0] sm:$0xff] }
 0x6e8   :  { %v8894_v7 = vcombine.high %v4457_v46, %v4465_v3  ;;  %v8893_v49 = vcombine.low %v4457_v46, %v4465_v3 }
 0x6ea   :  { %6023 = vmatpush1.bf16.msra.mxu1 %v8923_v47  ;;  %v4473_v47 = vld [vmem:[#allocation9 + $0x410] sm:$0xff] }
 0x6eb   :  { %6024 = vmatprep.subr.bf16.mxu1 %v8940_v60  ;;  %v4481_v60 = vld [vmem:[#allocation9 + $0x450] sm:$0xff] }
 0x6ec   :  { %v8910_v50 = vcombine.high %v4473_v47, %v4481_v60  ;;  %v8909_v51 = vcombine.low %v4473_v47, %v4481_v60 }
 0x6ee   :  { %6025 = vmatpush1.bf16.msra.mxu1 %v8939_v52  ;;  %v4489_v52 = vld [vmem:[#allocation9 + $0x490] sm:$0xff] }
 0x6ef   :  { %6026 = vmatprep.subr.bf16.mxu1 %v8956_v54  ;;  %v4497_v54 = vld [vmem:[#allocation9 + $0x4d0] sm:$0xff] }
 0x6f0   :  { %v8926_v15 = vcombine.high %v4489_v52, %v4497_v54  ;;  %v8925_v27 = vcombine.low %v4489_v52, %v4497_v54 }
 0x6f2   :  { %6027 = vmatpush1.bf16.msra.mxu1 %v8955_v58  ;;  %v4505_v58 = vld [vmem:[#allocation9 + $0x510] sm:$0xff] }
 0x6f3   :  { %6028 = vmatprep.subr.bf16.mxu1 %v8972_v23  ;;  %v4513_v23 = vld [vmem:[#allocation9 + $0x550] sm:$0xff] }
 0x6f4   :  { %v8942_v61 = vcombine.high %v4505_v58, %v4513_v23  ;;  %v8941_v1 = vcombine.low %v4505_v58, %v4513_v23 }
 0x6f6   :  { %6029 = vmatpush1.bf16.msra.mxu1 %v8971_v63  ;;  %v4521_v63 = vld [vmem:[#allocation9 + $0x590] sm:$0xff] }
 0x6f7   :  { %6030 = vmatprep.subr.bf16.mxu1 %v8988_v0  ;;  %v4529_v0 = vld [vmem:[#allocation9 + $0x5d0] sm:$0xff] }
 0x6f8   :  { %v8958_v2 = vcombine.high %v4521_v63, %v4529_v0  ;;  %v8957_v8 = vcombine.low %v4521_v63, %v4529_v0 }
 0x6fa   :  { %6031 = vmatpush1.bf16.msra.mxu1 %v8987_v4  ;;  %v4537_v4 = vld [vmem:[#allocation9 + $0x610] sm:$0xff] }
 0x6fb   :  { %6032 = vmatprep.subr.bf16.mxu1 %v9004_v57  ;;  %v4545_v57 = vld [vmem:[#allocation9 + $0x650] sm:$0xff] }
 0x6fc   :  { %v8974_v6 = vcombine.high %v4537_v4, %v4545_v57  ;;  %v8973_v12 = vcombine.low %v4537_v4, %v4545_v57 }
 0x6fe   :  { %6033 = vmatpush1.bf16.msra.mxu1 %v9003_v11  ;;  %v4553_v11 = vld [vmem:[#allocation9 + $0x690] sm:$0xff] }
 0x6ff   :  { %6034 = vmatprep.subr.bf16.mxu1 %v9020_v53  ;;  %v4561_v53 = vld [vmem:[#allocation9 + $0x6d0] sm:$0xff] }
 0x700   :  { %v8990_v62 = vcombine.high %v4553_v11, %v4561_v53  ;;  %v8989_v19 = vcombine.low %v4553_v11, %v4561_v53 }
 0x702   :  { %6035 = vmatpush1.bf16.msra.mxu1 %v9019_v13  ;;  %v4569_v13 = vld [vmem:[#allocation9 + $0x710] sm:$0xff] }
 0x703   :  { %6045 = vmatprep.subr.bf16.mxu1 %v8782_v17  ;;  %v4577_v17 = vld [vmem:[#allocation9 + $0x750] sm:$0xff] }
 0x704   :  { %v9006_v21 = vcombine.high %v4569_v13, %v4577_v17  ;;  %v9005_v14 = vcombine.low %v4569_v13, %v4577_v17 }
 0x705   :  { %6037 = vmatmul.mubr.bf16.vlgmr.msra.gmra.mrb[12].mxu1 %v10688_v10 }
 0x706   :  { %6046 = vmatpush1.bf16.msra.mxu1 %v8781_v22  ;;  %6077 = vmatprep.mubr.bf16.mxu1 %v10686_v9  ;;  %v4585_v22 = vld [vmem:[#allocation9 + $0x790] sm:$0xff] }
 0x707   :  { %6047 = vmatprep.subr.bf16.mxu1 %v8798_v25  ;;  %v4593_v25 = vld [vmem:[#allocation9 + $0x7d0] sm:$0xff] }
 0x708   :  { %v9022_v55 = vcombine.high %v4585_v22, %v4593_v25  ;;  %v9021_v31 = vcombine.low %v4585_v22, %v4593_v25 }
 0x70a   :  { %6048 = vmatpush1.bf16.msra.mxu1 %v8797_v29  ;;  %v4346_v29 = vld [vmem:[#allocation9 + $0x18] sm:$0xff] }
 0x70b   :  { %6049 = vmatprep.subr.bf16.mxu1 %v8814_v30  ;;  %v4354_v30 = vld [vmem:[#allocation9 + $0x58] sm:$0xff] }
 0x70c   :  { %v8784_v32 = vcombine.high %v4346_v29, %v4354_v30  ;;  %v8783_v34 = vcombine.low %v4346_v29, %v4354_v30 }
 0x70e   :  { %6050 = vmatpush1.bf16.msra.mxu1 %v8813_v33  ;;  %v4362_v33 = vld [vmem:[#allocation9 + $0x98] sm:$0xff] }
 0x70f   :  { %6051 = vmatprep.subr.bf16.mxu1 %v8830_v41  ;;  %v4370_v41 = vld [vmem:[#allocation9 + $0xd8] sm:$0xff] }
 0x710   :  { %v8800_v36 = vcombine.high %v4362_v33, %v4370_v41  ;;  %v8799_v5 = vcombine.low %v4362_v33, %v4370_v41 }
 0x712   :  { %6052 = vmatpush1.bf16.msra.mxu1 %v8829_v37  ;;  %v4378_v37 = vld [vmem:[#allocation9 + $0x118] sm:$0xff] }
 0x713   :  { %6053 = vmatprep.subr.bf16.mxu1 %v8846_v18  ;;  %v4386_v18 = vld [vmem:[#allocation9 + $0x158] sm:$0xff] }
 0x714   :  { %v8816_v39 = vcombine.high %v4378_v37, %v4386_v18  ;;  %v8815_v42 = vcombine.low %v4378_v37, %v4386_v18 }
 0x716   :  { %6054 = vmatpush1.bf16.msra.mxu1 %v8845_v56  ;;  %v4394_v56 = vld [vmem:[#allocation9 + $0x198] sm:$0xff] }
 0x717   :  { %6055 = vmatprep.subr.bf16.mxu1 %v8862_v59  ;;  %v4402_v59 = vld [vmem:[#allocation9 + $0x1d8] sm:$0xff] }
 0x718   :  { %v8832_v43 = vcombine.high %v4394_v56, %v4402_v59  ;;  %v8831_v46 = vcombine.low %v4394_v56, %v4402_v59 }
 0x71a   :  { %6056 = vmatpush1.bf16.msra.mxu1 %v8861_v44  ;;  %v4410_v44 = vld [vmem:[#allocation9 + $0x218] sm:$0xff] }
 0x71b   :  { %6057 = vmatprep.subr.bf16.mxu1 %v8878_v45  ;;  %v4418_v45 = vld [vmem:[#allocation9 + $0x258] sm:$0xff] }
 0x71c   :  { %v8848_v3 = vcombine.high %v4410_v44, %v4418_v45  ;;  %v8847_v47 = vcombine.low %v4410_v44, %v4418_v45 }
 0x71e   :  { %6058 = vmatpush1.bf16.msra.mxu1 %v8877_v48  ;;  %v4426_v48 = vld [vmem:[#allocation9 + $0x298] sm:$0xff] }
 0x71f   :  { %6059 = vmatprep.subr.bf16.mxu1 %v8894_v7  ;;  %v4434_v7 = vld [vmem:[#allocation9 + $0x2d8] sm:$0xff] }
 0x720   :  { %v8864_v60 = vcombine.high %v4426_v48, %v4434_v7  ;;  %v8863_v52 = vcombine.low %v4426_v48, %v4434_v7 }
 0x722   :  { %6060 = vmatpush1.bf16.msra.mxu1 %v8893_v49  ;;  %v4442_v49 = vld [vmem:[#allocation9 + $0x318] sm:$0xff] }
 0x723   :  { %6061 = vmatprep.subr.bf16.mxu1 %v8910_v50  ;;  %v4450_v50 = vld [vmem:[#allocation9 + $0x358] sm:$0xff] }
 0x724   :  { %v8880_v54 = vcombine.high %v4442_v49, %v4450_v50  ;;  %v8879_v58 = vcombine.low %v4442_v49, %v4450_v50 }
 0x726   :  { %6062 = vmatpush1.bf16.msra.mxu1 %v8909_v51  ;;  %v4458_v51 = vld [vmem:[#allocation9 + $0x398] sm:$0xff] }
 0x727   :  { %6063 = vmatprep.subr.bf16.mxu1 %v8926_v15  ;;  %v4466_v15 = vld [vmem:[#allocation9 + $0x3d8] sm:$0xff] }
 0x728   :  { %v8896_v23 = vcombine.high %v4458_v51, %v4466_v15  ;;  %v8895_v63 = vcombine.low %v4458_v51, %v4466_v15 }
 0x72a   :  { %6064 = vmatpush1.bf16.msra.mxu1 %v8925_v27  ;;  %v4474_v27 = vld [vmem:[#allocation9 + $0x418] sm:$0xff] }
 0x72b   :  { %6065 = vmatprep.subr.bf16.mxu1 %v8942_v61  ;;  %v4482_v61 = vld [vmem:[#allocation9 + $0x458] sm:$0xff] }
 0x72c   :  { %v8912_v0 = vcombine.high %v4474_v27, %v4482_v61  ;;  %v8911_v4 = vcombine.low %v4474_v27, %v4482_v61 }
 0x72e   :  { %6066 = vmatpush1.bf16.msra.mxu1 %v8941_v1  ;;  %v4490_v1 = vld [vmem:[#allocation9 + $0x498] sm:$0xff] }
 0x72f   :  { %6067 = vmatprep.subr.bf16.mxu1 %v8958_v2  ;;  %v4498_v2 = vld [vmem:[#allocation9 + $0x4d8] sm:$0xff] }
 0x730   :  { %v8928_v57 = vcombine.high %v4490_v1, %v4498_v2  ;;  %v8927_v11 = vcombine.low %v4490_v1, %v4498_v2 }
 0x732   :  { %6068 = vmatpush1.bf16.msra.mxu1 %v8957_v8  ;;  %v4506_v8 = vld [vmem:[#allocation9 + $0x518] sm:$0xff] }
 0x733   :  { %6069 = vmatprep.subr.bf16.mxu1 %v8974_v6  ;;  %v4514_v6 = vld [vmem:[#allocation9 + $0x558] sm:$0xff] }
 0x734   :  { %v8944_v53 = vcombine.high %v4506_v8, %v4514_v6  ;;  %v8943_v13 = vcombine.low %v4506_v8, %v4514_v6  ;;  %v4459_v8 = vld [vmem:[#allocation9 + $0x3a0] sm:$0xff] }
 0x735   :  { %v4467_v6 = vld [vmem:[#allocation9 + $0x3e0] sm:$0xff] }
 0x736   :  { %6070 = vmatpush1.bf16.msra.mxu1 %v8973_v12  ;;  %v4522_v12 = vld [vmem:[#allocation9 + $0x598] sm:$0xff] }
 0x737   :  { %6071 = vmatprep.subr.bf16.mxu1 %v8990_v62  ;;  %v4530_v62 = vld [vmem:[#allocation9 + $0x5d8] sm:$0xff] }
 0x738   :  { %v8960_v17 = vcombine.high %v4522_v12, %v4530_v62  ;;  %v8959_v22 = vcombine.low %v4522_v12, %v4530_v62 }
 0x73a   :  { %6072 = vmatpush1.bf16.msra.mxu1 %v8989_v19  ;;  %v4538_v19 = vld [vmem:[#allocation9 + $0x618] sm:$0xff] }
 0x73b   :  { %6073 = vmatprep.subr.bf16.mxu1 %v9006_v21  ;;  %v4546_v21 = vld [vmem:[#allocation9 + $0x658] sm:$0xff] }
 0x73c   :  { %v8976_v25 = vcombine.high %v4538_v19, %v4546_v21  ;;  %v8975_v29 = vcombine.low %v4538_v19, %v4546_v21  ;;  %v8898_v21 = vcombine.high %v4459_v8, %v4467_v6 }
 0x73e   :  { %6074 = vmatpush1.bf16.msra.mxu1 %v9005_v14  ;;  %v4554_v14 = vld [vmem:[#allocation9 + $0x698] sm:$0xff] }
 0x73f   :  { %6075 = vmatprep.subr.bf16.mxu1 %v9022_v55  ;;  %v4562_v55 = vld [vmem:[#allocation9 + $0x6d8] sm:$0xff] }
 0x740   :  { %v8992_v30 = vcombine.high %v4554_v14, %v4562_v55  ;;  %v8991_v33 = vcombine.low %v4554_v14, %v4562_v55  ;;  %v8897_v14 = vcombine.low %v4459_v8, %v4467_v6 }
 0x742   :  { %6076 = vmatpush1.bf16.msra.mxu1 %v9021_v31  ;;  %v4570_v31 = vld [vmem:[#allocation9 + $0x718] sm:$0xff] }
 0x743   :  { %6086 = vmatprep.subr.bf16.mxu1 %v8784_v32  ;;  %v4578_v32 = vld [vmem:[#allocation9 + $0x758] sm:$0xff] }
 0x744   :  { %v9008_v41 = vcombine.high %v4570_v31, %v4578_v32  ;;  %v9007_v37 = vcombine.low %v4570_v31, %v4578_v32 }
 0x745   :  { %6078 = vmatmul.mubr.bf16.vlgmr.msra.gmra.mrb[16].mxu1 %v10688_v10 }
 0x746   :  { %6087 = vmatpush1.bf16.msra.mxu1 %v8783_v34  ;;  %6118 = vmatprep.mubr.bf16.mxu1 %v10686_v9  ;;  %v4586_v34 = vld [vmem:[#allocation9 + $0x798] sm:$0xff] }
 0x747   :  { %6088 = vmatprep.subr.bf16.mxu1 %v8800_v36  ;;  %v4594_v36 = vld [vmem:[#allocation9 + $0x7d8] sm:$0xff] }
 0x748   :  { %v9024_v18 = vcombine.high %v4586_v34, %v4594_v36  ;;  %v9023_v56 = vcombine.low %v4586_v34, %v4594_v36 }
 0x74a   :  { %6089 = vmatpush1.bf16.msra.mxu1 %v8799_v5  ;;  %v4347_v5 = vld [vmem:[#allocation9 + $0x20] sm:$0xff] }
 0x74b   :  { %6090 = vmatprep.subr.bf16.mxu1 %v8816_v39  ;;  %v4355_v39 = vld [vmem:[#allocation9 + $0x60] sm:$0xff] }
 0x74c   :  { %v8786_v59 = vcombine.high %v4347_v5, %v4355_v39  ;;  %v8785_v44 = vcombine.low %v4347_v5, %v4355_v39 }
 0x74e   :  { %6091 = vmatpush1.bf16.msra.mxu1 %v8815_v42  ;;  %v4363_v42 = vld [vmem:[#allocation9 + $0xa0] sm:$0xff] }
 0x74f   :  { %6092 = vmatprep.subr.bf16.mxu1 %v8832_v43  ;;  %v4371_v43 = vld [vmem:[#allocation9 + $0xe0] sm:$0xff] }
 0x750   :  { %v8802_v45 = vcombine.high %v4363_v42, %v4371_v43  ;;  %v8801_v48 = vcombine.low %v4363_v42, %v4371_v43 }
 0x752   :  { %6093 = vmatpush1.bf16.msra.mxu1 %v8831_v46  ;;  %v4379_v46 = vld [vmem:[#allocation9 + $0x120] sm:$0xff] }
 0x753   :  { %6094 = vmatprep.subr.bf16.mxu1 %v8848_v3  ;;  %v4387_v3 = vld [vmem:[#allocation9 + $0x160] sm:$0xff] }
 0x754   :  { %v8818_v7 = vcombine.high %v4379_v46, %v4387_v3  ;;  %v8817_v49 = vcombine.low %v4379_v46, %v4387_v3 }
 0x756   :  { %6095 = vmatpush1.bf16.msra.mxu1 %v8847_v47  ;;  %v4395_v47 = vld [vmem:[#allocation9 + $0x1a0] sm:$0xff] }
 0x757   :  { %6096 = vmatprep.subr.bf16.mxu1 %v8864_v60  ;;  %v4403_v60 = vld [vmem:[#allocation9 + $0x1e0] sm:$0xff] }
 0x758   :  { %v8834_v50 = vcombine.high %v4395_v47, %v4403_v60  ;;  %v8833_v51 = vcombine.low %v4395_v47, %v4403_v60 }
 0x75a   :  { %6097 = vmatpush1.bf16.msra.mxu1 %v8863_v52  ;;  %v4411_v52 = vld [vmem:[#allocation9 + $0x220] sm:$0xff] }
 0x75b   :  { %6098 = vmatprep.subr.bf16.mxu1 %v8880_v54  ;;  %v4419_v54 = vld [vmem:[#allocation9 + $0x260] sm:$0xff] }
 0x75c   :  { %v8850_v15 = vcombine.high %v4411_v52, %v4419_v54  ;;  %v8849_v27 = vcombine.low %v4411_v52, %v4419_v54 }
 0x75e   :  { %6099 = vmatpush1.bf16.msra.mxu1 %v8879_v58  ;;  %v4427_v58 = vld [vmem:[#allocation9 + $0x2a0] sm:$0xff] }
 0x75f   :  { %6100 = vmatprep.subr.bf16.mxu1 %v8896_v23  ;;  %v4435_v23 = vld [vmem:[#allocation9 + $0x2e0] sm:$0xff] }
 0x760   :  { %v8866_v61 = vcombine.high %v4427_v58, %v4435_v23  ;;  %v8865_v1 = vcombine.low %v4427_v58, %v4435_v23 }
 0x762   :  { %6101 = vmatpush1.bf16.msra.mxu1 %v8895_v63  ;;  %v4443_v63 = vld [vmem:[#allocation9 + $0x320] sm:$0xff] }
 0x763   :  { %6102 = vmatprep.subr.bf16.mxu1 %v8912_v0  ;;  %v4451_v0 = vld [vmem:[#allocation9 + $0x360] sm:$0xff] }
 0x764   :  { %v8882_v2 = vcombine.high %v4443_v63, %v4451_v0 }
 0x766   :  { %6103 = vmatpush1.bf16.msra.mxu1 %v8911_v4 }
 0x767   :  { %6104 = vmatprep.subr.bf16.mxu1 %v8928_v57 }
 0x76a   :  { %6105 = vmatpush1.bf16.msra.mxu1 %v8927_v11 }
 0x76b   :  { %6106 = vmatprep.subr.bf16.mxu1 %v8944_v53 }
 0x76e   :  { %6107 = vmatpush1.bf16.msra.mxu1 %v8943_v13  ;;  %v8881_v13 = vcombine.low %v4443_v63, %v4451_v0 }
 0x76f   :  { %6108 = vmatprep.subr.bf16.mxu1 %v8960_v17 }
 0x772   :  { %6109 = vmatpush1.bf16.msra.mxu1 %v8959_v22  ;;  %v4475_v22 = vld [vmem:[#allocation9 + $0x420] sm:$0xff] }
 0x773   :  { %6110 = vmatprep.subr.bf16.mxu1 %v8976_v25  ;;  %v4483_v25 = vld [vmem:[#allocation9 + $0x460] sm:$0xff] }
 0x774   :  { %v8914_v55 = vcombine.high %v4475_v22, %v4483_v25  ;;  %v8913_v31 = vcombine.low %v4475_v22, %v4483_v25 }
 0x776   :  { %6111 = vmatpush1.bf16.msra.mxu1 %v8975_v29  ;;  %v4491_v29 = vld [vmem:[#allocation9 + $0x4a0] sm:$0xff] }
 0x777   :  { %6112 = vmatprep.subr.bf16.mxu1 %v8992_v30  ;;  %v4499_v30 = vld [vmem:[#allocation9 + $0x4e0] sm:$0xff] }
 0x778   :  { %v8930_v32 = vcombine.high %v4491_v29, %v4499_v30  ;;  %v8929_v34 = vcombine.low %v4491_v29, %v4499_v30 }
 0x77a   :  { %6113 = vmatpush1.bf16.msra.mxu1 %v8991_v33  ;;  %v4507_v33 = vld [vmem:[#allocation9 + $0x520] sm:$0xff] }
 0x77b   :  { %6114 = vmatprep.subr.bf16.mxu1 %v9008_v41  ;;  %v4515_v41 = vld [vmem:[#allocation9 + $0x560] sm:$0xff] }
 0x77c   :  { %v8946_v36 = vcombine.high %v4507_v33, %v4515_v41  ;;  %v8945_v5 = vcombine.low %v4507_v33, %v4515_v41 }
 0x77e   :  { %6115 = vmatpush1.bf16.msra.mxu1 %v9007_v37  ;;  %v4523_v37 = vld [vmem:[#allocation9 + $0x5a0] sm:$0xff] }
 0x77f   :  { %6116 = vmatprep.subr.bf16.mxu1 %v9024_v18  ;;  %v4531_v18 = vld [vmem:[#allocation9 + $0x5e0] sm:$0xff] }
 0x780   :  { %v8962_v39 = vcombine.high %v4523_v37, %v4531_v18  ;;  %v8961_v42 = vcombine.low %v4523_v37, %v4531_v18  ;;  %v4468_v37 = vld [vmem:[#allocation9 + $0x3e8] sm:$0xff] }
 0x782   :  { %6117 = vmatpush1.bf16.msra.mxu1 %v9023_v56  ;;  %v4539_v56 = vld [vmem:[#allocation9 + $0x620] sm:$0xff] }
 0x783   :  { %6127 = vmatprep.subr.bf16.mxu1 %v8786_v59  ;;  %v4547_v59 = vld [vmem:[#allocation9 + $0x660] sm:$0xff] }
 0x784   :  { %v8978_v43 = vcombine.high %v4539_v56, %v4547_v59  ;;  %v8977_v46 = vcombine.low %v4539_v56, %v4547_v59 }
 0x785   :  { %6119 = vmatmul.mubr.bf16.vlgmr.msra.gmra.mrb[20].mxu1 %v10688_v10 }
 0x786   :  { %6128 = vmatpush1.bf16.msra.mxu1 %v8785_v44  ;;  %6159 = vmatprep.mubr.bf16.mxu1 %v10686_v9  ;;  %v4555_v44 = vld [vmem:[#allocation9 + $0x6a0] sm:$0xff] }
 0x787   :  { %6129 = vmatprep.subr.bf16.mxu1 %v8802_v45  ;;  %v4563_v45 = vld [vmem:[#allocation9 + $0x6e0] sm:$0xff] }
 0x788   :  { %v8994_v3 = vcombine.high %v4555_v44, %v4563_v45  ;;  %v8993_v47 = vcombine.low %v4555_v44, %v4563_v45 }
 0x78a   :  { %6130 = vmatpush1.bf16.msra.mxu1 %v8801_v48  ;;  %v4571_v48 = vld [vmem:[#allocation9 + $0x720] sm:$0xff] }
 0x78b   :  { %6131 = vmatprep.subr.bf16.mxu1 %v8818_v7  ;;  %v4579_v7 = vld [vmem:[#allocation9 + $0x760] sm:$0xff] }
 0x78c   :  { %v9010_v60 = vcombine.high %v4571_v48, %v4579_v7  ;;  %v9009_v52 = vcombine.low %v4571_v48, %v4579_v7 }
 0x78e   :  { %6132 = vmatpush1.bf16.msra.mxu1 %v8817_v49  ;;  %v4587_v49 = vld [vmem:[#allocation9 + $0x7a0] sm:$0xff] }
 0x78f   :  { %6133 = vmatprep.subr.bf16.mxu1 %v8834_v50  ;;  %v4595_v50 = vld [vmem:[#allocation9 + $0x7e0] sm:$0xff] }
 0x790   :  { %v9026_v54 = vcombine.high %v4587_v49, %v4595_v50  ;;  %v9025_v58 = vcombine.low %v4587_v49, %v4595_v50 }
 0x792   :  { %6134 = vmatpush1.bf16.msra.mxu1 %v8833_v51  ;;  %v4348_v51 = vld [vmem:[#allocation9 + $0x28] sm:$0xff] }
 0x793   :  { %6135 = vmatprep.subr.bf16.mxu1 %v8850_v15  ;;  %v4356_v15 = vld [vmem:[#allocation9 + $0x68] sm:$0xff] }
 0x794   :  { %v8788_v23 = vcombine.high %v4348_v51, %v4356_v15  ;;  %v8787_v63 = vcombine.low %v4348_v51, %v4356_v15 }
 0x796   :  { %6136 = vmatpush1.bf16.msra.mxu1 %v8849_v27  ;;  %v4364_v27 = vld [vmem:[#allocation9 + $0xa8] sm:$0xff] }
 0x797   :  { %6137 = vmatprep.subr.bf16.mxu1 %v8866_v61  ;;  %v4372_v61 = vld [vmem:[#allocation9 + $0xe8] sm:$0xff] }
 0x798   :  { %v10701_v4 = vpop.f32.mrb[8].mxu1  ;;  %v10703_v57 = vpop.f32.mrb[36].mxu0  ;;  %v8804_v0 = vcombine.high %v4364_v27, %v4372_v61  ;;  %v8803_v8 = vcombine.low %v4364_v27, %v4372_v61 }
 0x799   :  { %v10705_v11 = vpop.f32.mrb[9].mxu1  ;;  %v10707_v53 = vpop.f32.mrb[37].mxu0 }
 0x79a   :  { %6138 = vmatpush1.bf16.msra.mxu1 %v8865_v1  ;;  %v6001_v12 = vpop.f32.mrb[10].mxu1  ;;  %v6288_v62 = vpop.f32.mrb[38].mxu0  ;;  %v4380_v1 = vld [vmem:[#allocation9 + $0x128] sm:$0xff] }
 0x79b   :  { %v6002_v17 = vpop.f32.mrb[11].mxu1  ;;  %v6289_v19 = vpop.f32.mrb[39].mxu0  ;;  %6139 = vmatprep.subr.bf16.mxu1 %v8882_v2  ;;  %v4388_v2 = vld [vmem:[#allocation9 + $0x168] sm:$0xff] }
 0x79c   :  { %v8820_v6 = vcombine.high %v4380_v1, %v4388_v2  ;;  %v4396_v12 = vld [vmem:[#allocation9 + $0x1a8] sm:$0xff] }
 0x79d   :  { %v4404_v62 = vld [vmem:[#allocation9 + $0x1e8] sm:$0xff] }
 0x79e   :  { %6140 = vmatpush1.bf16.msra.mxu1 %v8881_v13  ;;  %v8819_v13 = vcombine.low %v4380_v1, %v4388_v2  ;;  %v8836_v17 = vcombine.high %v4396_v12, %v4404_v62  ;;  %v4412_v19 = vld [vmem:[#allocation9 + $0x228] sm:$0xff]  ;;  %v8835_v22 = vcombine.low %v4396_v12, %v4404_v62 }
 0x79f   :  { %6141 = vmatprep.subr.bf16.mxu1 %v8898_v21  ;;  %v4420_v21 = vld [vmem:[#allocation9 + $0x268] sm:$0xff] }
 0x7a0   :  { %v8852_v25 = vcombine.high %v4412_v19, %v4420_v21  ;;  %v8851_v29 = vcombine.low %v4412_v19, %v4420_v21 }
 0x7a2   :  { %6142 = vmatpush1.bf16.msra.mxu1 %v8897_v14  ;;  %v4428_v14 = vld [vmem:[#allocation9 + $0x2a8] sm:$0xff] }
 0x7a3   :  { %6143 = vmatprep.subr.bf16.mxu1 %v8914_v55  ;;  %v4436_v55 = vld [vmem:[#allocation9 + $0x2e8] sm:$0xff] }
 0x7a4   :  { %v8868_v30 = vcombine.high %v4428_v14, %v4436_v55  ;;  %v8867_v33 = vcombine.low %v4428_v14, %v4436_v55 }
 0x7a6   :  { %6144 = vmatpush1.bf16.msra.mxu1 %v8913_v31  ;;  %v4444_v31 = vld [vmem:[#allocation9 + $0x328] sm:$0xff] }
 0x7a7   :  { %6145 = vmatprep.subr.bf16.mxu1 %v8930_v32  ;;  %v4452_v32 = vld [vmem:[#allocation9 + $0x368] sm:$0xff] }
 0x7a8   :  { %v8884_v41 = vcombine.high %v4444_v31, %v4452_v32 }
 0x7aa   :  { %6146 = vmatpush1.bf16.msra.mxu1 %v8929_v34 }
 0x7ab   :  { %6147 = vmatprep.subr.bf16.mxu1 %v8946_v36  ;;  %v4460_v36 = vld [vmem:[#allocation9 + $0x3a8] sm:$0xff] }
 0x7ac   :  { %v8900_v59 = vcombine.high %v4460_v36, %v4468_v37  ;;  %v8899_v44 = vcombine.low %v4460_v36, %v4468_v37 }
 0x7ae   :  { %6148 = vmatpush1.bf16.msra.mxu1 %v8945_v5 }
 0x7af   :  { %6149 = vmatprep.subr.bf16.mxu1 %v8962_v39  ;;  %v8883_v39 = vcombine.low %v4444_v31, %v4452_v32 }
 0x7b2   :  { %6150 = vmatpush1.bf16.msra.mxu1 %v8961_v42  ;;  %v4476_v42 = vld [vmem:[#allocation9 + $0x428] sm:$0xff] }
 0x7b3   :  { %6151 = vmatprep.subr.bf16.mxu1 %v8978_v43  ;;  %v4484_v43 = vld [vmem:[#allocation9 + $0x468] sm:$0xff] }
 0x7b4   :  { %v8916_v45 = vcombine.high %v4476_v42, %v4484_v43  ;;  %v8915_v48 = vcombine.low %v4476_v42, %v4484_v43  ;;  %v4413_v42 = vld [vmem:[#allocation9 + $0x230] sm:$0xff] }
 0x7b5   :  { %v4421_v43 = vld [vmem:[#allocation9 + $0x270] sm:$0xff] }
 0x7b6   :  { %6152 = vmatpush1.bf16.msra.mxu1 %v8977_v46  ;;  %v4492_v46 = vld [vmem:[#allocation9 + $0x4a8] sm:$0xff] }
 0x7b7   :  { %6153 = vmatprep.subr.bf16.mxu1 %v8994_v3  ;;  %v4500_v3 = vld [vmem:[#allocation9 + $0x4e8] sm:$0xff] }
 0x7b8   :  { %v8932_v7 = vcombine.high %v4492_v46, %v4500_v3  ;;  %v8931_v49 = vcombine.low %v4492_v46, %v4500_v3  ;;  %v4429_v46 = vld [vmem:[#allocation9 + $0x2b0] sm:$0xff] }
 0x7b9   :  { %v4437_v3 = vld [vmem:[#allocation9 + $0x2f0] sm:$0xff] }
 0x7ba   :  { %6154 = vmatpush1.bf16.msra.mxu1 %v8993_v47  ;;  %v4508_v47 = vld [vmem:[#allocation9 + $0x528] sm:$0xff] }
 0x7bb   :  { %6155 = vmatprep.subr.bf16.mxu1 %v9010_v60  ;;  %v4516_v60 = vld [vmem:[#allocation9 + $0x568] sm:$0xff] }
 0x7bc   :  { %v8948_v50 = vcombine.high %v4508_v47, %v4516_v60  ;;  %v8947_v51 = vcombine.low %v4508_v47, %v4516_v60  ;;  %v4453_v47 = vld [vmem:[#allocation9 + $0x370] sm:$0xff]  ;;  %v8869_v60 = vcombine.low %v4429_v46, %v4437_v3 }
 0x7be   :  { %6156 = vmatpush1.bf16.msra.mxu1 %v9009_v52  ;;  %v4524_v52 = vld [vmem:[#allocation9 + $0x5a8] sm:$0xff] }
 0x7bf   :  { %6157 = vmatprep.subr.bf16.mxu1 %v9026_v54  ;;  %v4532_v54 = vld [vmem:[#allocation9 + $0x5e8] sm:$0xff] }
 0x7c0   :  { %v8964_v15 = vcombine.high %v4524_v52, %v4532_v54  ;;  %v8963_v27 = vcombine.low %v4524_v52, %v4532_v54  ;;  %v4461_v52 = vld [vmem:[#allocation9 + $0x3b0] sm:$0xff] }
 0x7c1   :  { %v4469_v54 = vld [vmem:[#allocation9 + $0x3f0] sm:$0xff] }
 0x7c2   :  { %6158 = vmatpush1.bf16.msra.mxu1 %v9025_v58  ;;  %v4540_v58 = vld [vmem:[#allocation9 + $0x628] sm:$0xff] }
 0x7c3   :  { %6168 = vmatprep.subr.bf16.mxu1 %v8788_v23  ;;  %v4548_v23 = vld [vmem:[#allocation9 + $0x668] sm:$0xff] }
 0x7c4   :  { %v8980_v61 = vcombine.high %v4540_v58, %v4548_v23  ;;  %v8979_v1 = vcombine.low %v4540_v58, %v4548_v23 }
 0x7c5   :  { %6160 = vmatmul.mubr.bf16.vlgmr.msra.gmra.mrb[24].mxu1 %v10688_v10 }
 0x7c6   :  { %6169 = vmatpush1.bf16.msra.mxu1 %v8787_v63  ;;  %6200 = vmatprep.mubr.bf16.mxu1 %v10686_v9  ;;  %v4556_v63 = vld [vmem:[#allocation9 + $0x6a8] sm:$0xff] }
 0x7c7   :  { %6170 = vmatprep.subr.bf16.mxu1 %v8804_v0  ;;  %v4564_v0 = vld [vmem:[#allocation9 + $0x6e8] sm:$0xff] }
 0x7c8   :  { %v8996_v2 = vcombine.high %v4556_v63, %v4564_v0  ;;  %v8995_v12 = vcombine.low %v4556_v63, %v4564_v0  ;;  %v4485_v63 = vld [vmem:[#allocation9 + $0x470] sm:$0xff]  ;;  %v8901_v0 = vcombine.low %v4461_v52, %v4469_v54 }
 0x7ca   :  { %6171 = vmatpush1.bf16.msra.mxu1 %v8803_v8  ;;  %v4572_v8 = vld [vmem:[#allocation9 + $0x728] sm:$0xff] }
 0x7cb   :  { %6172 = vmatprep.subr.bf16.mxu1 %v8820_v6  ;;  %v4580_v6 = vld [vmem:[#allocation9 + $0x768] sm:$0xff] }
 0x7cc   :  { %v9012_v62 = vcombine.high %v4572_v8, %v4580_v6  ;;  %v9011_v19 = vcombine.low %v4572_v8, %v4580_v6  ;;  %v4501_v8 = vld [vmem:[#allocation9 + $0x4f0] sm:$0xff] }
 0x7ce   :  { %6173 = vmatpush1.bf16.msra.mxu1 %v8819_v13  ;;  %v4588_v13 = vld [vmem:[#allocation9 + $0x7a8] sm:$0xff] }
 0x7cf   :  { %6174 = vmatprep.subr.bf16.mxu1 %v8836_v17  ;;  %v4596_v17 = vld [vmem:[#allocation9 + $0x7e8] sm:$0xff] }
 0x7d0   :  { %v9028_v21 = vcombine.high %v4588_v13, %v4596_v17  ;;  %v9027_v14 = vcombine.low %v4588_v13, %v4596_v17  ;;  %v4517_v13 = vld [vmem:[#allocation9 + $0x570] sm:$0xff] }
 0x7d2   :  { %6175 = vmatpush1.bf16.msra.mxu1 %v8835_v22  ;;  %v4349_v22 = vld [vmem:[#allocation9 + $0x30] sm:$0xff] }
 0x7d3   :  { %6176 = vmatprep.subr.bf16.mxu1 %v8852_v25  ;;  %v4357_v25 = vld [vmem:[#allocation9 + $0x70] sm:$0xff] }
 0x7d4   :  { %v8790_v55 = vcombine.high %v4349_v22, %v4357_v25  ;;  %v8789_v31 = vcombine.low %v4349_v22, %v4357_v25  ;;  %v4533_v22 = vld [vmem:[#allocation9 + $0x5f0] sm:$0xff] }
 0x7d6   :  { %6177 = vmatpush1.bf16.msra.mxu1 %v8851_v29  ;;  %v4365_v29 = vld [vmem:[#allocation9 + $0xb0] sm:$0xff] }
 0x7d7   :  { %6178 = vmatprep.subr.bf16.mxu1 %v8868_v30  ;;  %v4373_v30 = vld [vmem:[#allocation9 + $0xf0] sm:$0xff] }
 0x7d8   :  { %v10711_v34 = vpop.f32.mrb[12].mxu1  ;;  %v8806_v32 = vcombine.high %v4365_v29, %v4373_v30  ;;  %v8805_v36 = vcombine.low %v4365_v29, %v4373_v30  ;;  %v4549_v29 = vld [vmem:[#allocation9 + $0x670] sm:$0xff] }
 0x7d9   :  { %v10713_v18 = vpop.f32.mrb[13].mxu1 }
 0x7da   :  { %v6042_v5 = vpop.f32.mrb[14].mxu1  ;;  %6179 = vmatpush1.bf16.msra.mxu1 %v8867_v33  ;;  %v4381_v33 = vld [vmem:[#allocation9 + $0x130] sm:$0xff] }
 0x7db   :  { %v6043_v56 = vpop.f32.mrb[15].mxu1  ;;  %6180 = vmatprep.subr.bf16.mxu1 %v8884_v41  ;;  %v4389_v41 = vld [vmem:[#allocation9 + $0x170] sm:$0xff] }
 0x7dc   :  { %v8822_v37 = vcombine.high %v4381_v33, %v4389_v41  ;;  %v4397_v5 = vld [vmem:[#allocation9 + $0x1b0] sm:$0xff]  ;;  %v8821_v56 = vcombine.low %v4381_v33, %v4389_v41 }
 0x7dd   :  { %v4565_v33 = vld [vmem:[#allocation9 + $0x6f0] sm:$0xff] }
 0x7de   :  { %6181 = vmatpush1.bf16.msra.mxu1 %v8883_v39  ;;  %v4405_v39 = vld [vmem:[#allocation9 + $0x1f0] sm:$0xff] }
 0x7df   :  { %6182 = vmatprep.subr.bf16.mxu1 %v8900_v59  ;;  %v8838_v59 = vcombine.high %v4397_v5, %v4405_v39 }
 0x7e2   :  { %6183 = vmatpush1.bf16.msra.mxu1 %v8899_v44  ;;  %v8837_v44 = vcombine.low %v4397_v5, %v4405_v39  ;;  %v4581_v5 = vld [vmem:[#allocation9 + $0x770] sm:$0xff]  ;;  %v10724_v39 = vld [vmem:[%s10815_s11] sm:$0xff] }
 0x7e3   :  { %6184 = vmatprep.subr.bf16.mxu1 %v8916_v45  ;;  %v8854_v45 = vcombine.high %v4413_v42, %v4421_v43 }
 0x7e6   :  { %6185 = vmatpush1.bf16.msra.mxu1 %v8915_v48  ;;  %v8853_v48 = vcombine.low %v4413_v42, %v4421_v43  ;;  %v4610_v42 = vrot.slane %v10724_v39, %v10559_v38  ;;  %v4589_v43 = vld [vmem:[#allocation9 + $0x7b0] sm:$0xff] }
 0x7e7   :  { %6186 = vmatprep.subr.bf16.mxu1 %v8932_v7  ;;  %v4445_v7 = vld [vmem:[#allocation9 + $0x330] sm:$0xff] }
 0x7e8   :  { %v8885_v58 = vcombine.low %v4445_v7, %v4453_v47 }
 0x7ea   :  { %6187 = vmatpush1.bf16.msra.mxu1 %v8931_v49  ;;  %v8886_v49 = vcombine.high %v4445_v7, %v4453_v47  ;;  %v9809_v47 = vld [vmem:[#allocation10] ss:$8 sps:$4 sm:$0xff]  }
 0x7eb   :  { %6188 = vmatprep.subr.bf16.mxu1 %v8948_v50 }
 0x7ee   :  { %6189 = vmatpush1.bf16.msra.mxu1 %v8947_v51 }
 0x7ef   :  { %6190 = vmatprep.subr.bf16.mxu1 %v8964_v15 }
 0x7f2   :  { %6191 = vmatpush1.bf16.msra.mxu1 %v8963_v27  ;;  %v8902_v27 = vcombine.high %v4461_v52, %v4469_v54  ;;  %v9812_v52 = vld [vmem:[#allocation10 + $0x10] ss:$8 sps:$4 sm:$0xff]   ;;  %v9817_v54 = vld [vmem:[#allocation10 + $0x24] ss:$8 sps:$4 sm:$0xff]  }
 0x7f3   :  { %6192 = vmatprep.subr.bf16.mxu1 %v8980_v61  ;;  %v4477_v61 = vld [vmem:[#allocation9 + $0x430] sm:$0xff] }
 0x7f4   :  { %v8917_v6 = vcombine.low %v4477_v61, %v4485_v63 }
 0x7f6   :  { %6193 = vmatpush1.bf16.msra.mxu1 %v8979_v1  ;;  %v8918_v1 = vcombine.high %v4477_v61, %v4485_v63  ;;  %v9826_v61 = vld [vmem:[#allocation10 + $0x54] ss:$8 sps:$4 sm:$0xff]   ;;  %v9824_v63 = vld [vmem:[#allocation10 + $0x50] ss:$8 sps:$4 sm:$0xff]  }
 0x7f7   :  { %6194 = vmatprep.subr.bf16.mxu1 %v8996_v2  ;;  %v4493_v2 = vld [vmem:[#allocation9 + $0x4b0] sm:$0xff] }
 0x7f8   :  { %v8933_v17 = vcombine.low %v4493_v2, %v4501_v8 }
 0x7fa   :  { %6195 = vmatpush1.bf16.msra.mxu1 %v8995_v12  ;;  %v8934_v12 = vcombine.high %v4493_v2, %v4501_v8  ;;  %v9827_v8 = vld [vmem:[#allocation10 + $0x60] ss:$8 sps:$4 sm:$0xff]  }
 0x7fb   :  { %6196 = vmatprep.subr.bf16.mxu1 %v9012_v62  ;;  %v4509_v62 = vld [vmem:[#allocation9 + $0x530] sm:$0xff] }
 0x7fc   :  { %v8949_v25 = vcombine.low %v4509_v62, %v4517_v13 }
 0x7fe   :  { %6197 = vmatpush1.bf16.msra.mxu1 %v9011_v19  ;;  %v8950_v19 = vcombine.high %v4509_v62, %v4517_v13  ;;  %v9830_v62 = vld [vmem:[#allocation10 + $0x70] ss:$8 sps:$4 sm:$0xff]   ;;  %v9835_v13 = vld [vmem:[#allocation10 + $0x84] ss:$8 sps:$4 sm:$0xff]  }
 0x7ff   :  { %6198 = vmatprep.subr.bf16.mxu1 %v9028_v21  ;;  %v4525_v21 = vld [vmem:[#allocation9 + $0x5b0] sm:$0xff] }
 0x800   :  { %v8965_v30 = vcombine.low %v4525_v21, %v4533_v22 }
 0x802   :  { %6199 = vmatpush1.bf16.msra.mxu1 %v9027_v14  ;;  %v8966_v14 = vcombine.high %v4525_v21, %v4533_v22  ;;  %v9836_v21 = vld [vmem:[#allocation10 + $0x90] ss:$8 sps:$4 sm:$0xff]   ;;  %v9841_v22 = vld [vmem:[#allocation10 + $0xa4] ss:$8 sps:$4 sm:$0xff]  }
 0x803   :  { %6209 = vmatprep.subr.bf16.mxu1 %v8790_v55  ;;  %v4541_v55 = vld [vmem:[#allocation9 + $0x630] sm:$0xff] }
 0x804   :  { %v8981_v41 = vcombine.low %v4541_v55, %v4549_v29 }
 0x805   :  { %6201 = vmatmul.mubr.bf16.vlgmr.msra.gmra.mrb[28].mxu1 %v10688_v10 }
 0x806   :  { %6210 = vmatpush1.bf16.msra.mxu1 %v8789_v31  ;;  %6241 = vmatprep.mubr.bf16.mxu1 %v10686_v9  ;;  %v8870_v9 = vcombine.high %v4429_v46, %v4437_v3  ;;  %v8982_v31 = vcombine.high %v4541_v55, %v4549_v29  ;;  %v6000_v3 = vadd.f32 %v10705_v11, %v4610_v42  ;;  %v9820_v11 = vld [vmem:[#allocation10 + $0x34] ss:$8 sps:$4 sm:$0xff]   ;;  %v9842_v55 = vld [vmem:[#allocation10 + $0xb0] ss:$8 sps:$4 sm:$0xff]   ;;  %v9847_v29 = vld [vmem:[#allocation10 + $0xc4] ss:$8 sps:$4 sm:$0xff]  }
 0x807   :  { %6211 = vmatprep.subr.bf16.mxu1 %v8806_v32  ;;  %v4557_v32 = vld [vmem:[#allocation9 + $0x6b0] sm:$0xff] }
 0x808   :  { %v6292_v7 = vmax.f32 %v6000_v3, 0.0  ;;  %v9854_v42 = vld [vmem:[#allocation10 + $0xf0] ss:$8 sps:$4 sm:$0xff]  }
 0x80a   :  { %6212 = vmatpush1.bf16.msra.mxu1 %v8805_v36  ;;  %v8998_v36 = vcombine.high %v4557_v32, %v4565_v33 }
 0x80b   :  { %6213 = vmatprep.subr.bf16.mxu1 %v8822_v37  ;;  %v4573_v37 = vld [vmem:[#allocation9 + $0x730] sm:$0xff] }
 0x80e   :  { %6214 = vmatpush1.bf16.msra.mxu1 %v8821_v56  ;;  %v8997_v56 = vcombine.low %v4557_v32, %v4565_v33  ;;  %v9848_v32 = vld [vmem:[#allocation10 + $0xd0] ss:$8 sps:$4 sm:$0xff]   ;;  %v4606_v33 = vrot.slane %v10724_v39, %v10575_v20 }
 0x80f   :  { %6215 = vmatprep.subr.bf16.mxu1 %v8838_v59  ;;  %v9014_v59 = vcombine.high %v4573_v37, %v4581_v5 }
 0x812   :  { %6216 = vmatpush1.bf16.msra.mxu1 %v8837_v44  ;;  %v4597_v44 = vld [vmem:[#allocation9 + $0x7f0] sm:$0xff] }
 0x813   :  { %6217 = vmatprep.subr.bf16.mxu1 %v8854_v45  ;;  %v9013_v45 = vcombine.low %v4573_v37, %v4581_v5  ;;  %v9030_v46 = vcombine.high %v4589_v43, %v4597_v44  ;;  %v9851_v37 = vld [vmem:[#allocation10 + $0xe0] ss:$8 sps:$4 sm:$0xff]   ;;  %v5998_v5 = vadd.f32 %v10701_v4, %v4606_v33  ;;  %v9860_v4 = vld [vmem:[#allocation10 + $0x110] ss:$8 sps:$4 sm:$0xff]  }
 0x816   :  { %6218 = vmatpush1.bf16.msra.mxu1 %v8853_v48  ;;  %v9029_v48 = vcombine.low %v4589_v43, %v4597_v44  ;;  %v6291_v43 = vmax.f32 %v5998_v5, 0.0  ;;  %v9859_v44 = vld [vmem:[#allocation10 + $0x104] ss:$8 sps:$4 sm:$0xff]  }
 0x817   :  { %6219 = vmatprep.subr.bf16.mxu1 %v8870_v9  ;;  %v9811_v9 = vld [vmem:[#allocation10 + $0x4] ss:$8 sps:$4 sm:$0xff]  }
 0x818   :  { %v10717_v50 = vpop.f32.mrb[16].mxu1  ;;  %v6307_v3 = vpack.c.bf16 %v6291_v43, %v6291_v43 }
 0x819   :  { %v10719_v51 = vpop.f32.mrb[17].mxu1 }
 0x81a   :  { %v6083_v15 = vpop.f32.mrb[18].mxu1  ;;  %6220 = vmatpush1.bf16.msra.mxu1 %v8869_v60  ;;  %v9814_v60 = vld [vmem:[#allocation10 + $0x14] ss:$8 sps:$4 sm:$0xff]  }
 0x81b   :  { %v6084_v23 = vpop.f32.mrb[19].mxu1  ;;  %6221 = vmatprep.subr.bf16.mxu1 %v8886_v49  ;;  %v6308_v49 = vpack.c.bf16 %v6292_v7, %v6292_v7  ;;  %v9815_v15 = vld [vmem:[#allocation10 + $0x20] ss:$8 sps:$4 sm:$0xff]   ;;  %v9865_v7 = vld [vmem:[#allocation10 + $0x124] ss:$8 sps:$4 sm:$0xff]  }
 0x81c   :  { %v9823_v23 = vld [vmem:[#allocation10 + $0x44] ss:$8 sps:$4 sm:$0xff]  }
 0x81e   :  { %6222 = vmatpush1.bf16.msra.mxu1 %v8885_v58  ;;  %v9818_v58 = vld [vmem:[#allocation10 + $0x30] ss:$8 sps:$4 sm:$0xff]  }
 0x81f   :  { %6223 = vmatprep.subr.bf16.mxu1 %v8902_v27  ;;  %v9821_v27 = vld [vmem:[#allocation10 + $0x40] ss:$8 sps:$4 sm:$0xff]  }
 0x822   :  { %6224 = vmatpush1.bf16.msra.mxu1 %v8901_v0 }
 0x823   :  { %6225 = vmatprep.subr.bf16.mxu1 %v8918_v1 }
 0x826   :  { %6226 = vmatpush1.bf16.msra.mxu1 %v8917_v6 }
 0x827   :  { %6227 = vmatprep.subr.bf16.mxu1 %v8934_v12  ;;  %v9832_v12 = vld [vmem:[#allocation10 + $0x74] ss:$8 sps:$4 sm:$0xff]  }
 0x82a   :  { %6228 = vmatpush1.bf16.msra.mxu1 %v8933_v17  ;;  %v9833_v17 = vld [vmem:[#allocation10 + $0x80] ss:$8 sps:$4 sm:$0xff]  }
 0x82b   :  { %6229 = vmatprep.subr.bf16.mxu1 %v8950_v19  ;;  %v9838_v19 = vld [vmem:[#allocation10 + $0x94] ss:$8 sps:$4 sm:$0xff]  }
 0x82e   :  { %6230 = vmatpush1.bf16.msra.mxu1 %v8949_v25  ;;  %v9839_v25 = vld [vmem:[#allocation10 + $0xa0] ss:$8 sps:$4 sm:$0xff]  }
 0x82f   :  { %6231 = vmatprep.subr.bf16.mxu1 %v8966_v14  ;;  %v9844_v14 = vld [vmem:[#allocation10 + $0xb4] ss:$8 sps:$4 sm:$0xff]  }
 0x832   :  { %6232 = vmatpush1.bf16.msra.mxu1 %v8965_v30  ;;  %v9845_v30 = vld [vmem:[#allocation10 + $0xc0] ss:$8 sps:$4 sm:$0xff]  }
 0x833   :  { %6233 = vmatprep.subr.bf16.mxu1 %v8982_v31  ;;  %v9850_v31 = vld [vmem:[#allocation10 + $0xd4] ss:$8 sps:$4 sm:$0xff]  }
 0x836   :  { %6234 = vmatpush1.bf16.msra.mxu1 %v8981_v41  ;;  %v9853_v41 = vld [vmem:[#allocation10 + $0xe4] ss:$8 sps:$4 sm:$0xff]  }
 0x837   :  { %6235 = vmatprep.subr.bf16.mxu1 %v8998_v36  ;;  %v4618_v36 = vrot.slane %v10724_v39, %v10578_v28 }
 0x83a   :  { %6236 = vmatpush1.bf16.msra.mxu1 %v8997_v56  ;;  %v9856_v56 = vld [vmem:[#allocation10 + $0xf4] ss:$8 sps:$4 sm:$0xff]  }
 0x83b   :  { %6237 = vmatprep.subr.bf16.mxu1 %v9014_v59  ;;  %v6041_v59 = vadd.f32 %v10713_v18, %v4618_v36  ;;  %v9863_v18 = vld [vmem:[#allocation10 + $0x120] ss:$8 sps:$4 sm:$0xff]  }
 0x83e   :  { %6238 = vmatpush1.bf16.msra.mxu1 %v9013_v45  ;;  %v6294_v45 = vmax.f32 %v6041_v59, 0.0 }
 0x83f   :  { %6239 = vmatprep.subr.bf16.mxu1 %v9030_v46  ;;  %v9857_v46 = vld [vmem:[#allocation10 + $0x100] ss:$8 sps:$4 sm:$0xff]  }
 0x842   :  { %6240 = vmatpush1.bf16.msra.mxu1 %v9029_v48  ;;  %v9862_v48 = vld [vmem:[#allocation10 + $0x114] ss:$8 sps:$4 sm:$0xff]  }
 0x843   :  { %7871 = vmatprep.subr.bf16.mxu1 %v9811_v9  ;;  %v6310_v9 = vpack.c.bf16 %v6294_v45, %v6294_v45 }
 0x845   :  { %6242 = vmatmul.mubr.bf16.vlgmr.msra.gmra.mrb[32].mxu1 %v10688_v10  ;;  %v9829_v10 = vld [vmem:[#allocation10 + $0x64] ss:$8 sps:$4 sm:$0xff]  }
 0x846   :  { %7872 = vmatpush1.bf16.msra.mxu1 %v9809_v47  ;;  %7903 = vmatprep.mubr.bf16.mxu1 %v6308_v49  ;;  %v9868_v47 = vld [vmem:[#allocation10 + $0x134] ss:$8 sps:$4 sm:$0xff]   ;;  %v9871_v49 = vld [vmem:[#allocation10 + $0x144] ss:$8 sps:$4 sm:$0xff]  }
 0x847   :  { %7873 = vmatprep.subr.bf16.mxu1 %v9814_v60  ;;  %v9866_v60 = vld [vmem:[#allocation10 + $0x130] ss:$8 sps:$4 sm:$0xff]  }
 0x84a   :  { %7874 = vmatpush1.bf16.msra.mxu1 %v9812_v52  ;;  %v9869_v52 = vld [vmem:[#allocation10 + $0x140] ss:$8 sps:$4 sm:$0xff]  }
 0x84b   :  { %7875 = vmatprep.subr.bf16.mxu1 %v9817_v54  ;;  %v9874_v54 = vld [vmem:[#allocation10 + $0x154] ss:$8 sps:$4 sm:$0xff]  }
 0x84e   :  { %7876 = vmatpush1.bf16.msra.mxu1 %v9815_v15  ;;  %v9872_v15 = vld [vmem:[#allocation10 + $0x150] ss:$8 sps:$4 sm:$0xff]  }
 0x84f   :  { %7877 = vmatprep.subr.bf16.mxu1 %v9820_v11  ;;  %v9877_v11 = vld [vmem:[#allocation10 + $0x164] ss:$8 sps:$4 sm:$0xff]  }
 0x852   :  { %7878 = vmatpush1.bf16.msra.mxu1 %v9818_v58 }
 0x853   :  { %7879 = vmatprep.subr.bf16.mxu1 %v9823_v23 }
 0x856   :  { %7880 = vmatpush1.bf16.msra.mxu1 %v9821_v27 }
 0x857   :  { %7881 = vmatprep.subr.bf16.mxu1 %v9826_v61  ;;  %v9875_v61 = vld [vmem:[#allocation10 + $0x160] ss:$8 sps:$4 sm:$0xff]  }
 0x858   :  { %v10730_v0 = vpop.f32.mrb[20].mxu1 }
 0x859   :  { %v10732_v1 = vpop.f32.mrb[21].mxu1 }
 0x85a   :  { %v6124_v2 = vpop.f32.mrb[22].mxu1  ;;  %7882 = vmatpush1.bf16.msra.mxu1 %v9824_v63 }
 0x85b   :  { %v6125_v6 = vpop.f32.mrb[23].mxu1  ;;  %7883 = vmatprep.subr.bf16.mxu1 %v9829_v10  ;;  %v9880_v10 = vld [vmem:[#allocation10 + $0x174] ss:$8 sps:$4 sm:$0xff]   ;;  %v9878_v2 = vld [vmem:[#allocation10 + $0x170] ss:$8 sps:$4 sm:$0xff]  }
 0x85c   :  { %v9881_v6 = vld [vmem:[#allocation10 + $0x180] ss:$8 sps:$4 sm:$0xff]  }
 0x85e   :  { %7884 = vmatpush1.bf16.msra.mxu1 %v9827_v8  ;;  %v9883_v8 = vld [vmem:[#allocation10 + $0x184] ss:$8 sps:$4 sm:$0xff]  }
 0x85f   :  { %7885 = vmatprep.subr.bf16.mxu1 %v9832_v12  ;;  %v9886_v12 = vld [vmem:[#allocation10 + $0x194] ss:$8 sps:$4 sm:$0xff]  }
 0x862   :  { %7886 = vmatpush1.bf16.msra.mxu1 %v9830_v62  ;;  %v9884_v62 = vld [vmem:[#allocation10 + $0x190] ss:$8 sps:$4 sm:$0xff]  }
 0x863   :  { %7887 = vmatprep.subr.bf16.mxu1 %v9835_v13  ;;  %v9889_v13 = vld [vmem:[#allocation10 + $0x1a4] ss:$8 sps:$4 sm:$0xff]  }
 0x866   :  { %7888 = vmatpush1.bf16.msra.mxu1 %v9833_v17  ;;  %v9887_v17 = vld [vmem:[#allocation10 + $0x1a0] ss:$8 sps:$4 sm:$0xff]  }
 0x867   :  { %7889 = vmatprep.subr.bf16.mxu1 %v9838_v19  ;;  %v9892_v19 = vld [vmem:[#allocation10 + $0x1b4] ss:$8 sps:$4 sm:$0xff]  }
 0x86a   :  { %7890 = vmatpush1.bf16.msra.mxu1 %v9836_v21  ;;  %v9890_v21 = vld [vmem:[#allocation10 + $0x1b0] ss:$8 sps:$4 sm:$0xff]  }
 0x86b   :  { %7891 = vmatprep.subr.bf16.mxu1 %v9841_v22  ;;  %v9895_v22 = vld [vmem:[#allocation10 + $0x1c4] ss:$8 sps:$4 sm:$0xff]  }
 0x86e   :  { %7892 = vmatpush1.bf16.msra.mxu1 %v9839_v25  ;;  %v9893_v25 = vld [vmem:[#allocation10 + $0x1c0] ss:$8 sps:$4 sm:$0xff]  }
 0x86f   :  { %7893 = vmatprep.subr.bf16.mxu1 %v9844_v14  ;;  %v9898_v14 = vld [vmem:[#allocation10 + $0x1d4] ss:$8 sps:$4 sm:$0xff]  }
 0x872   :  { %7894 = vmatpush1.bf16.msra.mxu1 %v9842_v55  ;;  %v9896_v55 = vld [vmem:[#allocation10 + $0x1d0] ss:$8 sps:$4 sm:$0xff]  }
 0x873   :  { %7895 = vmatprep.subr.bf16.mxu1 %v9847_v29  ;;  %v4614_v29 = vrot.slane %v10724_v39, %v10591_v35 }
 0x875   :  { %v6039_v33 = vadd.f32 %v10711_v34, %v4614_v29  ;;  %v9908_v34 = vld [vmem:[#allocation10 + $0x210] ss:$8 sps:$4 sm:$0xff]  }
 0x876   :  { %7896 = vmatpush1.bf16.msra.mxu1 %v9845_v30  ;;  %v9901_v30 = vld [vmem:[#allocation10 + $0x1e4] ss:$8 sps:$4 sm:$0xff]  }
 0x877   :  { %7897 = vmatprep.subr.bf16.mxu1 %v9850_v31  ;;  %v4626_v31 = vrot.slane %v10724_v39, %v10594_v40  ;;  %v6293_v5 = vmax.f32 %v6039_v33, 0.0 }
 0x879   :  { %v6082_v36 = vadd.f32 %v10719_v51, %v4626_v31  ;;  %v6309_v43 = vpack.c.bf16 %v6293_v5, %v6293_v5  ;;  %v9911_v51 = vld [vmem:[#allocation10 + $0x220] ss:$8 sps:$4 sm:$0xff]  }
 0x87a   :  { %7898 = vmatpush1.bf16.msra.mxu1 %v9848_v32  ;;  %v9899_v32 = vld [vmem:[#allocation10 + $0x1e0] ss:$8 sps:$4 sm:$0xff]  }
 0x87b   :  { %7899 = vmatprep.subr.bf16.mxu1 %v9853_v41  ;;  %v9904_v41 = vld [vmem:[#allocation10 + $0x1f4] ss:$8 sps:$4 sm:$0xff]   ;;  %v6296_v59 = vmax.f32 %v6082_v36, 0.0 }
 0x87d   :  { %v6312_v45 = vpack.c.bf16 %v6296_v59, %v6296_v59 }
 0x87e   :  { %7900 = vmatpush1.bf16.msra.mxu1 %v9851_v37  ;;  %v9902_v37 = vld [vmem:[#allocation10 + $0x1f0] ss:$8 sps:$4 sm:$0xff]  }
 0x87f   :  { %7901 = vmatprep.subr.bf16.mxu1 %v9856_v56  ;;  %v9907_v56 = vld [vmem:[#allocation10 + $0x204] ss:$8 sps:$4 sm:$0xff]  }
 0x882   :  { %7902 = vmatpush1.bf16.msra.mxu1 %v9854_v42  ;;  %v9905_v42 = vld [vmem:[#allocation10 + $0x200] ss:$8 sps:$4 sm:$0xff]  }
 0x883   :  { %7912 = vmatprep.subr.bf16.mxu1 %v9859_v44  ;;  %v9910_v44 = vld [vmem:[#allocation10 + $0x214] ss:$8 sps:$4 sm:$0xff]  }
 0x885   :  { %7904 = vmatmul.mubr.bf16.vlgmr.msra.gmra.mrb[36].mxu1 %v6307_v3  ;;  %v9916_v3 = vld [vmem:[#allocation10 + $0x234] ss:$8 sps:$4 sm:$0xff]  }
 0x886   :  { %7913 = vmatpush1.bf16.msra.mxu1 %v9857_v46  ;;  %7944 = vmatprep.mubr.bf16.mxu1 %v6310_v9  ;;  %v9913_v46 = vld [vmem:[#allocation10 + $0x224] ss:$8 sps:$4 sm:$0xff]  }
 0x887   :  { %7914 = vmatprep.subr.bf16.mxu1 %v9862_v48  ;;  %v9914_v48 = vld [vmem:[#allocation10 + $0x230] ss:$8 sps:$4 sm:$0xff]   ;;  %v9919_v9 = vld [vmem:[#allocation10 + $0x244] ss:$8 sps:$4 sm:$0xff]  }
 0x88a   :  { %7915 = vmatpush1.bf16.msra.mxu1 %v9860_v4  ;;  %v9917_v4 = vld [vmem:[#allocation10 + $0x240] ss:$8 sps:$4 sm:$0xff]  }
 0x88b   :  { %7916 = vmatprep.subr.bf16.mxu1 %v9865_v7  ;;  %v9922_v7 = vld [vmem:[#allocation10 + $0x254] ss:$8 sps:$4 sm:$0xff]  }
 0x88e   :  { %7917 = vmatpush1.bf16.msra.mxu1 %v9863_v18  ;;  %v9920_v18 = vld [vmem:[#allocation10 + $0x250] ss:$8 sps:$4 sm:$0xff]  }
 0x88f   :  { %7918 = vmatprep.subr.bf16.mxu1 %v9868_v47  ;;  %v9925_v47 = vld [vmem:[#allocation10 + $0x264] ss:$8 sps:$4 sm:$0xff]  }
 0x892   :  { %7919 = vmatpush1.bf16.msra.mxu1 %v9866_v60 }
 0x893   :  { %7920 = vmatprep.subr.bf16.mxu1 %v9871_v49 }
 0x896   :  { %7921 = vmatpush1.bf16.msra.mxu1 %v9869_v52 }
 0x897   :  { %7922 = vmatprep.subr.bf16.mxu1 %v9874_v54  ;;  %v9923_v54 = vld [vmem:[#allocation10 + $0x260] ss:$8 sps:$4 sm:$0xff]  }
 0x898   :  { %v10740_v58 = vpop.f32.mrb[24].mxu1 }
 0x899   :  { %v10742_v23 = vpop.f32.mrb[25].mxu1 }
 0x89a   :  { %v6165_v27 = vpop.f32.mrb[26].mxu1  ;;  %7923 = vmatpush1.bf16.msra.mxu1 %v9872_v15 }
 0x89b   :  { %v6166_v63 = vpop.f32.mrb[27].mxu1  ;;  %7924 = vmatprep.subr.bf16.mxu1 %v9877_v11  ;;  %v9928_v11 = vld [vmem:[#allocation10 + $0x274] ss:$8 sps:$4 sm:$0xff]   ;;  %v9926_v27 = vld [vmem:[#allocation10 + $0x270] ss:$8 sps:$4 sm:$0xff]  }
 0x89c   :  { %v9929_v63 = vld [vmem:[#allocation10 + $0x280] ss:$8 sps:$4 sm:$0xff]  }
 0x89e   :  { %7925 = vmatpush1.bf16.msra.mxu1 %v9875_v61  ;;  %v9931_v61 = vld [vmem:[#allocation10 + $0x284] ss:$8 sps:$4 sm:$0xff]  }
 0x89f   :  { %7926 = vmatprep.subr.bf16.mxu1 %v9880_v10  ;;  %v9934_v10 = vld [vmem:[#allocation10 + $0x294] ss:$8 sps:$4 sm:$0xff]  }
 0x8a2   :  { %7927 = vmatpush1.bf16.msra.mxu1 %v9878_v2  ;;  %v9932_v2 = vld [vmem:[#allocation10 + $0x290] ss:$8 sps:$4 sm:$0xff]  }
 0x8a3   :  { %7928 = vmatprep.subr.bf16.mxu1 %v9883_v8  ;;  %v9937_v8 = vld [vmem:[#allocation10 + $0x2a4] ss:$8 sps:$4 sm:$0xff]  }
 0x8a6   :  { %7929 = vmatpush1.bf16.msra.mxu1 %v9881_v6  ;;  %v9935_v6 = vld [vmem:[#allocation10 + $0x2a0] ss:$8 sps:$4 sm:$0xff]  }
 0x8a7   :  { %7930 = vmatprep.subr.bf16.mxu1 %v9886_v12  ;;  %v9940_v12 = vld [vmem:[#allocation10 + $0x2b4] ss:$8 sps:$4 sm:$0xff]  }
 0x8aa   :  { %7931 = vmatpush1.bf16.msra.mxu1 %v9884_v62  ;;  %v9938_v62 = vld [vmem:[#allocation10 + $0x2b0] ss:$8 sps:$4 sm:$0xff]  }
 0x8ab   :  { %7932 = vmatprep.subr.bf16.mxu1 %v9889_v13  ;;  %v9943_v13 = vld [vmem:[#allocation10 + $0x2c4] ss:$8 sps:$4 sm:$0xff]  }
 0x8ae   :  { %7933 = vmatpush1.bf16.msra.mxu1 %v9887_v17  ;;  %v9941_v17 = vld [vmem:[#allocation10 + $0x2c0] ss:$8 sps:$4 sm:$0xff]  }
 0x8af   :  { %7934 = vmatprep.subr.bf16.mxu1 %v9892_v19  ;;  %v9946_v19 = vld [vmem:[#allocation10 + $0x2d4] ss:$8 sps:$4 sm:$0xff]  }
 0x8b2   :  { %7935 = vmatpush1.bf16.msra.mxu1 %v9890_v21  ;;  %v9944_v21 = vld [vmem:[#allocation10 + $0x2d0] ss:$8 sps:$4 sm:$0xff]  }
 0x8b3   :  { %7936 = vmatprep.subr.bf16.mxu1 %v9895_v22  ;;  %v4622_v22 = vrot.slane %v10724_v39, %v10608_v24 }
 0x8b5   :  { %v6080_v29 = vadd.f32 %v10717_v50, %v4622_v22  ;;  %v9956_v50 = vld [vmem:[#allocation10 + $0x310] ss:$8 sps:$4 sm:$0xff]   ;;  %v9995_v22 = vld [vmem:[#allocation10 + $0x3e0] ss:$8 sps:$4 sm:$0xff]  }
 0x8b6   :  { %7937 = vmatpush1.bf16.msra.mxu1 %v9893_v25  ;;  %v9949_v25 = vld [vmem:[#allocation10 + $0x2e4] ss:$8 sps:$4 sm:$0xff]  }
 0x8b7   :  { %7938 = vmatprep.subr.bf16.mxu1 %v9898_v14  ;;  %v4634_v14 = vrot.slane %v10724_v39, %v10611_v26  ;;  %v6295_v33 = vmax.f32 %v6080_v29, 0.0  ;;  %v9998_v29 = vld [vmem:[#allocation10 + $0x3f0] ss:$8 sps:$4 sm:$0xff]  }
 0x8b9   :  { %v6123_v31 = vadd.f32 %v10732_v1, %v4634_v14  ;;  %v6311_v5 = vpack.c.bf16 %v6295_v33, %v6295_v33  ;;  %v9959_v1 = vld [vmem:[#allocation10 + $0x320] ss:$8 sps:$4 sm:$0xff]   ;;  %v10000_v14 = vld [vmem:[#allocation10 + $0x3f4] ss:$8 sps:$4 sm:$0xff]  }
 0x8ba   :  { %7939 = vmatpush1.bf16.msra.mxu1 %v9896_v55  ;;  %v9947_v55 = vld [vmem:[#allocation10 + $0x2e0] ss:$8 sps:$4 sm:$0xff]  }
 0x8bb   :  { %7940 = vmatprep.subr.bf16.mxu1 %v9901_v30  ;;  %v9952_v30 = vld [vmem:[#allocation10 + $0x2f4] ss:$8 sps:$4 sm:$0xff]   ;;  %v6298_v36 = vmax.f32 %v6123_v31, 0.0  ;;  %v10003_v31 = vld [vmem:[#allocation10 + $0x404] ss:$8 sps:$4 sm:$0xff]  }
 0x8bd   :  { %v6314_v59 = vpack.c.bf16 %v6298_v36, %v6298_v36 }
 0x8be   :  { %7941 = vmatpush1.bf16.msra.mxu1 %v9899_v32  ;;  %v9950_v32 = vld [vmem:[#allocation10 + $0x2f0] ss:$8 sps:$4 sm:$0xff]  }
 0x8bf   :  { %7942 = vmatprep.subr.bf16.mxu1 %v9904_v41  ;;  %v9955_v41 = vld [vmem:[#allocation10 + $0x304] ss:$8 sps:$4 sm:$0xff]  }
 0x8c2   :  { %7943 = vmatpush1.bf16.msra.mxu1 %v9902_v37  ;;  %v9953_v37 = vld [vmem:[#allocation10 + $0x300] ss:$8 sps:$4 sm:$0xff]  }
 0x8c3   :  { %7953 = vmatprep.subr.bf16.mxu1 %v9907_v56  ;;  %v9958_v56 = vld [vmem:[#allocation10 + $0x314] ss:$8 sps:$4 sm:$0xff]  }
 0x8c5   :  { %7945 = vmatmul.mubr.bf16.vlgmr.msra.gmra.mrb[36].mxu1 %v6309_v43  ;;  %v9964_v43 = vld [vmem:[#allocation10 + $0x334] ss:$8 sps:$4 sm:$0xff]  }
 0x8c6   :  { %7954 = vmatpush1.bf16.msra.mxu1 %v9905_v42  ;;  %7985 = vmatprep.mubr.bf16.mxu1 %v6312_v45  ;;  %v9961_v42 = vld [vmem:[#allocation10 + $0x324] ss:$8 sps:$4 sm:$0xff]  }
 0x8c7   :  { %7955 = vmatprep.subr.bf16.mxu1 %v9910_v44  ;;  %v9962_v44 = vld [vmem:[#allocation10 + $0x330] ss:$8 sps:$4 sm:$0xff]   ;;  %v9967_v45 = vld [vmem:[#allocation10 + $0x344] ss:$8 sps:$4 sm:$0xff]  }
 0x8ca   :  { %7956 = vmatpush1.bf16.msra.mxu1 %v9908_v34  ;;  %v9965_v34 = vld [vmem:[#allocation10 + $0x340] ss:$8 sps:$4 sm:$0xff]  }
 0x8cb   :  { %7957 = vmatprep.subr.bf16.mxu1 %v9913_v46  ;;  %v9970_v46 = vld [vmem:[#allocation10 + $0x354] ss:$8 sps:$4 sm:$0xff]  }
 0x8ce   :  { %7958 = vmatpush1.bf16.msra.mxu1 %v9911_v51  ;;  %v9968_v51 = vld [vmem:[#allocation10 + $0x350] ss:$8 sps:$4 sm:$0xff]  }
 0x8cf   :  { %7959 = vmatprep.subr.bf16.mxu1 %v9916_v3  ;;  %v9973_v3 = vld [vmem:[#allocation10 + $0x364] ss:$8 sps:$4 sm:$0xff]  }
 0x8d2   :  { %7960 = vmatpush1.bf16.msra.mxu1 %v9914_v48 }
 0x8d3   :  { %7961 = vmatprep.subr.bf16.mxu1 %v9919_v9 }
 0x8d6   :  { %7962 = vmatpush1.bf16.msra.mxu1 %v9917_v4 }
 0x8d7   :  { %7963 = vmatprep.subr.bf16.mxu1 %v9922_v7  ;;  %v9971_v7 = vld [vmem:[#allocation10 + $0x360] ss:$8 sps:$4 sm:$0xff]  }
 0x8d8   :  { %v10750_v60 = vpop.f32.mrb[28].mxu1 }
 0x8d9   :  { %v10752_v49 = vpop.f32.mrb[29].mxu1 }
 0x8da   :  { %v6206_v52 = vpop.f32.mrb[30].mxu1  ;;  %7964 = vmatpush1.bf16.msra.mxu1 %v9920_v18 }
 0x8db   :  { %v6207_v15 = vpop.f32.mrb[31].mxu1  ;;  %7965 = vmatprep.subr.bf16.mxu1 %v9925_v47  ;;  %v9976_v47 = vld [vmem:[#allocation10 + $0x374] ss:$8 sps:$4 sm:$0xff]   ;;  %v9974_v52 = vld [vmem:[#allocation10 + $0x370] ss:$8 sps:$4 sm:$0xff]  }
 0x8dc   :  { %v9977_v15 = vld [vmem:[#allocation10 + $0x380] ss:$8 sps:$4 sm:$0xff]  }
 0x8de   :  { %7966 = vmatpush1.bf16.msra.mxu1 %v9923_v54  ;;  %v9979_v54 = vld [vmem:[#allocation10 + $0x384] ss:$8 sps:$4 sm:$0xff]  }
 0x8df   :  { %7967 = vmatprep.subr.bf16.mxu1 %v9928_v11  ;;  %v9982_v11 = vld [vmem:[#allocation10 + $0x394] ss:$8 sps:$4 sm:$0xff]  }
 0x8e2   :  { %7968 = vmatpush1.bf16.msra.mxu1 %v9926_v27  ;;  %v9980_v27 = vld [vmem:[#allocation10 + $0x390] ss:$8 sps:$4 sm:$0xff]  }
 0x8e3   :  { %7969 = vmatprep.subr.bf16.mxu1 %v9931_v61  ;;  %v9985_v61 = vld [vmem:[#allocation10 + $0x3a4] ss:$8 sps:$4 sm:$0xff]  }
 0x8e6   :  { %7970 = vmatpush1.bf16.msra.mxu1 %v9929_v63  ;;  %v9983_v63 = vld [vmem:[#allocation10 + $0x3a0] ss:$8 sps:$4 sm:$0xff]  }
 0x8e7   :  { %7971 = vmatprep.subr.bf16.mxu1 %v9934_v10  ;;  %v9988_v10 = vld [vmem:[#allocation10 + $0x3b4] ss:$8 sps:$4 sm:$0xff]  }
 0x8ea   :  { %7972 = vmatpush1.bf16.msra.mxu1 %v9932_v2  ;;  %v9986_v2 = vld [vmem:[#allocation10 + $0x3b0] ss:$8 sps:$4 sm:$0xff]  }
 0x8eb   :  { %7973 = vmatprep.subr.bf16.mxu1 %v9937_v8  ;;  %v9991_v8 = vld [vmem:[#allocation10 + $0x3c4] ss:$8 sps:$4 sm:$0xff]  }
 0x8ee   :  { %7974 = vmatpush1.bf16.msra.mxu1 %v9935_v6  ;;  %v9989_v6 = vld [vmem:[#allocation10 + $0x3c0] ss:$8 sps:$4 sm:$0xff]  }
 0x8ef   :  { %7975 = vmatprep.subr.bf16.mxu1 %v9940_v12  ;;  %v9994_v12 = vld [vmem:[#allocation10 + $0x3d4] ss:$8 sps:$4 sm:$0xff]  }
 0x8f2   :  { %7976 = vmatpush1.bf16.msra.mxu1 %v9938_v62  ;;  %v9992_v62 = vld [vmem:[#allocation10 + $0x3d0] ss:$8 sps:$4 sm:$0xff]  }
 0x8f3   :  { %7977 = vmatprep.subr.bf16.mxu1 %v9943_v13  ;;  %v10767_v13 = vld [vmem:[%s10815_s11 + $0x8] sm:$0xff] }
 0x8f6   :  { %7978 = vmatpush1.bf16.msra.mxu1 %v9941_v17  ;;  %v4630_v17 = vrot.slane %v10724_v39, %v10624_v16  ;;  %v10001_v39 = vld [vmem:[#allocation10 + $0x400] ss:$8 sps:$4 sm:$0xff]  }
 0x8f7   :  { %7979 = vmatprep.subr.bf16.mxu1 %v9946_v19  ;;  %v9997_v19 = vld [vmem:[#allocation10 + $0x3e4] ss:$8 sps:$4 sm:$0xff]  }
 0x8fa   :  { %7980 = vmatpush1.bf16.msra.mxu1 %v9944_v21  ;;  %v4642_v21 = vrot.slane %v10767_v13, %v10559_v38 }
 0x8fb   :  { %7981 = vmatprep.subr.bf16.mxu1 %v9949_v25  ;;  %v6121_v25 = vadd.f32 %v10730_v0, %v4630_v17  ;;  %v10004_v0 = vld [vmem:[#allocation10 + $0x410] ss:$8 sps:$4 sm:$0xff]  }
 0x8fe   :  { %7982 = vmatpush1.bf16.msra.mxu1 %v9947_v55  ;;  %v6164_v55 = vadd.f32 %v10742_v23, %v4642_v21  ;;  %v10007_v23 = vld [vmem:[#allocation10 + $0x420] ss:$8 sps:$4 sm:$0xff]  }
 0x8ff   :  { %7983 = vmatprep.subr.bf16.mxu1 %v9952_v30  ;;  %v6297_v30 = vmax.f32 %v6121_v25, 0.0 }
 0x901   :  { %v6313_v33 = vpack.c.bf16 %v6297_v30, %v6297_v30  ;;  %v10058_v30 = vld [vmem:[#allocation10 + $0x530] ss:$8 sps:$4 sm:$0xff]  }
 0x902   :  { %7984 = vmatpush1.bf16.msra.mxu1 %v9950_v32  ;;  %v6300_v32 = vmax.f32 %v6164_v55, 0.0  ;;  %v10057_v55 = vld [vmem:[#allocation10 + $0x524] ss:$8 sps:$4 sm:$0xff]  }
 0x903   :  { %7994 = vmatprep.subr.bf16.mxu1 %v9955_v41  ;;  %v10006_v41 = vld [vmem:[#allocation10 + $0x414] ss:$8 sps:$4 sm:$0xff]  }
 0x904   :  { %v6316_v36 = vpack.c.bf16 %v6300_v32, %v6300_v32  ;;  %v10061_v32 = vld [vmem:[#allocation10 + $0x540] ss:$8 sps:$4 sm:$0xff]  }
 0x905   :  { %7986 = vmatmul.mubr.bf16.vlgmr.msra.gmra.mrb[36].mxu1 %v6311_v5  ;;  %v10012_v5 = vld [vmem:[#allocation10 + $0x434] ss:$8 sps:$4 sm:$0xff]  }
 0x906   :  { %7995 = vmatpush1.bf16.msra.mxu1 %v9953_v37  ;;  %8026 = vmatprep.mubr.bf16.mxu1 %v6314_v59  ;;  %v10009_v37 = vld [vmem:[#allocation10 + $0x424] ss:$8 sps:$4 sm:$0xff]  }
 0x907   :  { %7996 = vmatprep.subr.bf16.mxu1 %v9958_v56  ;;  %v10010_v56 = vld [vmem:[#allocation10 + $0x430] ss:$8 sps:$4 sm:$0xff]   ;;  %v10015_v59 = vld [vmem:[#allocation10 + $0x444] ss:$8 sps:$4 sm:$0xff]  }
 0x90a   :  { %7997 = vmatpush1.bf16.msra.mxu1 %v9956_v50  ;;  %v10013_v50 = vld [vmem:[#allocation10 + $0x440] ss:$8 sps:$4 sm:$0xff]  }
 0x90b   :  { %7998 = vmatprep.subr.bf16.mxu1 %v9961_v42  ;;  %v10018_v42 = vld [vmem:[#allocation10 + $0x454] ss:$8 sps:$4 sm:$0xff]  }
 0x90e   :  { %7999 = vmatpush1.bf16.msra.mxu1 %v9959_v1  ;;  %v10016_v1 = vld [vmem:[#allocation10 + $0x450] ss:$8 sps:$4 sm:$0xff]  }
 0x90f   :  { %8000 = vmatprep.subr.bf16.mxu1 %v9964_v43  ;;  %v10021_v43 = vld [vmem:[#allocation10 + $0x464] ss:$8 sps:$4 sm:$0xff]  }
 0x912   :  { %8001 = vmatpush1.bf16.msra.mxu1 %v9962_v44  ;;  %v10019_v44 = vld [vmem:[#allocation10 + $0x460] ss:$8 sps:$4 sm:$0xff]  }
 0x913   :  { %8002 = vmatprep.subr.bf16.mxu1 %v9967_v45  ;;  %v10024_v45 = vld [vmem:[#allocation10 + $0x474] ss:$8 sps:$4 sm:$0xff]  }
 0x916   :  { %8003 = vmatpush1.bf16.msra.mxu1 %v9965_v34  ;;  %v10022_v34 = vld [vmem:[#allocation10 + $0x470] ss:$8 sps:$4 sm:$0xff]  }
 0x917   :  { %8004 = vmatprep.subr.bf16.mxu1 %v9970_v46  ;;  %v10027_v46 = vld [vmem:[#allocation10 + $0x484] ss:$8 sps:$4 sm:$0xff]  }
 0x918   :  { %v10760_v48 = vpop.f32.mrb[32].mxu1 }
 0x919   :  { %v10762_v9 = vpop.f32.mrb[33].mxu1 }
 0x91a   :  { %v6247_v4 = vpop.f32.mrb[34].mxu1  ;;  %8005 = vmatpush1.bf16.msra.mxu1 %v9968_v51  ;;  %v10025_v51 = vld [vmem:[#allocation10 + $0x480] ss:$8 sps:$4 sm:$0xff]  }
 0x91b   :  { %v6248_v18 = vpop.f32.mrb[35].mxu1  ;;  %8006 = vmatprep.subr.bf16.mxu1 %v9973_v3  ;;  %v10030_v3 = vld [vmem:[#allocation10 + $0x494] ss:$8 sps:$4 sm:$0xff]   ;;  %v10028_v4 = vld [vmem:[#allocation10 + $0x490] ss:$8 sps:$4 sm:$0xff]  }
 0x91c   :  { %v10031_v18 = vld [vmem:[#allocation10 + $0x4a0] ss:$8 sps:$4 sm:$0xff]  }
 0x91e   :  { %8007 = vmatpush1.bf16.msra.mxu1 %v9971_v7  ;;  %v10033_v7 = vld [vmem:[#allocation10 + $0x4a4] ss:$8 sps:$4 sm:$0xff]  }
 0x91f   :  { %8008 = vmatprep.subr.bf16.mxu1 %v9976_v47  ;;  %v10036_v47 = vld [vmem:[#allocation10 + $0x4b4] ss:$8 sps:$4 sm:$0xff]  }
 0x922   :  { %8009 = vmatpush1.bf16.msra.mxu1 %v9974_v52  ;;  %v10034_v52 = vld [vmem:[#allocation10 + $0x4b0] ss:$8 sps:$4 sm:$0xff]  }
 0x923   :  { %8010 = vmatprep.subr.bf16.mxu1 %v9979_v54  ;;  %v10039_v54 = vld [vmem:[#allocation10 + $0x4c4] ss:$8 sps:$4 sm:$0xff]  }
 0x926   :  { %8011 = vmatpush1.bf16.msra.mxu1 %v9977_v15  ;;  %v10037_v15 = vld [vmem:[#allocation10 + $0x4c0] ss:$8 sps:$4 sm:$0xff]  }
 0x927   :  { %8012 = vmatprep.subr.bf16.mxu1 %v9982_v11  ;;  %v10042_v11 = vld [vmem:[#allocation10 + $0x4d4] ss:$8 sps:$4 sm:$0xff]  }
 0x92a   :  { %8013 = vmatpush1.bf16.msra.mxu1 %v9980_v27  ;;  %v10040_v27 = vld [vmem:[#allocation10 + $0x4d0] ss:$8 sps:$4 sm:$0xff]  }
 0x92b   :  { %8014 = vmatprep.subr.bf16.mxu1 %v9985_v61  ;;  %v4638_v61 = vrot.slane %v10767_v13, %v10575_v20 }
 0x92e   :  { %8015 = vmatpush1.bf16.msra.mxu1 %v9983_v63  ;;  %v10045_v63 = vld [vmem:[#allocation10 + $0x4e4] ss:$8 sps:$4 sm:$0xff]  }
 0x92f   :  { %8016 = vmatprep.subr.bf16.mxu1 %v9988_v10  ;;  %v4650_v10 = vrot.slane %v10767_v13, %v10578_v28 }
 0x932   :  { %8017 = vmatpush1.bf16.msra.mxu1 %v9986_v2  ;;  %v10043_v2 = vld [vmem:[#allocation10 + $0x4e0] ss:$8 sps:$4 sm:$0xff]  }
 0x933   :  { %8018 = vmatprep.subr.bf16.mxu1 %v9991_v8  ;;  %v6162_v8 = vadd.f32 %v10740_v58, %v4638_v61  ;;  %v10052_v58 = vld [vmem:[#allocation10 + $0x510] ss:$8 sps:$4 sm:$0xff]  }
 0x935   :  { %v6299_v17 = vmax.f32 %v6162_v8, 0.0  ;;  %v10106_v8 = vld [vmem:[#allocation10 + $0x630] ss:$8 sps:$4 sm:$0xff]  }
 0x936   :  { %8019 = vmatpush1.bf16.msra.mxu1 %v9989_v6  ;;  %v10048_v6 = vld [vmem:[#allocation10 + $0x4f4] ss:$8 sps:$4 sm:$0xff]  }
 0x937   :  { %8020 = vmatprep.subr.bf16.mxu1 %v9994_v12  ;;  %v6205_v12 = vadd.f32 %v10752_v49, %v4650_v10  ;;  %v6315_v25 = vpack.c.bf16 %v6299_v17, %v6299_v17  ;;  %v10055_v49 = vld [vmem:[#allocation10 + $0x520] ss:$8 sps:$4 sm:$0xff]   ;;  %v10105_v10 = vld [vmem:[#allocation10 + $0x624] ss:$8 sps:$4 sm:$0xff]   ;;  %v10112_v17 = vld [vmem:[#allocation10 + $0x650] ss:$8 sps:$4 sm:$0xff]  }
 0x939   :  { %v6302_v21 = vmax.f32 %v6205_v12, 0.0  ;;  %v10109_v12 = vld [vmem:[#allocation10 + $0x640] ss:$8 sps:$4 sm:$0xff]  }
 0x93a   :  { %8021 = vmatpush1.bf16.msra.mxu1 %v9992_v62  ;;  %v10046_v62 = vld [vmem:[#allocation10 + $0x4f0] ss:$8 sps:$4 sm:$0xff]  }
 0x93b   :  { %8022 = vmatprep.subr.bf16.mxu1 %v9997_v19  ;;  %v10051_v19 = vld [vmem:[#allocation10 + $0x504] ss:$8 sps:$4 sm:$0xff]   ;;  %v6318_v28 = vpack.c.bf16 %v6302_v21, %v6302_v21  ;;  %v10115_v21 = vld [vmem:[#allocation10 + $0x660] ss:$8 sps:$4 sm:$0xff]  }
 0x93e   :  { %8023 = vmatpush1.bf16.msra.mxu1 %v9995_v22  ;;  %v10049_v22 = vld [vmem:[#allocation10 + $0x500] ss:$8 sps:$4 sm:$0xff]  }
 0x93f   :  { %8024 = vmatprep.subr.bf16.mxu1 %v10000_v14  ;;  %v10054_v14 = vld [vmem:[#allocation10 + $0x514] ss:$8 sps:$4 sm:$0xff]  }
 0x942   :  { %8025 = vmatpush1.bf16.msra.mxu1 %v9998_v29  ;;  %v10060_v29 = vld [vmem:[#allocation10 + $0x534] ss:$8 sps:$4 sm:$0xff]  }
 0x943   :  { %8035 = vmatprep.subr.bf16.mxu1 %v10003_v31  ;;  %v10063_v31 = vld [vmem:[#allocation10 + $0x544] ss:$8 sps:$4 sm:$0xff]  }
 0x945   :  { %8027 = vmatmul.mubr.bf16.vlgmr.msra.gmra.mrb[36].mxu1 %v6313_v33  ;;  %v10064_v33 = vld [vmem:[#allocation10 + $0x550] ss:$8 sps:$4 sm:$0xff]  }
 0x946   :  { %8036 = vmatpush1.bf16.msra.mxu1 %v10001_v39  ;;  %8067 = vmatprep.mubr.bf16.mxu1 %v6316_v36  ;;  %v10066_v39 = vld [vmem:[#allocation10 + $0x554] ss:$8 sps:$4 sm:$0xff]   ;;  %v10067_v36 = vld [vmem:[#allocation10 + $0x560] ss:$8 sps:$4 sm:$0xff]  }
 0x947   :  { %8037 = vmatprep.subr.bf16.mxu1 %v10006_v41  ;;  %v10069_v41 = vld [vmem:[#allocation10 + $0x564] ss:$8 sps:$4 sm:$0xff]  }
 0x94a   :  { %8038 = vmatpush1.bf16.msra.mxu1 %v10004_v0  ;;  %v10072_v0 = vld [vmem:[#allocation10 + $0x574] ss:$8 sps:$4 sm:$0xff]  }
 0x94b   :  { %8039 = vmatprep.subr.bf16.mxu1 %v10009_v37  ;;  %v10070_v37 = vld [vmem:[#allocation10 + $0x570] ss:$8 sps:$4 sm:$0xff]  }
 0x94e   :  { %8040 = vmatpush1.bf16.msra.mxu1 %v10007_v23  ;;  %v10075_v23 = vld [vmem:[#allocation10 + $0x584] ss:$8 sps:$4 sm:$0xff]  }
 0x94f   :  { %8041 = vmatprep.subr.bf16.mxu1 %v10012_v5  ;;  %v10073_v5 = vld [vmem:[#allocation10 + $0x580] ss:$8 sps:$4 sm:$0xff]  }
 0x952   :  { %8042 = vmatpush1.bf16.msra.mxu1 %v10010_v56  ;;  %v10078_v56 = vld [vmem:[#allocation10 + $0x594] ss:$8 sps:$4 sm:$0xff]  }
 0x953   :  { %8043 = vmatprep.subr.bf16.mxu1 %v10015_v59  ;;  %v10076_v59 = vld [vmem:[#allocation10 + $0x590] ss:$8 sps:$4 sm:$0xff]  }
 0x956   :  { %8044 = vmatpush1.bf16.msra.mxu1 %v10013_v50  ;;  %v10081_v50 = vld [vmem:[#allocation10 + $0x5a4] ss:$8 sps:$4 sm:$0xff]  }
 0x957   :  { %8045 = vmatprep.subr.bf16.mxu1 %v10018_v42  ;;  %v10079_v42 = vld [vmem:[#allocation10 + $0x5a0] ss:$8 sps:$4 sm:$0xff]  }
 0x95a   :  { %8046 = vmatpush1.bf16.msra.mxu1 %v10016_v1  ;;  %v10084_v1 = vld [vmem:[#allocation10 + $0x5b4] ss:$8 sps:$4 sm:$0xff]  }
 0x95b   :  { %8047 = vmatprep.subr.bf16.mxu1 %v10021_v43  ;;  %v10082_v43 = vld [vmem:[#allocation10 + $0x5b0] ss:$8 sps:$4 sm:$0xff]  }
 0x95e   :  { %8048 = vmatpush1.bf16.msra.mxu1 %v10019_v44  ;;  %v10087_v44 = vld [vmem:[#allocation10 + $0x5c4] ss:$8 sps:$4 sm:$0xff]  }
 0x95f   :  { %8049 = vmatprep.subr.bf16.mxu1 %v10024_v45  ;;  %v10085_v45 = vld [vmem:[#allocation10 + $0x5c0] ss:$8 sps:$4 sm:$0xff]  }
 0x962   :  { %8050 = vmatpush1.bf16.msra.mxu1 %v10022_v34  ;;  %v10090_v34 = vld [vmem:[#allocation10 + $0x5d4] ss:$8 sps:$4 sm:$0xff]  }
 0x963   :  { %8051 = vmatprep.subr.bf16.mxu1 %v10027_v46  ;;  %v10088_v46 = vld [vmem:[#allocation10 + $0x5d0] ss:$8 sps:$4 sm:$0xff]  }
 0x966   :  { %8052 = vmatpush1.bf16.msra.mxu1 %v10025_v51  ;;  %v4646_v51 = vrot.slane %v10767_v13, %v10591_v35  ;;  %v10097_v35 = vld [vmem:[#allocation10 + $0x600] ss:$8 sps:$4 sm:$0xff]  }
 0x967   :  { %8053 = vmatprep.subr.bf16.mxu1 %v10030_v3  ;;  %v10093_v3 = vld [vmem:[#allocation10 + $0x5e4] ss:$8 sps:$4 sm:$0xff]  }
 0x96a   :  { %8054 = vmatpush1.bf16.msra.mxu1 %v10028_v4  ;;  %v4658_v4 = vrot.slane %v10767_v13, %v10594_v40 }
 0x96b   :  { %8055 = vmatprep.subr.bf16.mxu1 %v10033_v7  ;;  %v10091_v7 = vld [vmem:[#allocation10 + $0x5e0] ss:$8 sps:$4 sm:$0xff]  }
 0x96e   :  { %8056 = vmatpush1.bf16.msra.mxu1 %v10031_v18  ;;  %v6203_v18 = vadd.f32 %v10750_v60, %v4646_v51  ;;  %v10100_v60 = vld [vmem:[#allocation10 + $0x610] ss:$8 sps:$4 sm:$0xff]  }
 0x96f   :  { %8057 = vmatprep.subr.bf16.mxu1 %v10036_v47  ;;  %v10096_v47 = vld [vmem:[#allocation10 + $0x5f4] ss:$8 sps:$4 sm:$0xff]   ;;  %v10154_v51 = vld [vmem:[#allocation10 + $0x730] ss:$8 sps:$4 sm:$0xff]  }
 0x972   :  { %8058 = vmatpush1.bf16.msra.mxu1 %v10034_v52  ;;  %v6246_v52 = vadd.f32 %v10762_v9, %v4658_v4  ;;  %v10103_v9 = vld [vmem:[#allocation10 + $0x620] ss:$8 sps:$4 sm:$0xff]  }
 0x973   :  { %8059 = vmatprep.subr.bf16.mxu1 %v10039_v54  ;;  %v10094_v54 = vld [vmem:[#allocation10 + $0x5f0] ss:$8 sps:$4 sm:$0xff]   ;;  %v10157_v4 = vld [vmem:[#allocation10 + $0x740] ss:$8 sps:$4 sm:$0xff]  }
 0x976   :  { %8060 = vmatpush1.bf16.msra.mxu1 %v10037_v15  ;;  %v6301_v15 = vmax.f32 %v6203_v18, 0.0  ;;  %v10160_v18 = vld [vmem:[#allocation10 + $0x750] ss:$8 sps:$4 sm:$0xff]  }
 0x977   :  { %8061 = vmatprep.subr.bf16.mxu1 %v10042_v11  ;;  %v10099_v11 = vld [vmem:[#allocation10 + $0x604] ss:$8 sps:$4 sm:$0xff]  }
 0x978   :  { %v6317_v61 = vpack.c.bf16 %v6301_v15, %v6301_v15  ;;  %v10166_v15 = vld [vmem:[#allocation10 + $0x770] ss:$8 sps:$4 sm:$0xff]  }
 0x97a   :  { %8062 = vmatpush1.bf16.msra.mxu1 %v10040_v27  ;;  %v6304_v27 = vmax.f32 %v6246_v52, 0.0  ;;  %v10163_v52 = vld [vmem:[#allocation10 + $0x760] ss:$8 sps:$4 sm:$0xff]  }
 0x97b   :  { %8063 = vmatprep.subr.bf16.mxu1 %v10045_v63  ;;  %v10102_v63 = vld [vmem:[#allocation10 + $0x614] ss:$8 sps:$4 sm:$0xff]  }
 0x97c   :  { %v6320_v40 = vpack.c.bf16 %v6304_v27, %v6304_v27  ;;  %v10169_v27 = vld [vmem:[#allocation10 + $0x780] ss:$8 sps:$4 sm:$0xff]  }
 0x97e   :  { %8064 = vmatpush1.bf16.msra.mxu1 %v10043_v2  ;;  %v10108_v2 = vld [vmem:[#allocation10 + $0x634] ss:$8 sps:$4 sm:$0xff]  }
 0x97f   :  { %8065 = vmatprep.subr.bf16.mxu1 %v10048_v6  ;;  %v10111_v6 = vld [vmem:[#allocation10 + $0x644] ss:$8 sps:$4 sm:$0xff]  }
 0x982   :  { %8066 = vmatpush1.bf16.msra.mxu1 %v10046_v62  ;;  %v10114_v62 = vld [vmem:[#allocation10 + $0x654] ss:$8 sps:$4 sm:$0xff]  }
 0x983   :  { %8076 = vmatprep.subr.bf16.mxu1 %v10051_v19  ;;  %v10117_v19 = vld [vmem:[#allocation10 + $0x664] ss:$8 sps:$4 sm:$0xff]  }
 0x985   :  { %8068 = vmatmul.mubr.bf16.vlgmr.msra.gmra.mrb[36].mxu1 %v6315_v25  ;;  %v10118_v25 = vld [vmem:[#allocation10 + $0x670] ss:$8 sps:$4 sm:$0xff]  }
 0x986   :  { %8077 = vmatpush1.bf16.msra.mxu1 %v10049_v22  ;;  %8108 = vmatprep.mubr.bf16.mxu1 %v6318_v28  ;;  %v10120_v22 = vld [vmem:[#allocation10 + $0x674] ss:$8 sps:$4 sm:$0xff]   ;;  %v10121_v28 = vld [vmem:[#allocation10 + $0x680] ss:$8 sps:$4 sm:$0xff]  }
 0x987   :  { %8078 = vmatprep.subr.bf16.mxu1 %v10054_v14  ;;  %v10123_v14 = vld [vmem:[#allocation10 + $0x684] ss:$8 sps:$4 sm:$0xff]  }
 0x98a   :  { %8079 = vmatpush1.bf16.msra.mxu1 %v10052_v58  ;;  %v10126_v58 = vld [vmem:[#allocation10 + $0x694] ss:$8 sps:$4 sm:$0xff]  }
 0x98b   :  { %8080 = vmatprep.subr.bf16.mxu1 %v10057_v55  ;;  %v10124_v55 = vld [vmem:[#allocation10 + $0x690] ss:$8 sps:$4 sm:$0xff]  }
 0x98e   :  { %8081 = vmatpush1.bf16.msra.mxu1 %v10055_v49  ;;  %v10129_v49 = vld [vmem:[#allocation10 + $0x6a4] ss:$8 sps:$4 sm:$0xff]  }
 0x98f   :  { %8082 = vmatprep.subr.bf16.mxu1 %v10060_v29  ;;  %v10127_v29 = vld [vmem:[#allocation10 + $0x6a0] ss:$8 sps:$4 sm:$0xff]  }
 0x992   :  { %8083 = vmatpush1.bf16.msra.mxu1 %v10058_v30  ;;  %v10132_v30 = vld [vmem:[#allocation10 + $0x6b4] ss:$8 sps:$4 sm:$0xff]  }
 0x993   :  { %8084 = vmatprep.subr.bf16.mxu1 %v10063_v31  ;;  %v10130_v31 = vld [vmem:[#allocation10 + $0x6b0] ss:$8 sps:$4 sm:$0xff]  }
 0x996   :  { %8085 = vmatpush1.bf16.msra.mxu1 %v10061_v32  ;;  %v10135_v32 = vld [vmem:[#allocation10 + $0x6c4] ss:$8 sps:$4 sm:$0xff]  }
 0x997   :  { %8086 = vmatprep.subr.bf16.mxu1 %v10066_v39  ;;  %v10133_v39 = vld [vmem:[#allocation10 + $0x6c0] ss:$8 sps:$4 sm:$0xff]  }
 0x99a   :  { %8087 = vmatpush1.bf16.msra.mxu1 %v10064_v33  ;;  %v10138_v33 = vld [vmem:[#allocation10 + $0x6d4] ss:$8 sps:$4 sm:$0xff]  }
 0x99b   :  { %8088 = vmatprep.subr.bf16.mxu1 %v10069_v41  ;;  %v10136_v41 = vld [vmem:[#allocation10 + $0x6d0] ss:$8 sps:$4 sm:$0xff]  }
 0x99e   :  { %8089 = vmatpush1.bf16.msra.mxu1 %v10067_v36  ;;  %v4654_v36 = vrot.slane %v10767_v13, %v10608_v24  ;;  %v10145_v24 = vld [vmem:[#allocation10 + $0x700] ss:$8 sps:$4 sm:$0xff]  }
 0x99f   :  { %8090 = vmatprep.subr.bf16.mxu1 %v10072_v0  ;;  %v10141_v0 = vld [vmem:[#allocation10 + $0x6e4] ss:$8 sps:$4 sm:$0xff]  }
 0x9a2   :  { %8091 = vmatpush1.bf16.msra.mxu1 %v10070_v37  ;;  %v4666_v37 = vrot.slane %v10767_v13, %v10611_v26 }
 0x9a3   :  { %8092 = vmatprep.subr.bf16.mxu1 %v10075_v23  ;;  %v10139_v23 = vld [vmem:[#allocation10 + $0x6e0] ss:$8 sps:$4 sm:$0xff]  }
 0x9a6   :  { %8093 = vmatpush1.bf16.msra.mxu1 %v10073_v5  ;;  %v6244_v5 = vadd.f32 %v10760_v48, %v4654_v36  ;;  %v10148_v48 = vld [vmem:[#allocation10 + $0x710] ss:$8 sps:$4 sm:$0xff]  }
 0x9a7   :  { %8094 = vmatprep.subr.bf16.mxu1 %v10078_v56  ;;  %v10144_v56 = vld [vmem:[#allocation10 + $0x6f4] ss:$8 sps:$4 sm:$0xff]  }
 0x9aa   :  { %8095 = vmatpush1.bf16.msra.mxu1 %v10076_v59  ;;  %v6287_v59 = vadd.f32 %v10707_v53, %v4666_v37  ;;  %v10151_v53 = vld [vmem:[#allocation10 + $0x720] ss:$8 sps:$4 sm:$0xff]  }
 0x9ab   :  { %8096 = vmatprep.subr.bf16.mxu1 %v10081_v50  ;;  %v10142_v50 = vld [vmem:[#allocation10 + $0x6f0] ss:$8 sps:$4 sm:$0xff]  }
 0x9ae   :  { %8097 = vmatpush1.bf16.msra.mxu1 %v10079_v42  ;;  %v6303_v42 = vmax.f32 %v6244_v5, 0.0 }
 0x9af   :  { %8098 = vmatprep.subr.bf16.mxu1 %v10084_v1  ;;  %v10147_v1 = vld [vmem:[#allocation10 + $0x704] ss:$8 sps:$4 sm:$0xff]  }
 0x9b2   :  { %8099 = vmatpush1.bf16.msra.mxu1 %v10082_v43  ;;  %v6306_v43 = vmax.f32 %v6287_v59, 0.0 }
 0x9b3   :  { %8100 = vmatprep.subr.bf16.mxu1 %v10087_v44  ;;  %v6319_v44 = vpack.c.bf16 %v6303_v42, %v6303_v42 }
 0x9b4   :  { %v6322_v26 = vpack.c.bf16 %v6306_v43, %v6306_v43 }
 0x9b6   :  { %8101 = vmatpush1.bf16.msra.mxu1 %v10085_v45  ;;  %v10150_v45 = vld [vmem:[#allocation10 + $0x714] ss:$8 sps:$4 sm:$0xff]  }
 0x9b7   :  { %8102 = vmatprep.subr.bf16.mxu1 %v10090_v34  ;;  %v10153_v34 = vld [vmem:[#allocation10 + $0x724] ss:$8 sps:$4 sm:$0xff]  }
 0x9ba   :  { %8103 = vmatpush1.bf16.msra.mxu1 %v10088_v46  ;;  %v10156_v46 = vld [vmem:[#allocation10 + $0x734] ss:$8 sps:$4 sm:$0xff]  }
 0x9bb   :  { %8104 = vmatprep.subr.bf16.mxu1 %v10093_v3  ;;  %v10159_v3 = vld [vmem:[#allocation10 + $0x744] ss:$8 sps:$4 sm:$0xff]  }
 0x9be   :  { %8105 = vmatpush1.bf16.msra.mxu1 %v10091_v7  ;;  %v10162_v7 = vld [vmem:[#allocation10 + $0x754] ss:$8 sps:$4 sm:$0xff]  }
 0x9bf   :  { %8106 = vmatprep.subr.bf16.mxu1 %v10096_v47  ;;  %v10165_v47 = vld [vmem:[#allocation10 + $0x764] ss:$8 sps:$4 sm:$0xff]  }
 0x9c2   :  { %8107 = vmatpush1.bf16.msra.mxu1 %v10094_v54  ;;  %v10168_v54 = vld [vmem:[#allocation10 + $0x774] ss:$8 sps:$4 sm:$0xff]  }
 0x9c3   :  { %8117 = vmatprep.subr.bf16.mxu1 %v10099_v11  ;;  %v10171_v11 = vld [vmem:[#allocation10 + $0x784] ss:$8 sps:$4 sm:$0xff]  }
 0x9c5   :  { %8109 = vmatmul.mubr.bf16.vlgmr.msra.gmra.mrb[36].mxu1 %v6317_v61  ;;  %v10172_v61 = vld [vmem:[#allocation10 + $0x790] ss:$8 sps:$4 sm:$0xff]  }
 0x9c6   :  { %8118 = vmatpush1.bf16.msra.mxu1 %v10097_v35  ;;  %8149 = vmatprep.mubr.bf16.mxu1 %v6320_v40  ;;  %v10174_v35 = vld [vmem:[#allocation10 + $0x794] ss:$8 sps:$4 sm:$0xff]   ;;  %v10175_v40 = vld [vmem:[#allocation10 + $0x7a0] ss:$8 sps:$4 sm:$0xff]  }
 0x9c7   :  { %8119 = vmatprep.subr.bf16.mxu1 %v10102_v63  ;;  %v10177_v63 = vld [vmem:[#allocation10 + $0x7a4] ss:$8 sps:$4 sm:$0xff]  }
 0x9ca   :  { %8120 = vmatpush1.bf16.msra.mxu1 %v10100_v60  ;;  %v10180_v60 = vld [vmem:[#allocation10 + $0x7b4] ss:$8 sps:$4 sm:$0xff]  }
 0x9cb   :  { %8121 = vmatprep.subr.bf16.mxu1 %v10105_v10  ;;  %v10178_v10 = vld [vmem:[#allocation10 + $0x7b0] ss:$8 sps:$4 sm:$0xff]  }
 0x9ce   :  { %8122 = vmatpush1.bf16.msra.mxu1 %v10103_v9  ;;  %v10183_v9 = vld [vmem:[#allocation10 + $0x7c4] ss:$8 sps:$4 sm:$0xff]  }
 0x9cf   :  { %8123 = vmatprep.subr.bf16.mxu1 %v10108_v2  ;;  %v10181_v2 = vld [vmem:[#allocation10 + $0x7c0] ss:$8 sps:$4 sm:$0xff]  }
 0x9d2   :  { %8124 = vmatpush1.bf16.msra.mxu1 %v10106_v8  ;;  %v10186_v8 = vld [vmem:[#allocation10 + $0x7d4] ss:$8 sps:$4 sm:$0xff]  }
 0x9d3   :  { %8125 = vmatprep.subr.bf16.mxu1 %v10111_v6  ;;  %v10184_v6 = vld [vmem:[#allocation10 + $0x7d0] ss:$8 sps:$4 sm:$0xff]  }
 0x9d6   :  { %8126 = vmatpush1.bf16.msra.mxu1 %v10109_v12  ;;  %v4662_v12 = vrot.slane %v10767_v13, %v10624_v16 }
 0x9d7   :  { %8127 = vmatprep.subr.bf16.mxu1 %v10114_v62  ;;  %v10189_v62 = vld [vmem:[#allocation10 + $0x7e4] ss:$8 sps:$4 sm:$0xff]  }
 0x9da   :  { %8128 = vmatpush1.bf16.msra.mxu1 %v10112_v17  ;;  %v10187_v17 = vld [vmem:[#allocation10 + $0x7e0] ss:$8 sps:$4 sm:$0xff]  }
 0x9db   :  { %8129 = vmatprep.subr.bf16.mxu1 %v10117_v19  ;;  %v6285_v19 = vadd.f32 %v10703_v57, %v4662_v12 }
 0x9de   :  { %8130 = vmatpush1.bf16.msra.mxu1 %v10115_v21  ;;  %v10192_v21 = vld [vmem:[#allocation10 + $0x7f4] ss:$8 sps:$4 sm:$0xff]  }
 0x9df   :  { %8131 = vmatprep.subr.bf16.mxu1 %v10120_v22  ;;  %v10190_v22 = vld [vmem:[#allocation10 + $0x7f0] ss:$8 sps:$4 sm:$0xff]  }
 0x9e2   :  { %8132 = vmatpush1.bf16.msra.mxu1 %v10118_v25  ;;  %v6305_v25 = vmax.f32 %v6285_v19, 0.0 }
 0x9e3   :  { %8133 = vmatprep.subr.bf16.mxu1 %v10123_v14 }
 0x9e4   :  { %v6321_v14 = vpack.c.bf16 %v6305_v25, %v6305_v25 }
 0x9e6   :  { %8134 = vmatpush1.bf16.msra.mxu1 %v10121_v28  ;;  %v6579_v28 = vld [vmem:[%s10816_s12] sm:$0x3] }
 0x9e7   :  { %8135 = vmatprep.subr.bf16.mxu1 %v10126_v58  ;;  %v6584_v16 = vrot.slane %v6579_v28, %v10575_v20  ;;  %v6588_v13 = vrot.slane %v6579_v28, %v10559_v38 }
 0x9ea   :  { %8136 = vmatpush1.bf16.msra.mxu1 %v10124_v55 }
 0x9eb   :  { %8137 = vmatprep.subr.bf16.mxu1 %v10129_v49 }
 0x9ee   :  { %8138 = vmatpush1.bf16.msra.mxu1 %v10127_v29 }
 0x9ef   :  { %8139 = vmatprep.subr.bf16.mxu1 %v10132_v30 }
 0x9f2   :  { %8140 = vmatpush1.bf16.msra.mxu1 %v10130_v31 }
 0x9f3   :  { %8141 = vmatprep.subr.bf16.mxu1 %v10135_v32 }
 0x9f6   :  { %8142 = vmatpush1.bf16.msra.mxu1 %v10133_v39 }
 0x9f7   :  { %8143 = vmatprep.subr.bf16.mxu1 %v10138_v33 }
 0x9fa   :  { %8144 = vmatpush1.bf16.msra.mxu1 %v10136_v41 }
 0x9fb   :  { %8145 = vmatprep.subr.bf16.mxu1 %v10141_v0 }
 0x9fe   :  { %8146 = vmatpush1.bf16.msra.mxu1 %v10139_v23 }
 0x9ff   :  { %8147 = vmatprep.subr.bf16.mxu1 %v10144_v56 }
 0xa02   :  { %8148 = vmatpush1.bf16.msra.mxu1 %v10142_v50 }
 0xa03   :  { %8158 = vmatprep.subr.bf16.mxu1 %v10147_v1 }
 0xa05   :  { %8150 = vmatmul.mubr.bf16.vlgmr.msra.gmra.mrb[36].mxu1 %v6319_v44 }
 0xa06   :  { %8159 = vmatpush1.bf16.msra.mxu1 %v10145_v24  ;;  %8190 = vmatprep.mubr.bf16.mxu1 %v6322_v26 }
 0xa07   :  { %8160 = vmatprep.subr.bf16.mxu1 %v10150_v45 }
 0xa0a   :  { %8161 = vmatpush1.bf16.msra.mxu1 %v10148_v48 }
 0xa0b   :  { %8162 = vmatprep.subr.bf16.mxu1 %v10153_v34 }
 0xa0e   :  { %8163 = vmatpush1.bf16.msra.mxu1 %v10151_v53 }
 0xa0f   :  { %8164 = vmatprep.subr.bf16.mxu1 %v10156_v46 }
 0xa12   :  { %8165 = vmatpush1.bf16.msra.mxu1 %v10154_v51 }
 0xa13   :  { %8166 = vmatprep.subr.bf16.mxu1 %v10159_v3 }
 0xa16   :  { %8167 = vmatpush1.bf16.msra.mxu1 %v10157_v4 }
 0xa17   :  { %8168 = vmatprep.subr.bf16.mxu1 %v10162_v7 }
 0xa1a   :  { %8169 = vmatpush1.bf16.msra.mxu1 %v10160_v18 }
 0xa1b   :  { %8170 = vmatprep.subr.bf16.mxu1 %v10165_v47 }
 0xa1e   :  { %8171 = vmatpush1.bf16.msra.mxu1 %v10163_v52 }
 0xa1f   :  { %8172 = vmatprep.subr.bf16.mxu1 %v10168_v54 }
 0xa22   :  { %8173 = vmatpush1.bf16.msra.mxu1 %v10166_v15 }
 0xa23   :  { %8174 = vmatprep.subr.bf16.mxu1 %v10171_v11 }
 0xa26   :  { %8175 = vmatpush1.bf16.msra.mxu1 %v10169_v27 }
 0xa27   :  { %8176 = vmatprep.subr.bf16.mxu1 %v10174_v35 }
 0xa2a   :  { %8177 = vmatpush1.bf16.msra.mxu1 %v10172_v61 }
 0xa2b   :  { %8178 = vmatprep.subr.bf16.mxu1 %v10177_v63 }
 0xa2e   :  { %8179 = vmatpush1.bf16.msra.mxu1 %v10175_v40 }
 0xa2f   :  { %8180 = vmatprep.subr.bf16.mxu1 %v10180_v60 }
 0xa32   :  { %8181 = vmatpush1.bf16.msra.mxu1 %v10178_v10 }
 0xa33   :  { %8182 = vmatprep.subr.bf16.mxu1 %v10183_v9 }
 0xa36   :  { %8183 = vmatpush1.bf16.msra.mxu1 %v10181_v2 }
 0xa37   :  { %8184 = vmatprep.subr.bf16.mxu1 %v10186_v8 }
 0xa3a   :  { %8185 = vmatpush1.bf16.msra.mxu1 %v10184_v6 }
 0xa3b   :  { %8186 = vmatprep.subr.bf16.mxu1 %v10189_v62 }
 0xa3e   :  { %8187 = vmatpush1.bf16.msra.mxu1 %v10187_v17 }
 0xa3f   :  { %8188 = vmatprep.subr.bf16.mxu1 %v10192_v21 }
 0xa42   :  { %8189 = vmatpush1.bf16.msra.mxu1 %v10190_v22 }
 0xa45   :  { %8191 = vmatmul.mubr.bf16.vlgmr.msra.gmra.mrb[36].mxu1 %v6321_v14 }
 0xb18   :  { %v8192_v58 = vpop.f32.mrb[36].mxu1 }
 0xb19   :  { %v9314_v55 = vadd.f32 %v8192_v58, %v6584_v16  ;;  %v8194_v57 = vpop.f32.mrb[37].mxu1 }
 0xb1a   :  { %v9315_v49 = vadd.f32 %v8194_v57, %v6588_v13  ;;  %v8196_v29 = vpop.f32.mrb[38].mxu1 }
 0xb1b   :  { %v8199_v30 = vsub.f32 0.0, %v9314_v55  ;;  %v8197_v31 = vpop.f32.mrb[39].mxu1 }
 0xb1c   :  { %v8200_v32 = vsub.f32 0.0, %v9315_v49 }
 0xb1d   :  { %v8201_v39 = vmul.f32 1.442695, %v8199_v30 }
 0xb1e   :  { %v8203_v33 = vmul.f32 1.442695, %v8200_v32 }
 0xb1f   :  { %10193 = vpow2.f32 %v8201_v39 }
 0xb20   :  { %10195 = vpow2.f32 %v8203_v33 }
 0xb29   :  { %v10194_v41 = vpop.eup %10193 }
 0xb2a   :  { %v10196_v36 = vpop.eup %10195  ;;  %v8205_v0 = vadd.f32 1.0, %v10194_v41 }
 0xb2b   :  { %v8206_v37 = vadd.f32 1.0, %v10196_v36 }
 0xb2c   :  { %10197 = vrcp.f32 %v8205_v0 }
 0xb2d   :  { %10199 = vrcp.f32 %v8206_v37 }
 0xb36   :  { %v10198_v20 = vpop.eup %10197 }
 0xb37   :  { %v10200_v38 = vpop.eup %10199 }
 0xb38   :  { %v8213_v23 = vcombine.low %v10198_v20, %v10200_v38 }
 0xb3a   :  { %9289 = vst.sshfl [vmem:[%s10817_s13] sm:$0x33 pattern:$0x76325410] %v8213_v23 }
 0xb3b   :  { %8227 = vsyncpa [#allocation3], 1 }
 0xb3c   :  { %8228 = vsyncpa [#allocation5], 1 }
 0xb3d   :  { %8229 = vsyncpa [#allocation8], 1 }
 0xb3e   :  { %8230 = vsyncpa [#allocation11], 1 }

</bundles_post_ra>
